<compile_context>
chip_gen: v5e
topology: v5e:2x2
jax: 0.10.0
libtpu: 0.0.40
codegen_flags: <defaults>
</compile_context>

<pallas_src>
import math

import jax
import jax.numpy as jnp
from jax.experimental import pallas as pl
from jax.experimental.pallas import tpu as pltpu  # noqa: F401

# ---------------- synthetic T5 config (small) ----------------
VOCAB = 64
D_MODEL = 32
D_KV = 8
N_HEADS = 4                  # inner_dim = N_HEADS * D_KV = 32
INNER = N_HEADS * D_KV
D_FF = 64
N_LAYERS = 2
NUM_BUCKETS = 32
MAX_DISTANCE = 128
LN_EPS = 1e-6
NEG_INF = -1e9


# ---------------- the fused Pallas kernel ----------------
def _t5_kernel(x_enc_ref, x_dec_ref, enc_bias_ref, dec_bias_ref, cross_bias_ref,
               labels_ref,
               e_ln1_ref, e_wqkv_ref, e_wo_ref, e_ln2_ref, e_wi_ref, e_wo2_ref,
               e_lnf_ref,
               d_ln1_ref, d_sa_wqkv_ref, d_sa_wo_ref, d_ln2_ref,
               d_ca_wq_ref, d_ca_wkv_ref, d_ca_wo_ref, d_ln3_ref,
               d_wi_ref, d_wo2_ref, d_lnf_ref, lm_head_ref,
               loss_ref, logits_ref):
    bf16 = jnp.bfloat16

    def rmsnorm(x, w):
        # x: (N, D) f32, w: (1, D) f32   (T5 RMSNorm, no mean subtraction)
        var = jnp.mean(x * x, axis=-1, keepdims=True)
        return x * jax.lax.rsqrt(var + LN_EPS) * w

    def attn_head(q, k, v, bias_h):
        # q: (Nq, Dh) f32, k/v: (Nk, Dh) f32, bias_h: (Nq, Nk) f32
        # NOTE: T5 does NOT scale QK^T by 1/sqrt(d_kv); additive bias carries
        # the mask (and the block-diagonal batch separation).
        s = jnp.dot(q.astype(bf16), k.T.astype(bf16),
                    preferred_element_type=jnp.float32) + bias_h
        s = s - jnp.max(s, axis=-1, keepdims=True)
        p = jnp.exp(s)
        p = p * pl.reciprocal(jnp.sum(p, axis=-1, keepdims=True), approx=True)
        return jnp.dot(p.astype(bf16), v.astype(bf16),
                       preferred_element_type=jnp.float32)       # (Nq, Dh) f32

    def mha(q_all, kv_all, wo_ref, l, bias):
        # q_all: (Nq, INNER) f32, kv_all: (Nk, 2*INNER) f32 laid out [K | V]
        # wo_ref: (L, H, Dh, D) bf16, bias: (H, Nq, Nk) f32
        out = None
        for hd in range(N_HEADS):
            q = q_all[:, hd * D_KV:(hd + 1) * D_KV]
            k = kv_all[:, hd * D_KV:(hd + 1) * D_KV]
            v = kv_all[:, INNER + hd * D_KV:INNER + (hd + 1) * D_KV]
            ctx = attn_head(q, k, v, bias[hd])
            contrib = jnp.dot(ctx.astype(bf16), wo_ref[l, hd],
                              preferred_element_type=jnp.float32)  # (Nq, D)
            out = contrib if out is None else out + contrib
        return out

    def self_attn(x, l, wqkv_ref, wo_ref, bias):
        qkv = jnp.dot(x.astype(bf16), wqkv_ref[l],
                      preferred_element_type=jnp.float32)          # (N, 3*INNER)
        return mha(qkv[:, :INNER], qkv[:, INNER:], wo_ref, l, bias)

    def cross_attn(x, mem_b, l, wq_ref, wkv_ref, wo_ref, bias):
        q_all = jnp.dot(x.astype(bf16), wq_ref[l],
                        preferred_element_type=jnp.float32)        # (Nq, INNER)
        kv_all = jnp.dot(mem_b, wkv_ref[l],
                         preferred_element_type=jnp.float32)       # (Nk, 2*INNER)
        return mha(q_all, kv_all, wo_ref, l, bias)

    def ff(x, l, wi_ref, wo2_ref):
        h = jnp.dot(x.astype(bf16), wi_ref[l],
                    preferred_element_type=jnp.float32)
        h = jnp.maximum(h, 0.0)                                    # DenseReluDense
        return jnp.dot(h.astype(bf16), wo2_ref[l],
                       preferred_element_type=jnp.float32)

    enc_bias = enc_bias_ref[...]          # (H, B*Se, B*Se) f32
    dec_bias = dec_bias_ref[...]          # (H, B*Sd, B*Sd) f32
    cross_bias = cross_bias_ref[...]      # (H, B*Sd, B*Se) f32

    # ---------------- encoder ----------------
    x = x_enc_ref[...]                    # (B*Se, D) f32
    for l in range(N_LAYERS):
        h = rmsnorm(x, e_ln1_ref[l])
        x = x + self_attn(h, l, e_wqkv_ref, e_wo_ref, enc_bias)
        h = rmsnorm(x, e_ln2_ref[l])
        x = x + ff(h, l, e_wi_ref, e_wo2_ref)
    enc_out = rmsnorm(x, e_lnf_ref[...])
    mem_b = enc_out.astype(bf16)          # cast once for all cross-attn layers

    # ---------------- decoder ----------------
    x = x_dec_ref[...]                    # (B*Sd, D) f32
    for l in range(N_LAYERS):
        h = rmsnorm(x, d_ln1_ref[l])
        x = x + self_attn(h, l, d_sa_wqkv_ref, d_sa_wo_ref, dec_bias)
        h = rmsnorm(x, d_ln2_ref[l])
        x = x + cross_attn(h, mem_b, l, d_ca_wq_ref, d_ca_wkv_ref, d_ca_wo_ref,
                           cross_bias)
        h = rmsnorm(x, d_ln3_ref[l])
        x = x + ff(h, l, d_wi_ref, d_wo2_ref)
    dec_out = rmsnorm(x, d_lnf_ref[...])

    # ------------- LM head (tied emb; d_model**-0.5 folded into weights) ----
    logits = jnp.dot(dec_out.astype(bf16), lm_head_ref[...],
                     preferred_element_type=jnp.float32)           # (B*Sd, V)
    logits_ref[...] = logits

    # ------------- cross-entropy (ignore_index=-100, mean over valid) -------
    labels = labels_ref[...]                                        # (B*Sd, 1)
    m = jnp.max(logits, axis=-1, keepdims=True)
    lse = jnp.log(jnp.sum(jnp.exp(logits - m), axis=-1, keepdims=True)) + m
    col = jax.lax.broadcasted_iota(jnp.int32, logits.shape, 1)
    onehot = (col == labels).astype(jnp.float32)
    tgt = jnp.sum(onehot * logits, axis=-1, keepdims=True)
    valid = (labels != -100).astype(jnp.float32)
    per_tok = (lse - tgt) * valid
    loss = jnp.sum(per_tok) / jnp.maximum(jnp.sum(valid), 1.0)
    loss_ref[...] = loss.reshape(1, 1)


# ---------------- T5 glue (plain JAX, runs once per forward) ----------------
def relative_position_bucket(relative_position, bidirectional, num_buckets,
                             max_distance):
    relative_buckets = jnp.zeros_like(relative_position)
    if bidirectional:
        num_buckets //= 2
        relative_buckets = relative_buckets + (
            (relative_position > 0).astype(jnp.int32) * num_buckets)
        relative_position = jnp.abs(relative_position)
    else:
        relative_position = -jnp.minimum(relative_position, 0)
    max_exact = num_buckets // 2
    is_small = relative_position < max_exact
    rp_f = jnp.maximum(relative_position.astype(jnp.float32), 1.0)
    rp_large = max_exact + (
        jnp.log(rp_f / max_exact) / math.log(max_distance / max_exact)
        * (num_buckets - max_exact)).astype(jnp.int32)
    rp_large = jnp.minimum(rp_large, num_buckets - 1)
    return relative_buckets + jnp.where(is_small, relative_position, rp_large)


def compute_position_bias(rel_emb, q_len, k_len, bidirectional):
    ctx = jnp.arange(q_len)[:, None]
    mem = jnp.arange(k_len)[None, :]
    buckets = relative_position_bucket(mem - ctx, bidirectional,
                                       NUM_BUCKETS, MAX_DISTANCE)
    bias = rel_emb[buckets]                       # (q, k, H)
    return jnp.transpose(bias, (2, 0, 1))[None]   # (1, H, q, k)


def block_diag_bias(bias):
    """(B, H, Sq, Sk) -> (H, B*Sq, B*Sk) with -1e9 on cross-batch blocks."""
    B, H, Sq, Sk = bias.shape
    out = jnp.full((H, B * Sq, B * Sk), NEG_INF, jnp.float32)
    for b in range(B):
        out = out.at[:, b * Sq:(b + 1) * Sq, b * Sk:(b + 1) * Sk].set(
            bias[b].astype(jnp.float32))
    return out


# ---------------- forward pass ----------------
def t5_forward(packed, input_ids, attention_mask, decoder_input_ids,
               decoder_attention_mask, labels):
    B, Se = input_ids.shape
    Sd = decoder_input_ids.shape[1]

    # embedding gathers (plain JAX)
    x_enc = packed["emb"][input_ids].reshape(B * Se, D_MODEL)
    x_dec = packed["emb"][decoder_input_ids].reshape(B * Sd, D_MODEL)

    # encoder self-attention bias (position bias + padding mask)
    ext = (1.0 - attention_mask[:, None, None, :].astype(jnp.float32)) * NEG_INF
    enc_b = compute_position_bias(packed["enc_rel_bias"], Se, Se, True) + ext
    enc_bias = block_diag_bias(jnp.broadcast_to(enc_b, (B, N_HEADS, Se, Se)))

    # decoder self-attention bias (position bias + causal * padding mask)
    causal = (jnp.arange(Sd)[None, :] <= jnp.arange(Sd)[:, None]).astype(jnp.float32)
    self_mask = decoder_attention_mask[:, None, None, :].astype(jnp.float32) \
        * causal[None, None, :, :]
    self_ext = (1.0 - self_mask) * NEG_INF
    dec_b = compute_position_bias(packed["dec_rel_bias"], Sd, Sd, False) + self_ext
    dec_bias = block_diag_bias(jnp.broadcast_to(dec_b, (B, N_HEADS, Sd, Sd)))

    # cross-attention bias (encoder padding mask only; no position bias in T5)
    cross_ext = (1.0 - attention_mask[:, None, None, :].astype(jnp.float32)) * NEG_INF
    cross_bias = block_diag_bias(
        jnp.broadcast_to(cross_ext, (B, N_HEADS, Sd, Se)))

    labels2d = labels.reshape(B * Sd, 1).astype(jnp.int32)

    loss, logits = pl.pallas_call(
        _t5_kernel,
        out_shape=(
            jax.ShapeDtypeStruct((1, 1), jnp.float32),
            jax.ShapeDtypeStruct((B * Sd, VOCAB), jnp.float32),
        ),
    )(x_enc, x_dec, enc_bias, dec_bias, cross_bias, labels2d,
      packed["e_ln1"], packed["e_wqkv"], packed["e_wo"], packed["e_ln2"],
      packed["e_wi"], packed["e_wo2"], packed["e_lnf"],
      packed["d_ln1"], packed["d_sa_wqkv"], packed["d_sa_wo"], packed["d_ln2"],
      packed["d_ca_wq"], packed["d_ca_wkv"], packed["d_ca_wo"], packed["d_ln3"],
      packed["d_wi"], packed["d_wo2"], packed["d_lnf"], packed["lm_head"])

    return loss[0, 0], logits.reshape(B, Sd, VOCAB)


# ---------------- deterministic parameter init + packing ----------------
def init_params(key):
    def normal(k, shape, scale=0.05):
        return (scale * jax.random.normal(k, shape)).astype(jnp.float32)

    keys = iter(jax.random.split(key, 256))
    params = {
        "shared": normal(next(keys), (VOCAB, D_MODEL)),
        "enc_rel_bias": normal(next(keys), (NUM_BUCKETS, N_HEADS)),
        "dec_rel_bias": normal(next(keys), (NUM_BUCKETS, N_HEADS)),
        "enc_final_ln": jnp.ones((D_MODEL,), jnp.float32),
        "dec_final_ln": jnp.ones((D_MODEL,), jnp.float32),
        "encoder": [],
        "decoder": [],
    }
    for _ in range(N_LAYERS):
        params["encoder"].append({
            "ln1": jnp.ones((D_MODEL,), jnp.float32),
            "wq": normal(next(keys), (D_MODEL, INNER)),
            "wk": normal(next(keys), (D_MODEL, INNER)),
            "wv": normal(next(keys), (D_MODEL, INNER)),
            "wo": normal(next(keys), (INNER, D_MODEL)),
            "ln2": jnp.ones((D_MODEL,), jnp.float32),
            "wi": normal(next(keys), (D_MODEL, D_FF)),
            "wo_ff": normal(next(keys), (D_FF, D_MODEL)),
        })
        params["decoder"].append({
            "ln1": jnp.ones((D_MODEL,), jnp.float32),
            "sa_wq": normal(next(keys), (D_MODEL, INNER)),
            "sa_wk": normal(next(keys), (D_MODEL, INNER)),
            "sa_wv": normal(next(keys), (D_MODEL, INNER)),
            "sa_wo": normal(next(keys), (INNER, D_MODEL)),
            "ln2": jnp.ones((D_MODEL,), jnp.float32),
            "ca_wq": normal(next(keys), (D_MODEL, INNER)),
            "ca_wk": normal(next(keys), (D_MODEL, INNER)),
            "ca_wv": normal(next(keys), (D_MODEL, INNER)),
            "ca_wo": normal(next(keys), (INNER, D_MODEL)),
            "ln3": jnp.ones((D_MODEL,), jnp.float32),
            "wi": normal(next(keys), (D_MODEL, D_FF)),
            "wo_ff": normal(next(keys), (D_FF, D_MODEL)),
        })
    return params
    # TODO(synk): dropout layers from T5 are omitted (eval semantics, p=0).


def pack_params(p):
    """Stack per-layer weights, fuse QKV, pre-transpose LM head, cast to bf16."""
    bf = lambda a: a.astype(jnp.bfloat16)

    def stk(layers, k):
        return jnp.stack([lyr[k] for lyr in layers])

    def fuse(layers, *ks):
        return jnp.concatenate([stk(layers, k) for k in ks], axis=-1)

    def head_split(w):                     # (L, INNER, D) -> (L, H, Dh, D)
        return w.reshape(w.shape[0], N_HEADS, D_KV, D_MODEL)

    enc, dec = p["encoder"], p["decoder"]
    return {
        "emb": p["shared"],
        "enc_rel_bias": p["enc_rel_bias"],
        "dec_rel_bias": p["dec_rel_bias"],
        "e_ln1": stk(enc, "ln1")[:, None, :],
        "e_wqkv": bf(fuse(enc, "wq", "wk", "wv")),          # (L, D, 3*INNER)
        "e_wo": bf(head_split(stk(enc, "wo"))),              # (L, H, Dh, D)
        "e_ln2": stk(enc, "ln2")[:, None, :],
        "e_wi": bf(stk(enc, "wi")),                          # (L, D, D_FF)
        "e_wo2": bf(stk(enc, "wo_ff")),                      # (L, D_FF, D)
        "e_lnf": p["enc_final_ln"][None, :],
        "d_ln1": stk(dec, "ln1")[:, None, :],
        "d_sa_wqkv": bf(fuse(dec, "sa_wq", "sa_wk", "sa_wv")),
        "d_sa_wo": bf(head_split(stk(dec, "sa_wo"))),
        "d_ln2": stk(dec, "ln2")[:, None, :],
        "d_ca_wq": bf(stk(dec, "ca_wq")),
        "d_ca_wkv": bf(fuse(dec, "ca_wk", "ca_wv")),
        "d_ca_wo": bf(head_split(stk(dec, "ca_wo"))),
        "d_ln3": stk(dec, "ln3")[:, None, :],
        "d_wi": bf(stk(dec, "wi")),
        "d_wo2": bf(stk(dec, "wo_ff")),
        "d_lnf": p["dec_final_ln"][None, :],
        # tied word embeddings: pre-transpose + fold in d_model**-0.5 rescale
        "lm_head": bf(p["shared"].T * (D_MODEL ** -0.5)),
    }
    # TODO(synk): at these toy shapes a single fused kernel on one TensorCore is
    # optimal; for real T5 sizes / v7x, add a parallel grid axis over B*H or
    # sequence tiles so work shards across the 2 TensorCores.


# ---------------- main ----------------
if __name__ == "__main__":
    key = jax.random.PRNGKey(0)
    kp, k1, k2, k3 = jax.random.split(key, 4)
    params = init_params(kp)
    packed = pack_params(params)

    B, S_ENC, S_DEC = 2, 8, 8
    input_ids = jax.random.randint(k1, (B, S_ENC), 0, VOCAB, dtype=jnp.int32)
    attention_mask = jnp.ones((B, S_ENC), jnp.int32).at[1, 6:].set(0)
    decoder_input_ids = jax.random.randint(k2, (B, S_DEC), 0, VOCAB, dtype=jnp.int32)
    decoder_attention_mask = jnp.ones((B, S_DEC), jnp.int32).at[0, 5:].set(0)
    raw_labels = jax.random.randint(k3, (B, S_DEC), 0, VOCAB, dtype=jnp.int32)
    labels = jnp.where(decoder_attention_mask == 1, raw_labels, -100)

    fwd = jax.jit(t5_forward)
    loss, logits = fwd(packed, input_ids, attention_mask, decoder_input_ids,
                       decoder_attention_mask, labels)
    jax.block_until_ready((loss, logits))
    assert logits.shape == (B, S_DEC, VOCAB)
    assert jnp.isfinite(loss)
    print("KERNEL_OK")
</pallas_src>

<mosaic_0001>
module attributes {stable_mosaic.version = 11 : i64} {
  func.func @_t5_kernel(%arg0: memref<16x32xf32, #tpu.memory_space<vmem>>, %arg1: memref<16x32xf32, #tpu.memory_space<vmem>>, %arg2: memref<4x16x16xf32, #tpu.memory_space<vmem>>, %arg3: memref<4x16x16xf32, #tpu.memory_space<vmem>>, %arg4: memref<4x16x16xf32, #tpu.memory_space<vmem>>, %arg5: memref<16x1xi32, #tpu.memory_space<vmem>>, %arg6: memref<2x1x32xf32, #tpu.memory_space<vmem>>, %arg7: memref<2x32x96xbf16, #tpu.memory_space<vmem>>, %arg8: memref<2x4x8x32xbf16, #tpu.memory_space<vmem>>, %arg9: memref<2x1x32xf32, #tpu.memory_space<vmem>>, %arg10: memref<2x32x64xbf16, #tpu.memory_space<vmem>>, %arg11: memref<2x64x32xbf16, #tpu.memory_space<vmem>>, %arg12: memref<1x32xf32, #tpu.memory_space<vmem>>, %arg13: memref<2x1x32xf32, #tpu.memory_space<vmem>>, %arg14: memref<2x32x96xbf16, #tpu.memory_space<vmem>>, %arg15: memref<2x4x8x32xbf16, #tpu.memory_space<vmem>>, %arg16: memref<2x1x32xf32, #tpu.memory_space<vmem>>, %arg17: memref<2x32x32xbf16, #tpu.memory_space<vmem>>, %arg18: memref<2x32x64xbf16, #tpu.memory_space<vmem>>, %arg19: memref<2x4x8x32xbf16, #tpu.memory_space<vmem>>, %arg20: memref<2x1x32xf32, #tpu.memory_space<vmem>>, %arg21: memref<2x32x64xbf16, #tpu.memory_space<vmem>>, %arg22: memref<2x64x32xbf16, #tpu.memory_space<vmem>>, %arg23: memref<1x32xf32, #tpu.memory_space<vmem>>, %arg24: memref<32x64xbf16, #tpu.memory_space<vmem>>, %arg25: memref<1x1xf32, #tpu.memory_space<vmem>>, %arg26: memref<16x64xf32, #tpu.memory_space<vmem>>) attributes {dimension_semantics = [], scalar_prefetch = 0 : i64, scratch_operands = 0 : i64, tpu.core_type = #tpu.core_type<tc>} {
    %c0 = arith.constant 0 : index
    %c0_0 = arith.constant 0 : index
    %c0_1 = arith.constant 0 : index
    %0 = vector.load %arg2[%c0, %c0_0, %c0_1] : memref<4x16x16xf32, #tpu.memory_space<vmem>>, vector<4x16x16xf32>
    %c0_2 = arith.constant 0 : index
    %c0_3 = arith.constant 0 : index
    %c0_4 = arith.constant 0 : index
    %1 = vector.load %arg3[%c0_2, %c0_3, %c0_4] : memref<4x16x16xf32, #tpu.memory_space<vmem>>, vector<4x16x16xf32>
    %c0_5 = arith.constant 0 : index
    %c0_6 = arith.constant 0 : index
    %c0_7 = arith.constant 0 : index
    %2 = vector.load %arg4[%c0_5, %c0_6, %c0_7] : memref<4x16x16xf32, #tpu.memory_space<vmem>>, vector<4x16x16xf32>
    %c0_8 = arith.constant 0 : index
    %c0_9 = arith.constant 0 : index
    %3 = vector.load %arg0[%c0_8, %c0_9] : memref<16x32xf32, #tpu.memory_space<vmem>>, vector<16x32xf32>
    %c0_10 = arith.constant 0 : index
    %c0_11 = arith.constant 0 : index
    %c0_12 = arith.constant 0 : index
    %4 = vector.load %arg6[%c0_10, %c0_11, %c0_12] : memref<2x1x32xf32, #tpu.memory_space<vmem>>, vector<1x1x32xf32>
    %5 = vector.shape_cast %4 : vector<1x1x32xf32> to vector<1x32xf32>
    %6 = arith.mulf %3, %3 : vector<16x32xf32>
    %cst = arith.constant dense<0.000000e+00> : vector<16xf32>
    %7 = vector.multi_reduction <add>, %6, %cst [1] : vector<16x32xf32> to vector<16xf32>
    %8 = vector.shape_cast %7 : vector<16xf32> to vector<16x1xf32>
    %cst_13 = arith.constant 3.200000e+01 : f32
    %9 = vector.broadcast %cst_13 : f32 to vector<16x1xf32>
    %10 = arith.divf %8, %9 : vector<16x1xf32>
    %cst_14 = arith.constant 9.99999997E-7 : f32
    %11 = vector.broadcast %cst_14 : f32 to vector<16x1xf32>
    %12 = arith.addf %10, %11 : vector<16x1xf32>
    %13 = math.rsqrt %12 : vector<16x1xf32>
    %14 = vector.broadcast %13 : vector<16x1xf32> to vector<16x32xf32>
    %15 = arith.mulf %3, %14 : vector<16x32xf32>
    %16 = vector.broadcast %5 : vector<1x32xf32> to vector<16x32xf32>
    %17 = arith.mulf %15, %16 : vector<16x32xf32>
    %18 = arith.truncf %17 : vector<16x32xf32> to vector<16x32xbf16>
    %c0_15 = arith.constant 0 : index
    %c0_16 = arith.constant 0 : index
    %c0_17 = arith.constant 0 : index
    %19 = vector.load %arg7[%c0_15, %c0_16, %c0_17] : memref<2x32x96xbf16, #tpu.memory_space<vmem>>, vector<1x32x96xbf16>
    %20 = vector.shape_cast %19 : vector<1x32x96xbf16> to vector<32x96xbf16>
    %cst_18 = arith.constant dense<0.000000e+00> : vector<16x96xf32>
    %21 = tpu.matmul %18, %20, %cst_18 {dimension_numbers = #tpu.dot_dimension_numbers<[1], [0], [0], [1], [0, 0, 1, 1], [], []>} : vector<16x32xbf16>, vector<32x96xbf16>, vector<16x96xf32> -> vector<16x96xf32>
    %22 = vector.extract_strided_slice %21 {offsets = [0, 0], sizes = [16, 32], strides = [1, 1]} : vector<16x96xf32> to vector<16x32xf32>
    %23 = vector.extract_strided_slice %21 {offsets = [0, 32], sizes = [16, 64], strides = [1, 1]} : vector<16x96xf32> to vector<16x64xf32>
    %24 = vector.extract_strided_slice %22 {offsets = [0, 0], sizes = [16, 8], strides = [1, 1]} : vector<16x32xf32> to vector<16x8xf32>
    %25 = vector.extract_strided_slice %23 {offsets = [0, 0], sizes = [16, 8], strides = [1, 1]} : vector<16x64xf32> to vector<16x8xf32>
    %26 = vector.extract_strided_slice %23 {offsets = [0, 32], sizes = [16, 8], strides = [1, 1]} : vector<16x64xf32> to vector<16x8xf32>
    %27 = vector.extract_strided_slice %0 {offsets = [0, 0, 0], sizes = [1, 16, 16], strides = [1, 1, 1]} : vector<4x16x16xf32> to vector<1x16x16xf32>
    %28 = vector.shape_cast %27 : vector<1x16x16xf32> to vector<16x16xf32>
    %29 = arith.truncf %24 : vector<16x8xf32> to vector<16x8xbf16>
    %30 = tpu.transpose %25, [1, 0] : vector<16x8xf32> -> vector<8x16xf32>
    %31 = arith.truncf %30 : vector<8x16xf32> to vector<8x16xbf16>
    %cst_19 = arith.constant dense<0.000000e+00> : vector<16x16xf32>
    %32 = tpu.matmul %29, %31, %cst_19 {dimension_numbers = #tpu.dot_dimension_numbers<[1], [0], [0], [1], [0, 0, 1, 1], [], []>} : vector<16x8xbf16>, vector<8x16xbf16>, vector<16x16xf32> -> vector<16x16xf32>
    %33 = arith.addf %32, %28 : vector<16x16xf32>
    %cst_20 = arith.constant dense<0xFF800000> : vector<16xf32>
    %34 = vector.multi_reduction <maximumf>, %33, %cst_20 [1] : vector<16x16xf32> to vector<16xf32>
    %35 = vector.shape_cast %34 : vector<16xf32> to vector<16x1xf32>
    %36 = vector.broadcast %35 : vector<16x1xf32> to vector<16x16xf32>
    %37 = arith.subf %33, %36 : vector<16x16xf32>
    %38 = math.exp %37 : vector<16x16xf32>
    %cst_21 = arith.constant dense<0.000000e+00> : vector<16xf32>
    %39 = vector.multi_reduction <add>, %38, %cst_21 [1] : vector<16x16xf32> to vector<16xf32>
    %40 = vector.shape_cast %39 : vector<16xf32> to vector<16x1xf32>
    %41 = tpu.reciprocal %40 {approx = true} : vector<16x1xf32> -> vector<16x1xf32>
    %42 = vector.broadcast %41 : vector<16x1xf32> to vector<16x16xf32>
    %43 = arith.mulf %38, %42 : vector<16x16xf32>
    %44 = arith.truncf %43 : vector<16x16xf32> to vector<16x16xbf16>
    %45 = arith.truncf %26 : vector<16x8xf32> to vector<16x8xbf16>
    %cst_22 = arith.constant dense<0.000000e+00> : vector<16x8xf32>
    %46 = tpu.matmul %44, %45, %cst_22 {dimension_numbers = #tpu.dot_dimension_numbers<[1], [0], [0], [1], [0, 0, 1, 1], [], []>} : vector<16x16xbf16>, vector<16x8xbf16>, vector<16x8xf32> -> vector<16x8xf32>
    %47 = arith.truncf %46 : vector<16x8xf32> to vector<16x8xbf16>
    %c0_23 = arith.constant 0 : index
    %c0_24 = arith.constant 0 : index
    %c0_25 = arith.constant 0 : index
    %c0_26 = arith.constant 0 : index
    %48 = vector.load %arg8[%c0_23, %c0_24, %c0_25, %c0_26] : memref<2x4x8x32xbf16, #tpu.memory_space<vmem>>, vector<1x1x8x32xbf16>
    %49 = vector.shape_cast %48 : vector<1x1x8x32xbf16> to vector<8x32xbf16>
    %cst_27 = arith.constant dense<0.000000e+00> : vector<16x32xf32>
    %50 = tpu.matmul %47, %49, %cst_27 {dimension_numbers = #tpu.dot_dimension_numbers<[1], [0], [0], [1], [0, 0, 1, 1], [], []>} : vector<16x8xbf16>, vector<8x32xbf16>, vector<16x32xf32> -> vector<16x32xf32>
    %51 = vector.extract_strided_slice %22 {offsets = [0, 8], sizes = [16, 8], strides = [1, 1]} : vector<16x32xf32> to vector<16x8xf32>
    %52 = vector.extract_strided_slice %23 {offsets = [0, 8], sizes = [16, 8], strides = [1, 1]} : vector<16x64xf32> to vector<16x8xf32>
    %53 = vector.extract_strided_slice %23 {offsets = [0, 40], sizes = [16, 8], strides = [1, 1]} : vector<16x64xf32> to vector<16x8xf32>
    %54 = vector.extract_strided_slice %0 {offsets = [1, 0, 0], sizes = [1, 16, 16], strides = [1, 1, 1]} : vector<4x16x16xf32> to vector<1x16x16xf32>
    %55 = vector.shape_cast %54 : vector<1x16x16xf32> to vector<16x16xf32>
    %56 = arith.truncf %51 : vector<16x8xf32> to vector<16x8xbf16>
    %57 = tpu.transpose %52, [1, 0] : vector<16x8xf32> -> vector<8x16xf32>
    %58 = arith.truncf %57 : vector<8x16xf32> to vector<8x16xbf16>
    %cst_28 = arith.constant dense<0.000000e+00> : vector<16x16xf32>
    %59 = tpu.matmul %56, %58, %cst_28 {dimension_numbers = #tpu.dot_dimension_numbers<[1], [0], [0], [1], [0, 0, 1, 1], [], []>} : vector<16x8xbf16>, vector<8x16xbf16>, vector<16x16xf32> -> vector<16x16xf32>
    %60 = arith.addf %59, %55 : vector<16x16xf32>
    %cst_29 = arith.constant dense<0xFF800000> : vector<16xf32>
    %61 = vector.multi_reduction <maximumf>, %60, %cst_29 [1] : vector<16x16xf32> to vector<16xf32>
    %62 = vector.shape_cast %61 : vector<16xf32> to vector<16x1xf32>
    %63 = vector.broadcast %62 : vector<16x1xf32> to vector<16x16xf32>
    %64 = arith.subf %60, %63 : vector<16x16xf32>
    %65 = math.exp %64 : vector<16x16xf32>
    %cst_30 = arith.constant dense<0.000000e+00> : vector<16xf32>
    %66 = vector.multi_reduction <add>, %65, %cst_30 [1] : vector<16x16xf32> to vector<16xf32>
    %67 = vector.shape_cast %66 : vector<16xf32> to vector<16x1xf32>
    %68 = tpu.reciprocal %67 {approx = true} : vector<16x1xf32> -> vector<16x1xf32>
    %69 = vector.broadcast %68 : vector<16x1xf32> to vector<16x16xf32>
    %70 = arith.mulf %65, %69 : vector<16x16xf32>
    %71 = arith.truncf %70 : vector<16x16xf32> to vector<16x16xbf16>
    %72 = arith.truncf %53 : vector<16x8xf32> to vector<16x8xbf16>
    %cst_31 = arith.constant dense<0.000000e+00> : vector<16x8xf32>
    %73 = tpu.matmul %71, %72, %cst_31 {dimension_numbers = #tpu.dot_dimension_numbers<[1], [0], [0], [1], [0, 0, 1, 1], [], []>} : vector<16x16xbf16>, vector<16x8xbf16>, vector<16x8xf32> -> vector<16x8xf32>
    %74 = arith.truncf %73 : vector<16x8xf32> to vector<16x8xbf16>
    %c0_32 = arith.constant 0 : index
    %c1 = arith.constant 1 : index
    %c0_33 = arith.constant 0 : index
    %c0_34 = arith.constant 0 : index
    %75 = vector.load %arg8[%c0_32, %c1, %c0_33, %c0_34] : memref<2x4x8x32xbf16, #tpu.memory_space<vmem>>, vector<1x1x8x32xbf16>
    %76 = vector.shape_cast %75 : vector<1x1x8x32xbf16> to vector<8x32xbf16>
    %cst_35 = arith.constant dense<0.000000e+00> : vector<16x32xf32>
    %77 = tpu.matmul %74, %76, %cst_35 {dimension_numbers = #tpu.dot_dimension_numbers<[1], [0], [0], [1], [0, 0, 1, 1], [], []>} : vector<16x8xbf16>, vector<8x32xbf16>, vector<16x32xf32> -> vector<16x32xf32>
    %78 = arith.addf %50, %77 : vector<16x32xf32>
    %79 = vector.extract_strided_slice %22 {offsets = [0, 16], sizes = [16, 8], strides = [1, 1]} : vector<16x32xf32> to vector<16x8xf32>
    %80 = vector.extract_strided_slice %23 {offsets = [0, 16], sizes = [16, 8], strides = [1, 1]} : vector<16x64xf32> to vector<16x8xf32>
    %81 = vector.extract_strided_slice %23 {offsets = [0, 48], sizes = [16, 8], strides = [1, 1]} : vector<16x64xf32> to vector<16x8xf32>
    %82 = vector.extract_strided_slice %0 {offsets = [2, 0, 0], sizes = [1, 16, 16], strides = [1, 1, 1]} : vector<4x16x16xf32> to vector<1x16x16xf32>
    %83 = vector.shape_cast %82 : vector<1x16x16xf32> to vector<16x16xf32>
    %84 = arith.truncf %79 : vector<16x8xf32> to vector<16x8xbf16>
    %85 = tpu.transpose %80, [1, 0] : vector<16x8xf32> -> vector<8x16xf32>
    %86 = arith.truncf %85 : vector<8x16xf32> to vector<8x16xbf16>
    %cst_36 = arith.constant dense<0.000000e+00> : vector<16x16xf32>
    %87 = tpu.matmul %84, %86, %cst_36 {dimension_numbers = #tpu.dot_dimension_numbers<[1], [0], [0], [1], [0, 0, 1, 1], [], []>} : vector<16x8xbf16>, vector<8x16xbf16>, vector<16x16xf32> -> vector<16x16xf32>
    %88 = arith.addf %87, %83 : vector<16x16xf32>
    %cst_37 = arith.constant dense<0xFF800000> : vector<16xf32>
    %89 = vector.multi_reduction <maximumf>, %88, %cst_37 [1] : vector<16x16xf32> to vector<16xf32>
    %90 = vector.shape_cast %89 : vector<16xf32> to vector<16x1xf32>
    %91 = vector.broadcast %90 : vector<16x1xf32> to vector<16x16xf32>
    %92 = arith.subf %88, %91 : vector<16x16xf32>
    %93 = math.exp %92 : vector<16x16xf32>
    %cst_38 = arith.constant dense<0.000000e+00> : vector<16xf32>
    %94 = vector.multi_reduction <add>, %93, %cst_38 [1] : vector<16x16xf32> to vector<16xf32>
    %95 = vector.shape_cast %94 : vector<16xf32> to vector<16x1xf32>
    %96 = tpu.reciprocal %95 {approx = true} : vector<16x1xf32> -> vector<16x1xf32>
    %97 = vector.broadcast %96 : vector<16x1xf32> to vector<16x16xf32>
    %98 = arith.mulf %93, %97 : vector<16x16xf32>
    %99 = arith.truncf %98 : vector<16x16xf32> to vector<16x16xbf16>
    %100 = arith.truncf %81 : vector<16x8xf32> to vector<16x8xbf16>
    %cst_39 = arith.constant dense<0.000000e+00> : vector<16x8xf32>
    %101 = tpu.matmul %99, %100, %cst_39 {dimension_numbers = #tpu.dot_dimension_numbers<[1], [0], [0], [1], [0, 0, 1, 1], [], []>} : vector<16x16xbf16>, vector<16x8xbf16>, vector<16x8xf32> -> vector<16x8xf32>
    %102 = arith.truncf %101 : vector<16x8xf32> to vector<16x8xbf16>
    %c0_40 = arith.constant 0 : index
    %c2 = arith.constant 2 : index
    %c0_41 = arith.constant 0 : index
    %c0_42 = arith.constant 0 : index
    %103 = vector.load %arg8[%c0_40, %c2, %c0_41, %c0_42] : memref<2x4x8x32xbf16, #tpu.memory_space<vmem>>, vector<1x1x8x32xbf16>
    %104 = vector.shape_cast %103 : vector<1x1x8x32xbf16> to vector<8x32xbf16>
    %cst_43 = arith.constant dense<0.000000e+00> : vector<16x32xf32>
    %105 = tpu.matmul %102, %104, %cst_43 {dimension_numbers = #tpu.dot_dimension_numbers<[1], [0], [0], [1], [0, 0, 1, 1], [], []>} : vector<16x8xbf16>, vector<8x32xbf16>, vector<16x32xf32> -> vector<16x32xf32>
    %106 = arith.addf %78, %105 : vector<16x32xf32>
    %107 = vector.extract_strided_slice %22 {offsets = [0, 24], sizes = [16, 8], strides = [1, 1]} : vector<16x32xf32> to vector<16x8xf32>
    %108 = vector.extract_strided_slice %23 {offsets = [0, 24], sizes = [16, 8], strides = [1, 1]} : vector<16x64xf32> to vector<16x8xf32>
    %109 = vector.extract_strided_slice %23 {offsets = [0, 56], sizes = [16, 8], strides = [1, 1]} : vector<16x64xf32> to vector<16x8xf32>
    %110 = vector.extract_strided_slice %0 {offsets = [3, 0, 0], sizes = [1, 16, 16], strides = [1, 1, 1]} : vector<4x16x16xf32> to vector<1x16x16xf32>
    %111 = vector.shape_cast %110 : vector<1x16x16xf32> to vector<16x16xf32>
    %112 = arith.truncf %107 : vector<16x8xf32> to vector<16x8xbf16>
    %113 = tpu.transpose %108, [1, 0] : vector<16x8xf32> -> vector<8x16xf32>
    %114 = arith.truncf %113 : vector<8x16xf32> to vector<8x16xbf16>
    %cst_44 = arith.constant dense<0.000000e+00> : vector<16x16xf32>
    %115 = tpu.matmul %112, %114, %cst_44 {dimension_numbers = #tpu.dot_dimension_numbers<[1], [0], [0], [1], [0, 0, 1, 1], [], []>} : vector<16x8xbf16>, vector<8x16xbf16>, vector<16x16xf32> -> vector<16x16xf32>
    %116 = arith.addf %115, %111 : vector<16x16xf32>
    %cst_45 = arith.constant dense<0xFF800000> : vector<16xf32>
    %117 = vector.multi_reduction <maximumf>, %116, %cst_45 [1] : vector<16x16xf32> to vector<16xf32>
    %118 = vector.shape_cast %117 : vector<16xf32> to vector<16x1xf32>
    %119 = vector.broadcast %118 : vector<16x1xf32> to vector<16x16xf32>
    %120 = arith.subf %116, %119 : vector<16x16xf32>
    %121 = math.exp %120 : vector<16x16xf32>
    %cst_46 = arith.constant dense<0.000000e+00> : vector<16xf32>
    %122 = vector.multi_reduction <add>, %121, %cst_46 [1] : vector<16x16xf32> to vector<16xf32>
    %123 = vector.shape_cast %122 : vector<16xf32> to vector<16x1xf32>
    %124 = tpu.reciprocal %123 {approx = true} : vector<16x1xf32> -> vector<16x1xf32>
    %125 = vector.broadcast %124 : vector<16x1xf32> to vector<16x16xf32>
    %126 = arith.mulf %121, %125 : vector<16x16xf32>
    %127 = arith.truncf %126 : vector<16x16xf32> to vector<16x16xbf16>
    %128 = arith.truncf %109 : vector<16x8xf32> to vector<16x8xbf16>
    %cst_47 = arith.constant dense<0.000000e+00> : vector<16x8xf32>
    %129 = tpu.matmul %127, %128, %cst_47 {dimension_numbers = #tpu.dot_dimension_numbers<[1], [0], [0], [1], [0, 0, 1, 1], [], []>} : vector<16x16xbf16>, vector<16x8xbf16>, vector<16x8xf32> -> vector<16x8xf32>
    %130 = arith.truncf %129 : vector<16x8xf32> to vector<16x8xbf16>
    %c0_48 = arith.constant 0 : index
    %c3 = arith.constant 3 : index
    %c0_49 = arith.constant 0 : index
    %c0_50 = arith.constant 0 : index
    %131 = vector.load %arg8[%c0_48, %c3, %c0_49, %c0_50] : memref<2x4x8x32xbf16, #tpu.memory_space<vmem>>, vector<1x1x8x32xbf16>
    %132 = vector.shape_cast %131 : vector<1x1x8x32xbf16> to vector<8x32xbf16>
    %cst_51 = arith.constant dense<0.000000e+00> : vector<16x32xf32>
    %133 = tpu.matmul %130, %132, %cst_51 {dimension_numbers = #tpu.dot_dimension_numbers<[1], [0], [0], [1], [0, 0, 1, 1], [], []>} : vector<16x8xbf16>, vector<8x32xbf16>, vector<16x32xf32> -> vector<16x32xf32>
    %134 = arith.addf %106, %133 : vector<16x32xf32>
    %135 = arith.addf %3, %134 : vector<16x32xf32>
    %c0_52 = arith.constant 0 : index
    %c0_53 = arith.constant 0 : index
    %c0_54 = arith.constant 0 : index
    %136 = vector.load %arg9[%c0_52, %c0_53, %c0_54] : memref<2x1x32xf32, #tpu.memory_space<vmem>>, vector<1x1x32xf32>
    %137 = vector.shape_cast %136 : vector<1x1x32xf32> to vector<1x32xf32>
    %138 = arith.mulf %135, %135 : vector<16x32xf32>
    %cst_55 = arith.constant dense<0.000000e+00> : vector<16xf32>
    %139 = vector.multi_reduction <add>, %138, %cst_55 [1] : vector<16x32xf32> to vector<16xf32>
    %140 = vector.shape_cast %139 : vector<16xf32> to vector<16x1xf32>
    %cst_56 = arith.constant 3.200000e+01 : f32
    %141 = vector.broadcast %cst_56 : f32 to vector<16x1xf32>
    %142 = arith.divf %140, %141 : vector<16x1xf32>
    %cst_57 = arith.constant 9.99999997E-7 : f32
    %143 = vector.broadcast %cst_57 : f32 to vector<16x1xf32>
    %144 = arith.addf %142, %143 : vector<16x1xf32>
    %145 = math.rsqrt %144 : vector<16x1xf32>
    %146 = vector.broadcast %145 : vector<16x1xf32> to vector<16x32xf32>
    %147 = arith.mulf %135, %146 : vector<16x32xf32>
    %148 = vector.broadcast %137 : vector<1x32xf32> to vector<16x32xf32>
    %149 = arith.mulf %147, %148 : vector<16x32xf32>
    %150 = arith.truncf %149 : vector<16x32xf32> to vector<16x32xbf16>
    %c0_58 = arith.constant 0 : index
    %c0_59 = arith.constant 0 : index
    %c0_60 = arith.constant 0 : index
    %151 = vector.load %arg10[%c0_58, %c0_59, %c0_60] : memref<2x32x64xbf16, #tpu.memory_space<vmem>>, vector<1x32x64xbf16>
    %152 = vector.shape_cast %151 : vector<1x32x64xbf16> to vector<32x64xbf16>
    %cst_61 = arith.constant dense<0.000000e+00> : vector<16x64xf32>
    %153 = tpu.matmul %150, %152, %cst_61 {dimension_numbers = #tpu.dot_dimension_numbers<[1], [0], [0], [1], [0, 0, 1, 1], [], []>} : vector<16x32xbf16>, vector<32x64xbf16>, vector<16x64xf32> -> vector<16x64xf32>
    %cst_62 = arith.constant 0.000000e+00 : f32
    %154 = vector.broadcast %cst_62 : f32 to vector<16x64xf32>
    %155 = arith.maximumf %153, %154 : vector<16x64xf32>
    %156 = arith.truncf %155 : vector<16x64xf32> to vector<16x64xbf16>
    %c0_63 = arith.constant 0 : index
    %c0_64 = arith.constant 0 : index
    %c0_65 = arith.constant 0 : index
    %157 = vector.load %arg11[%c0_63, %c0_64, %c0_65] : memref<2x64x32xbf16, #tpu.memory_space<vmem>>, vector<1x64x32xbf16>
    %158 = vector.shape_cast %157 : vector<1x64x32xbf16> to vector<64x32xbf16>
    %cst_66 = arith.constant dense<0.000000e+00> : vector<16x32xf32>
    %159 = tpu.matmul %156, %158, %cst_66 {dimension_numbers = #tpu.dot_dimension_numbers<[1], [0], [0], [1], [0, 0, 1, 1], [], []>} : vector<16x64xbf16>, vector<64x32xbf16>, vector<16x32xf32> -> vector<16x32xf32>
    %160 = arith.addf %135, %159 : vector<16x32xf32>
    %c1_67 = arith.constant 1 : index
    %c0_68 = arith.constant 0 : index
    %c0_69 = arith.constant 0 : index
    %161 = vector.load %arg6[%c1_67, %c0_68, %c0_69] : memref<2x1x32xf32, #tpu.memory_space<vmem>>, vector<1x1x32xf32>
    %162 = vector.shape_cast %161 : vector<1x1x32xf32> to vector<1x32xf32>
    %163 = arith.mulf %160, %160 : vector<16x32xf32>
    %cst_70 = arith.constant dense<0.000000e+00> : vector<16xf32>
    %164 = vector.multi_reduction <add>, %163, %cst_70 [1] : vector<16x32xf32> to vector<16xf32>
    %165 = vector.shape_cast %164 : vector<16xf32> to vector<16x1xf32>
    %cst_71 = arith.constant 3.200000e+01 : f32
    %166 = vector.broadcast %cst_71 : f32 to vector<16x1xf32>
    %167 = arith.divf %165, %166 : vector<16x1xf32>
    %cst_72 = arith.constant 9.99999997E-7 : f32
    %168 = vector.broadcast %cst_72 : f32 to vector<16x1xf32>
    %169 = arith.addf %167, %168 : vector<16x1xf32>
    %170 = math.rsqrt %169 : vector<16x1xf32>
    %171 = vector.broadcast %170 : vector<16x1xf32> to vector<16x32xf32>
    %172 = arith.mulf %160, %171 : vector<16x32xf32>
    %173 = vector.broadcast %162 : vector<1x32xf32> to vector<16x32xf32>
    %174 = arith.mulf %172, %173 : vector<16x32xf32>
    %175 = arith.truncf %174 : vector<16x32xf32> to vector<16x32xbf16>
    %c1_73 = arith.constant 1 : index
    %c0_74 = arith.constant 0 : index
    %c0_75 = arith.constant 0 : index
    %176 = vector.load %arg7[%c1_73, %c0_74, %c0_75] : memref<2x32x96xbf16, #tpu.memory_space<vmem>>, vector<1x32x96xbf16>
    %177 = vector.shape_cast %176 : vector<1x32x96xbf16> to vector<32x96xbf16>
    %cst_76 = arith.constant dense<0.000000e+00> : vector<16x96xf32>
    %178 = tpu.matmul %175, %177, %cst_76 {dimension_numbers = #tpu.dot_dimension_numbers<[1], [0], [0], [1], [0, 0, 1, 1], [], []>} : vector<16x32xbf16>, vector<32x96xbf16>, vector<16x96xf32> -> vector<16x96xf32>
    %179 = vector.extract_strided_slice %178 {offsets = [0, 0], sizes = [16, 32], strides = [1, 1]} : vector<16x96xf32> to vector<16x32xf32>
    %180 = vector.extract_strided_slice %178 {offsets = [0, 32], sizes = [16, 64], strides = [1, 1]} : vector<16x96xf32> to vector<16x64xf32>
    %181 = vector.extract_strided_slice %179 {offsets = [0, 0], sizes = [16, 8], strides = [1, 1]} : vector<16x32xf32> to vector<16x8xf32>
    %182 = vector.extract_strided_slice %180 {offsets = [0, 0], sizes = [16, 8], strides = [1, 1]} : vector<16x64xf32> to vector<16x8xf32>
    %183 = vector.extract_strided_slice %180 {offsets = [0, 32], sizes = [16, 8], strides = [1, 1]} : vector<16x64xf32> to vector<16x8xf32>
    %184 = vector.extract_strided_slice %0 {offsets = [0, 0, 0], sizes = [1, 16, 16], strides = [1, 1, 1]} : vector<4x16x16xf32> to vector<1x16x16xf32>
    %185 = vector.shape_cast %184 : vector<1x16x16xf32> to vector<16x16xf32>
    %186 = arith.truncf %181 : vector<16x8xf32> to vector<16x8xbf16>
    %187 = tpu.transpose %182, [1, 0] : vector<16x8xf32> -> vector<8x16xf32>
    %188 = arith.truncf %187 : vector<8x16xf32> to vector<8x16xbf16>
    %cst_77 = arith.constant dense<0.000000e+00> : vector<16x16xf32>
    %189 = tpu.matmul %186, %188, %cst_77 {dimension_numbers = #tpu.dot_dimension_numbers<[1], [0], [0], [1], [0, 0, 1, 1], [], []>} : vector<16x8xbf16>, vector<8x16xbf16>, vector<16x16xf32> -> vector<16x16xf32>
    %190 = arith.addf %189, %185 : vector<16x16xf32>
    %cst_78 = arith.constant dense<0xFF800000> : vector<16xf32>
    %191 = vector.multi_reduction <maximumf>, %190, %cst_78 [1] : vector<16x16xf32> to vector<16xf32>
    %192 = vector.shape_cast %191 : vector<16xf32> to vector<16x1xf32>
    %193 = vector.broadcast %192 : vector<16x1xf32> to vector<16x16xf32>
    %194 = arith.subf %190, %193 : vector<16x16xf32>
    %195 = math.exp %194 : vector<16x16xf32>
    %cst_79 = arith.constant dense<0.000000e+00> : vector<16xf32>
    %196 = vector.multi_reduction <add>, %195, %cst_79 [1] : vector<16x16xf32> to vector<16xf32>
    %197 = vector.shape_cast %196 : vector<16xf32> to vector<16x1xf32>
    %198 = tpu.reciprocal %197 {approx = true} : vector<16x1xf32> -> vector<16x1xf32>
    %199 = vector.broadcast %198 : vector<16x1xf32> to vector<16x16xf32>
    %200 = arith.mulf %195, %199 : vector<16x16xf32>
    %201 = arith.truncf %200 : vector<16x16xf32> to vector<16x16xbf16>
    %202 = arith.truncf %183 : vector<16x8xf32> to vector<16x8xbf16>
    %cst_80 = arith.constant dense<0.000000e+00> : vector<16x8xf32>
    %203 = tpu.matmul %201, %202, %cst_80 {dimension_numbers = #tpu.dot_dimension_numbers<[1], [0], [0], [1], [0, 0, 1, 1], [], []>} : vector<16x16xbf16>, vector<16x8xbf16>, vector<16x8xf32> -> vector<16x8xf32>
    %204 = arith.truncf %203 : vector<16x8xf32> to vector<16x8xbf16>
    %c1_81 = arith.constant 1 : index
    %c0_82 = arith.constant 0 : index
    %c0_83 = arith.constant 0 : index
    %c0_84 = arith.constant 0 : index
    %205 = vector.load %arg8[%c1_81, %c0_82, %c0_83, %c0_84] : memref<2x4x8x32xbf16, #tpu.memory_space<vmem>>, vector<1x1x8x32xbf16>
    %206 = vector.shape_cast %205 : vector<1x1x8x32xbf16> to vector<8x32xbf16>
    %cst_85 = arith.constant dense<0.000000e+00> : vector<16x32xf32>
    %207 = tpu.matmul %204, %206, %cst_85 {dimension_numbers = #tpu.dot_dimension_numbers<[1], [0], [0], [1], [0, 0, 1, 1], [], []>} : vector<16x8xbf16>, vector<8x32xbf16>, vector<16x32xf32> -> vector<16x32xf32>
    %208 = vector.extract_strided_slice %179 {offsets = [0, 8], sizes = [16, 8], strides = [1, 1]} : vector<16x32xf32> to vector<16x8xf32>
    %209 = vector.extract_strided_slice %180 {offsets = [0, 8], sizes = [16, 8], strides = [1, 1]} : vector<16x64xf32> to vector<16x8xf32>
    %210 = vector.extract_strided_slice %180 {offsets = [0, 40], sizes = [16, 8], strides = [1, 1]} : vector<16x64xf32> to vector<16x8xf32>
    %211 = vector.extract_strided_slice %0 {offsets = [1, 0, 0], sizes = [1, 16, 16], strides = [1, 1, 1]} : vector<4x16x16xf32> to vector<1x16x16xf32>
    %212 = vector.shape_cast %211 : vector<1x16x16xf32> to vector<16x16xf32>
    %213 = arith.truncf %208 : vector<16x8xf32> to vector<16x8xbf16>
    %214 = tpu.transpose %209, [1, 0] : vector<16x8xf32> -> vector<8x16xf32>
    %215 = arith.truncf %214 : vector<8x16xf32> to vector<8x16xbf16>
    %cst_86 = arith.constant dense<0.000000e+00> : vector<16x16xf32>
    %216 = tpu.matmul %213, %215, %cst_86 {dimension_numbers = #tpu.dot_dimension_numbers<[1], [0], [0], [1], [0, 0, 1, 1], [], []>} : vector<16x8xbf16>, vector<8x16xbf16>, vector<16x16xf32> -> vector<16x16xf32>
    %217 = arith.addf %216, %212 : vector<16x16xf32>
    %cst_87 = arith.constant dense<0xFF800000> : vector<16xf32>
    %218 = vector.multi_reduction <maximumf>, %217, %cst_87 [1] : vector<16x16xf32> to vector<16xf32>
    %219 = vector.shape_cast %218 : vector<16xf32> to vector<16x1xf32>
    %220 = vector.broadcast %219 : vector<16x1xf32> to vector<16x16xf32>
    %221 = arith.subf %217, %220 : vector<16x16xf32>
    %222 = math.exp %221 : vector<16x16xf32>
    %cst_88 = arith.constant dense<0.000000e+00> : vector<16xf32>
    %223 = vector.multi_reduction <add>, %222, %cst_88 [1] : vector<16x16xf32> to vector<16xf32>
    %224 = vector.shape_cast %223 : vector<16xf32> to vector<16x1xf32>
    %225 = tpu.reciprocal %224 {approx = true} : vector<16x1xf32> -> vector<16x1xf32>
    %226 = vector.broadcast %225 : vector<16x1xf32> to vector<16x16xf32>
    %227 = arith.mulf %222, %226 : vector<16x16xf32>
    %228 = arith.truncf %227 : vector<16x16xf32> to vector<16x16xbf16>
    %229 = arith.truncf %210 : vector<16x8xf32> to vector<16x8xbf16>
    %cst_89 = arith.constant dense<0.000000e+00> : vector<16x8xf32>
    %230 = tpu.matmul %228, %229, %cst_89 {dimension_numbers = #tpu.dot_dimension_numbers<[1], [0], [0], [1], [0, 0, 1, 1], [], []>} : vector<16x16xbf16>, vector<16x8xbf16>, vector<16x8xf32> -> vector<16x8xf32>
    %231 = arith.truncf %230 : vector<16x8xf32> to vector<16x8xbf16>
    %c1_90 = arith.constant 1 : index
    %c1_91 = arith.constant 1 : index
    %c0_92 = arith.constant 0 : index
    %c0_93 = arith.constant 0 : index
    %232 = vector.load %arg8[%c1_90, %c1_91, %c0_92, %c0_93] : memref<2x4x8x32xbf16, #tpu.memory_space<vmem>>, vector<1x1x8x32xbf16>
    %233 = vector.shape_cast %232 : vector<1x1x8x32xbf16> to vector<8x32xbf16>
    %cst_94 = arith.constant dense<0.000000e+00> : vector<16x32xf32>
    %234 = tpu.matmul %231, %233, %cst_94 {dimension_numbers = #tpu.dot_dimension_numbers<[1], [0], [0], [1], [0, 0, 1, 1], [], []>} : vector<16x8xbf16>, vector<8x32xbf16>, vector<16x32xf32> -> vector<16x32xf32>
    %235 = arith.addf %207, %234 : vector<16x32xf32>
    %236 = vector.extract_strided_slice %179 {offsets = [0, 16], sizes = [16, 8], strides = [1, 1]} : vector<16x32xf32> to vector<16x8xf32>
    %237 = vector.extract_strided_slice %180 {offsets = [0, 16], sizes = [16, 8], strides = [1, 1]} : vector<16x64xf32> to vector<16x8xf32>
    %238 = vector.extract_strided_slice %180 {offsets = [0, 48], sizes = [16, 8], strides = [1, 1]} : vector<16x64xf32> to vector<16x8xf32>
    %239 = vector.extract_strided_slice %0 {offsets = [2, 0, 0], sizes = [1, 16, 16], strides = [1, 1, 1]} : vector<4x16x16xf32> to vector<1x16x16xf32>
    %240 = vector.shape_cast %239 : vector<1x16x16xf32> to vector<16x16xf32>
    %241 = arith.truncf %236 : vector<16x8xf32> to vector<16x8xbf16>
    %242 = tpu.transpose %237, [1, 0] : vector<16x8xf32> -> vector<8x16xf32>
    %243 = arith.truncf %242 : vector<8x16xf32> to vector<8x16xbf16>
    %cst_95 = arith.constant dense<0.000000e+00> : vector<16x16xf32>
    %244 = tpu.matmul %241, %243, %cst_95 {dimension_numbers = #tpu.dot_dimension_numbers<[1], [0], [0], [1], [0, 0, 1, 1], [], []>} : vector<16x8xbf16>, vector<8x16xbf16>, vector<16x16xf32> -> vector<16x16xf32>
    %245 = arith.addf %244, %240 : vector<16x16xf32>
    %cst_96 = arith.constant dense<0xFF800000> : vector<16xf32>
    %246 = vector.multi_reduction <maximumf>, %245, %cst_96 [1] : vector<16x16xf32> to vector<16xf32>
    %247 = vector.shape_cast %246 : vector<16xf32> to vector<16x1xf32>
    %248 = vector.broadcast %247 : vector<16x1xf32> to vector<16x16xf32>
    %249 = arith.subf %245, %248 : vector<16x16xf32>
    %250 = math.exp %249 : vector<16x16xf32>
    %cst_97 = arith.constant dense<0.000000e+00> : vector<16xf32>
    %251 = vector.multi_reduction <add>, %250, %cst_97 [1] : vector<16x16xf32> to vector<16xf32>
    %252 = vector.shape_cast %251 : vector<16xf32> to vector<16x1xf32>
    %253 = tpu.reciprocal %252 {approx = true} : vector<16x1xf32> -> vector<16x1xf32>
    %254 = vector.broadcast %253 : vector<16x1xf32> to vector<16x16xf32>
    %255 = arith.mulf %250, %254 : vector<16x16xf32>
    %256 = arith.truncf %255 : vector<16x16xf32> to vector<16x16xbf16>
    %257 = arith.truncf %238 : vector<16x8xf32> to vector<16x8xbf16>
    %cst_98 = arith.constant dense<0.000000e+00> : vector<16x8xf32>
    %258 = tpu.matmul %256, %257, %cst_98 {dimension_numbers = #tpu.dot_dimension_numbers<[1], [0], [0], [1], [0, 0, 1, 1], [], []>} : vector<16x16xbf16>, vector<16x8xbf16>, vector<16x8xf32> -> vector<16x8xf32>
    %259 = arith.truncf %258 : vector<16x8xf32> to vector<16x8xbf16>
    %c1_99 = arith.constant 1 : index
    %c2_100 = arith.constant 2 : index
    %c0_101 = arith.constant 0 : index
    %c0_102 = arith.constant 0 : index
    %260 = vector.load %arg8[%c1_99, %c2_100, %c0_101, %c0_102] : memref<2x4x8x32xbf16, #tpu.memory_space<vmem>>, vector<1x1x8x32xbf16>
    %261 = vector.shape_cast %260 : vector<1x1x8x32xbf16> to vector<8x32xbf16>
    %cst_103 = arith.constant dense<0.000000e+00> : vector<16x32xf32>
    %262 = tpu.matmul %259, %261, %cst_103 {dimension_numbers = #tpu.dot_dimension_numbers<[1], [0], [0], [1], [0, 0, 1, 1], [], []>} : vector<16x8xbf16>, vector<8x32xbf16>, vector<16x32xf32> -> vector<16x32xf32>
    %263 = arith.addf %235, %262 : vector<16x32xf32>
    %264 = vector.extract_strided_slice %179 {offsets = [0, 24], sizes = [16, 8], strides = [1, 1]} : vector<16x32xf32> to vector<16x8xf32>
    %265 = vector.extract_strided_slice %180 {offsets = [0, 24], sizes = [16, 8], strides = [1, 1]} : vector<16x64xf32> to vector<16x8xf32>
    %266 = vector.extract_strided_slice %180 {offsets = [0, 56], sizes = [16, 8], strides = [1, 1]} : vector<16x64xf32> to vector<16x8xf32>
    %267 = vector.extract_strided_slice %0 {offsets = [3, 0, 0], sizes = [1, 16, 16], strides = [1, 1, 1]} : vector<4x16x16xf32> to vector<1x16x16xf32>
    %268 = vector.shape_cast %267 : vector<1x16x16xf32> to vector<16x16xf32>
    %269 = arith.truncf %264 : vector<16x8xf32> to vector<16x8xbf16>
    %270 = tpu.transpose %265, [1, 0] : vector<16x8xf32> -> vector<8x16xf32>
    %271 = arith.truncf %270 : vector<8x16xf32> to vector<8x16xbf16>
    %cst_104 = arith.constant dense<0.000000e+00> : vector<16x16xf32>
    %272 = tpu.matmul %269, %271, %cst_104 {dimension_numbers = #tpu.dot_dimension_numbers<[1], [0], [0], [1], [0, 0, 1, 1], [], []>} : vector<16x8xbf16>, vector<8x16xbf16>, vector<16x16xf32> -> vector<16x16xf32>
    %273 = arith.addf %272, %268 : vector<16x16xf32>
    %cst_105 = arith.constant dense<0xFF800000> : vector<16xf32>
    %274 = vector.multi_reduction <maximumf>, %273, %cst_105 [1] : vector<16x16xf32> to vector<16xf32>
    %275 = vector.shape_cast %274 : vector<16xf32> to vector<16x1xf32>
    %276 = vector.broadcast %275 : vector<16x1xf32> to vector<16x16xf32>
    %277 = arith.subf %273, %276 : vector<16x16xf32>
    %278 = math.exp %277 : vector<16x16xf32>
    %cst_106 = arith.constant dense<0.000000e+00> : vector<16xf32>
    %279 = vector.multi_reduction <add>, %278, %cst_106 [1] : vector<16x16xf32> to vector<16xf32>
    %280 = vector.shape_cast %279 : vector<16xf32> to vector<16x1xf32>
    %281 = tpu.reciprocal %280 {approx = true} : vector<16x1xf32> -> vector<16x1xf32>
    %282 = vector.broadcast %281 : vector<16x1xf32> to vector<16x16xf32>
    %283 = arith.mulf %278, %282 : vector<16x16xf32>
    %284 = arith.truncf %283 : vector<16x16xf32> to vector<16x16xbf16>
    %285 = arith.truncf %266 : vector<16x8xf32> to vector<16x8xbf16>
    %cst_107 = arith.constant dense<0.000000e+00> : vector<16x8xf32>
    %286 = tpu.matmul %284, %285, %cst_107 {dimension_numbers = #tpu.dot_dimension_numbers<[1], [0], [0], [1], [0, 0, 1, 1], [], []>} : vector<16x16xbf16>, vector<16x8xbf16>, vector<16x8xf32> -> vector<16x8xf32>
    %287 = arith.truncf %286 : vector<16x8xf32> to vector<16x8xbf16>
    %c1_108 = arith.constant 1 : index
    %c3_109 = arith.constant 3 : index
    %c0_110 = arith.constant 0 : index
    %c0_111 = arith.constant 0 : index
    %288 = vector.load %arg8[%c1_108, %c3_109, %c0_110, %c0_111] : memref<2x4x8x32xbf16, #tpu.memory_space<vmem>>, vector<1x1x8x32xbf16>
    %289 = vector.shape_cast %288 : vector<1x1x8x32xbf16> to vector<8x32xbf16>
    %cst_112 = arith.constant dense<0.000000e+00> : vector<16x32xf32>
    %290 = tpu.matmul %287, %289, %cst_112 {dimension_numbers = #tpu.dot_dimension_numbers<[1], [0], [0], [1], [0, 0, 1, 1], [], []>} : vector<16x8xbf16>, vector<8x32xbf16>, vector<16x32xf32> -> vector<16x32xf32>
    %291 = arith.addf %263, %290 : vector<16x32xf32>
    %292 = arith.addf %160, %291 : vector<16x32xf32>
    %c1_113 = arith.constant 1 : index
    %c0_114 = arith.constant 0 : index
    %c0_115 = arith.constant 0 : index
    %293 = vector.load %arg9[%c1_113, %c0_114, %c0_115] : memref<2x1x32xf32, #tpu.memory_space<vmem>>, vector<1x1x32xf32>
    %294 = vector.shape_cast %293 : vector<1x1x32xf32> to vector<1x32xf32>
    %295 = arith.mulf %292, %292 : vector<16x32xf32>
    %cst_116 = arith.constant dense<0.000000e+00> : vector<16xf32>
    %296 = vector.multi_reduction <add>, %295, %cst_116 [1] : vector<16x32xf32> to vector<16xf32>
    %297 = vector.shape_cast %296 : vector<16xf32> to vector<16x1xf32>
    %cst_117 = arith.constant 3.200000e+01 : f32
    %298 = vector.broadcast %cst_117 : f32 to vector<16x1xf32>
    %299 = arith.divf %297, %298 : vector<16x1xf32>
    %cst_118 = arith.constant 9.99999997E-7 : f32
    %300 = vector.broadcast %cst_118 : f32 to vector<16x1xf32>
    %301 = arith.addf %299, %300 : vector<16x1xf32>
    %302 = math.rsqrt %301 : vector<16x1xf32>
    %303 = vector.broadcast %302 : vector<16x1xf32> to vector<16x32xf32>
    %304 = arith.mulf %292, %303 : vector<16x32xf32>
    %305 = vector.broadcast %294 : vector<1x32xf32> to vector<16x32xf32>
    %306 = arith.mulf %304, %305 : vector<16x32xf32>
    %307 = arith.truncf %306 : vector<16x32xf32> to vector<16x32xbf16>
    %c1_119 = arith.constant 1 : index
    %c0_120 = arith.constant 0 : index
    %c0_121 = arith.constant 0 : index
    %308 = vector.load %arg10[%c1_119, %c0_120, %c0_121] : memref<2x32x64xbf16, #tpu.memory_space<vmem>>, vector<1x32x64xbf16>
    %309 = vector.shape_cast %308 : vector<1x32x64xbf16> to vector<32x64xbf16>
    %cst_122 = arith.constant dense<0.000000e+00> : vector<16x64xf32>
    %310 = tpu.matmul %307, %309, %cst_122 {dimension_numbers = #tpu.dot_dimension_numbers<[1], [0], [0], [1], [0, 0, 1, 1], [], []>} : vector<16x32xbf16>, vector<32x64xbf16>, vector<16x64xf32> -> vector<16x64xf32>
    %cst_123 = arith.constant 0.000000e+00 : f32
    %311 = vector.broadcast %cst_123 : f32 to vector<16x64xf32>
    %312 = arith.maximumf %310, %311 : vector<16x64xf32>
    %313 = arith.truncf %312 : vector<16x64xf32> to vector<16x64xbf16>
    %c1_124 = arith.constant 1 : index
    %c0_125 = arith.constant 0 : index
    %c0_126 = arith.constant 0 : index
    %314 = vector.load %arg11[%c1_124, %c0_125, %c0_126] : memref<2x64x32xbf16, #tpu.memory_space<vmem>>, vector<1x64x32xbf16>
    %315 = vector.shape_cast %314 : vector<1x64x32xbf16> to vector<64x32xbf16>
    %cst_127 = arith.constant dense<0.000000e+00> : vector<16x32xf32>
    %316 = tpu.matmul %313, %315, %cst_127 {dimension_numbers = #tpu.dot_dimension_numbers<[1], [0], [0], [1], [0, 0, 1, 1], [], []>} : vector<16x64xbf16>, vector<64x32xbf16>, vector<16x32xf32> -> vector<16x32xf32>
    %317 = arith.addf %292, %316 : vector<16x32xf32>
    %c0_128 = arith.constant 0 : index
    %c0_129 = arith.constant 0 : index
    %318 = vector.load %arg12[%c0_128, %c0_129] : memref<1x32xf32, #tpu.memory_space<vmem>>, vector<1x32xf32>
    %319 = arith.mulf %317, %317 : vector<16x32xf32>
    %cst_130 = arith.constant dense<0.000000e+00> : vector<16xf32>
    %320 = vector.multi_reduction <add>, %319, %cst_130 [1] : vector<16x32xf32> to vector<16xf32>
    %321 = vector.shape_cast %320 : vector<16xf32> to vector<16x1xf32>
    %cst_131 = arith.constant 3.200000e+01 : f32
    %322 = vector.broadcast %cst_131 : f32 to vector<16x1xf32>
    %323 = arith.divf %321, %322 : vector<16x1xf32>
    %cst_132 = arith.constant 9.99999997E-7 : f32
    %324 = vector.broadcast %cst_132 : f32 to vector<16x1xf32>
    %325 = arith.addf %323, %324 : vector<16x1xf32>
    %326 = math.rsqrt %325 : vector<16x1xf32>
    %327 = vector.broadcast %326 : vector<16x1xf32> to vector<16x32xf32>
    %328 = arith.mulf %317, %327 : vector<16x32xf32>
    %329 = vector.broadcast %318 : vector<1x32xf32> to vector<16x32xf32>
    %330 = arith.mulf %328, %329 : vector<16x32xf32>
    %331 = arith.truncf %330 : vector<16x32xf32> to vector<16x32xbf16>
    %c0_133 = arith.constant 0 : index
    %c0_134 = arith.constant 0 : index
    %332 = vector.load %arg1[%c0_133, %c0_134] : memref<16x32xf32, #tpu.memory_space<vmem>>, vector<16x32xf32>
    %c0_135 = arith.constant 0 : index
    %c0_136 = arith.constant 0 : index
    %c0_137 = arith.constant 0 : index
    %333 = vector.load %arg13[%c0_135, %c0_136, %c0_137] : memref<2x1x32xf32, #tpu.memory_space<vmem>>, vector<1x1x32xf32>
    %334 = vector.shape_cast %333 : vector<1x1x32xf32> to vector<1x32xf32>
    %335 = arith.mulf %332, %332 : vector<16x32xf32>
    %cst_138 = arith.constant dense<0.000000e+00> : vector<16xf32>
    %336 = vector.multi_reduction <add>, %335, %cst_138 [1] : vector<16x32xf32> to vector<16xf32>
    %337 = vector.shape_cast %336 : vector<16xf32> to vector<16x1xf32>
    %cst_139 = arith.constant 3.200000e+01 : f32
    %338 = vector.broadcast %cst_139 : f32 to vector<16x1xf32>
    %339 = arith.divf %337, %338 : vector<16x1xf32>
    %cst_140 = arith.constant 9.99999997E-7 : f32
    %340 = vector.broadcast %cst_140 : f32 to vector<16x1xf32>
    %341 = arith.addf %339, %340 : vector<16x1xf32>
    %342 = math.rsqrt %341 : vector<16x1xf32>
    %343 = vector.broadcast %342 : vector<16x1xf32> to vector<16x32xf32>
    %344 = arith.mulf %332, %343 : vector<16x32xf32>
    %345 = vector.broadcast %334 : vector<1x32xf32> to vector<16x32xf32>
    %346 = arith.mulf %344, %345 : vector<16x32xf32>
    %347 = arith.truncf %346 : vector<16x32xf32> to vector<16x32xbf16>
    %c0_141 = arith.constant 0 : index
    %c0_142 = arith.constant 0 : index
    %c0_143 = arith.constant 0 : index
    %348 = vector.load %arg14[%c0_141, %c0_142, %c0_143] : memref<2x32x96xbf16, #tpu.memory_space<vmem>>, vector<1x32x96xbf16>
    %349 = vector.shape_cast %348 : vector<1x32x96xbf16> to vector<32x96xbf16>
    %cst_144 = arith.constant dense<0.000000e+00> : vector<16x96xf32>
    %350 = tpu.matmul %347, %349, %cst_144 {dimension_numbers = #tpu.dot_dimension_numbers<[1], [0], [0], [1], [0, 0, 1, 1], [], []>} : vector<16x32xbf16>, vector<32x96xbf16>, vector<16x96xf32> -> vector<16x96xf32>
    %351 = vector.extract_strided_slice %350 {offsets = [0, 0], sizes = [16, 32], strides = [1, 1]} : vector<16x96xf32> to vector<16x32xf32>
    %352 = vector.extract_strided_slice %350 {offsets = [0, 32], sizes = [16, 64], strides = [1, 1]} : vector<16x96xf32> to vector<16x64xf32>
    %353 = vector.extract_strided_slice %351 {offsets = [0, 0], sizes = [16, 8], strides = [1, 1]} : vector<16x32xf32> to vector<16x8xf32>
    %354 = vector.extract_strided_slice %352 {offsets = [0, 0], sizes = [16, 8], strides = [1, 1]} : vector<16x64xf32> to vector<16x8xf32>
    %355 = vector.extract_strided_slice %352 {offsets = [0, 32], sizes = [16, 8], strides = [1, 1]} : vector<16x64xf32> to vector<16x8xf32>
    %356 = vector.extract_strided_slice %1 {offsets = [0, 0, 0], sizes = [1, 16, 16], strides = [1, 1, 1]} : vector<4x16x16xf32> to vector<1x16x16xf32>
    %357 = vector.shape_cast %356 : vector<1x16x16xf32> to vector<16x16xf32>
    %358 = arith.truncf %353 : vector<16x8xf32> to vector<16x8xbf16>
    %359 = tpu.transpose %354, [1, 0] : vector<16x8xf32> -> vector<8x16xf32>
    %360 = arith.truncf %359 : vector<8x16xf32> to vector<8x16xbf16>
    %cst_145 = arith.constant dense<0.000000e+00> : vector<16x16xf32>
    %361 = tpu.matmul %358, %360, %cst_145 {dimension_numbers = #tpu.dot_dimension_numbers<[1], [0], [0], [1], [0, 0, 1, 1], [], []>} : vector<16x8xbf16>, vector<8x16xbf16>, vector<16x16xf32> -> vector<16x16xf32>
    %362 = arith.addf %361, %357 : vector<16x16xf32>
    %cst_146 = arith.constant dense<0xFF800000> : vector<16xf32>
    %363 = vector.multi_reduction <maximumf>, %362, %cst_146 [1] : vector<16x16xf32> to vector<16xf32>
    %364 = vector.shape_cast %363 : vector<16xf32> to vector<16x1xf32>
    %365 = vector.broadcast %364 : vector<16x1xf32> to vector<16x16xf32>
    %366 = arith.subf %362, %365 : vector<16x16xf32>
    %367 = math.exp %366 : vector<16x16xf32>
    %cst_147 = arith.constant dense<0.000000e+00> : vector<16xf32>
    %368 = vector.multi_reduction <add>, %367, %cst_147 [1] : vector<16x16xf32> to vector<16xf32>
    %369 = vector.shape_cast %368 : vector<16xf32> to vector<16x1xf32>
    %370 = tpu.reciprocal %369 {approx = true} : vector<16x1xf32> -> vector<16x1xf32>
    %371 = vector.broadcast %370 : vector<16x1xf32> to vector<16x16xf32>
    %372 = arith.mulf %367, %371 : vector<16x16xf32>
    %373 = arith.truncf %372 : vector<16x16xf32> to vector<16x16xbf16>
    %374 = arith.truncf %355 : vector<16x8xf32> to vector<16x8xbf16>
    %cst_148 = arith.constant dense<0.000000e+00> : vector<16x8xf32>
    %375 = tpu.matmul %373, %374, %cst_148 {dimension_numbers = #tpu.dot_dimension_numbers<[1], [0], [0], [1], [0, 0, 1, 1], [], []>} : vector<16x16xbf16>, vector<16x8xbf16>, vector<16x8xf32> -> vector<16x8xf32>
    %376 = arith.truncf %375 : vector<16x8xf32> to vector<16x8xbf16>
    %c0_149 = arith.constant 0 : index
    %c0_150 = arith.constant 0 : index
    %c0_151 = arith.constant 0 : index
    %c0_152 = arith.constant 0 : index
    %377 = vector.load %arg15[%c0_149, %c0_150, %c0_151, %c0_152] : memref<2x4x8x32xbf16, #tpu.memory_space<vmem>>, vector<1x1x8x32xbf16>
    %378 = vector.shape_cast %377 : vector<1x1x8x32xbf16> to vector<8x32xbf16>
    %cst_153 = arith.constant dense<0.000000e+00> : vector<16x32xf32>
    %379 = tpu.matmul %376, %378, %cst_153 {dimension_numbers = #tpu.dot_dimension_numbers<[1], [0], [0], [1], [0, 0, 1, 1], [], []>} : vector<16x8xbf16>, vector<8x32xbf16>, vector<16x32xf32> -> vector<16x32xf32>
    %380 = vector.extract_strided_slice %351 {offsets = [0, 8], sizes = [16, 8], strides = [1, 1]} : vector<16x32xf32> to vector<16x8xf32>
    %381 = vector.extract_strided_slice %352 {offsets = [0, 8], sizes = [16, 8], strides = [1, 1]} : vector<16x64xf32> to vector<16x8xf32>
    %382 = vector.extract_strided_slice %352 {offsets = [0, 40], sizes = [16, 8], strides = [1, 1]} : vector<16x64xf32> to vector<16x8xf32>
    %383 = vector.extract_strided_slice %1 {offsets = [1, 0, 0], sizes = [1, 16, 16], strides = [1, 1, 1]} : vector<4x16x16xf32> to vector<1x16x16xf32>
    %384 = vector.shape_cast %383 : vector<1x16x16xf32> to vector<16x16xf32>
    %385 = arith.truncf %380 : vector<16x8xf32> to vector<16x8xbf16>
    %386 = tpu.transpose %381, [1, 0] : vector<16x8xf32> -> vector<8x16xf32>
    %387 = arith.truncf %386 : vector<8x16xf32> to vector<8x16xbf16>
    %cst_154 = arith.constant dense<0.000000e+00> : vector<16x16xf32>
    %388 = tpu.matmul %385, %387, %cst_154 {dimension_numbers = #tpu.dot_dimension_numbers<[1], [0], [0], [1], [0, 0, 1, 1], [], []>} : vector<16x8xbf16>, vector<8x16xbf16>, vector<16x16xf32> -> vector<16x16xf32>
    %389 = arith.addf %388, %384 : vector<16x16xf32>
    %cst_155 = arith.constant dense<0xFF800000> : vector<16xf32>
    %390 = vector.multi_reduction <maximumf>, %389, %cst_155 [1] : vector<16x16xf32> to vector<16xf32>
    %391 = vector.shape_cast %390 : vector<16xf32> to vector<16x1xf32>
    %392 = vector.broadcast %391 : vector<16x1xf32> to vector<16x16xf32>
    %393 = arith.subf %389, %392 : vector<16x16xf32>
    %394 = math.exp %393 : vector<16x16xf32>
    %cst_156 = arith.constant dense<0.000000e+00> : vector<16xf32>
    %395 = vector.multi_reduction <add>, %394, %cst_156 [1] : vector<16x16xf32> to vector<16xf32>
    %396 = vector.shape_cast %395 : vector<16xf32> to vector<16x1xf32>
    %397 = tpu.reciprocal %396 {approx = true} : vector<16x1xf32> -> vector<16x1xf32>
    %398 = vector.broadcast %397 : vector<16x1xf32> to vector<16x16xf32>
    %399 = arith.mulf %394, %398 : vector<16x16xf32>
    %400 = arith.truncf %399 : vector<16x16xf32> to vector<16x16xbf16>
    %401 = arith.truncf %382 : vector<16x8xf32> to vector<16x8xbf16>
    %cst_157 = arith.constant dense<0.000000e+00> : vector<16x8xf32>
    %402 = tpu.matmul %400, %401, %cst_157 {dimension_numbers = #tpu.dot_dimension_numbers<[1], [0], [0], [1], [0, 0, 1, 1], [], []>} : vector<16x16xbf16>, vector<16x8xbf16>, vector<16x8xf32> -> vector<16x8xf32>
    %403 = arith.truncf %402 : vector<16x8xf32> to vector<16x8xbf16>
    %c0_158 = arith.constant 0 : index
    %c1_159 = arith.constant 1 : index
    %c0_160 = arith.constant 0 : index
    %c0_161 = arith.constant 0 : index
    %404 = vector.load %arg15[%c0_158, %c1_159, %c0_160, %c0_161] : memref<2x4x8x32xbf16, #tpu.memory_space<vmem>>, vector<1x1x8x32xbf16>
    %405 = vector.shape_cast %404 : vector<1x1x8x32xbf16> to vector<8x32xbf16>
    %cst_162 = arith.constant dense<0.000000e+00> : vector<16x32xf32>
    %406 = tpu.matmul %403, %405, %cst_162 {dimension_numbers = #tpu.dot_dimension_numbers<[1], [0], [0], [1], [0, 0, 1, 1], [], []>} : vector<16x8xbf16>, vector<8x32xbf16>, vector<16x32xf32> -> vector<16x32xf32>
    %407 = arith.addf %379, %406 : vector<16x32xf32>
    %408 = vector.extract_strided_slice %351 {offsets = [0, 16], sizes = [16, 8], strides = [1, 1]} : vector<16x32xf32> to vector<16x8xf32>
    %409 = vector.extract_strided_slice %352 {offsets = [0, 16], sizes = [16, 8], strides = [1, 1]} : vector<16x64xf32> to vector<16x8xf32>
    %410 = vector.extract_strided_slice %352 {offsets = [0, 48], sizes = [16, 8], strides = [1, 1]} : vector<16x64xf32> to vector<16x8xf32>
    %411 = vector.extract_strided_slice %1 {offsets = [2, 0, 0], sizes = [1, 16, 16], strides = [1, 1, 1]} : vector<4x16x16xf32> to vector<1x16x16xf32>
    %412 = vector.shape_cast %411 : vector<1x16x16xf32> to vector<16x16xf32>
    %413 = arith.truncf %408 : vector<16x8xf32> to vector<16x8xbf16>
    %414 = tpu.transpose %409, [1, 0] : vector<16x8xf32> -> vector<8x16xf32>
    %415 = arith.truncf %414 : vector<8x16xf32> to vector<8x16xbf16>
    %cst_163 = arith.constant dense<0.000000e+00> : vector<16x16xf32>
    %416 = tpu.matmul %413, %415, %cst_163 {dimension_numbers = #tpu.dot_dimension_numbers<[1], [0], [0], [1], [0, 0, 1, 1], [], []>} : vector<16x8xbf16>, vector<8x16xbf16>, vector<16x16xf32> -> vector<16x16xf32>
    %417 = arith.addf %416, %412 : vector<16x16xf32>
    %cst_164 = arith.constant dense<0xFF800000> : vector<16xf32>
    %418 = vector.multi_reduction <maximumf>, %417, %cst_164 [1] : vector<16x16xf32> to vector<16xf32>
    %419 = vector.shape_cast %418 : vector<16xf32> to vector<16x1xf32>
    %420 = vector.broadcast %419 : vector<16x1xf32> to vector<16x16xf32>
    %421 = arith.subf %417, %420 : vector<16x16xf32>
    %422 = math.exp %421 : vector<16x16xf32>
    %cst_165 = arith.constant dense<0.000000e+00> : vector<16xf32>
    %423 = vector.multi_reduction <add>, %422, %cst_165 [1] : vector<16x16xf32> to vector<16xf32>
    %424 = vector.shape_cast %423 : vector<16xf32> to vector<16x1xf32>
    %425 = tpu.reciprocal %424 {approx = true} : vector<16x1xf32> -> vector<16x1xf32>
    %426 = vector.broadcast %425 : vector<16x1xf32> to vector<16x16xf32>
    %427 = arith.mulf %422, %426 : vector<16x16xf32>
    %428 = arith.truncf %427 : vector<16x16xf32> to vector<16x16xbf16>
    %429 = arith.truncf %410 : vector<16x8xf32> to vector<16x8xbf16>
    %cst_166 = arith.constant dense<0.000000e+00> : vector<16x8xf32>
    %430 = tpu.matmul %428, %429, %cst_166 {dimension_numbers = #tpu.dot_dimension_numbers<[1], [0], [0], [1], [0, 0, 1, 1], [], []>} : vector<16x16xbf16>, vector<16x8xbf16>, vector<16x8xf32> -> vector<16x8xf32>
    %431 = arith.truncf %430 : vector<16x8xf32> to vector<16x8xbf16>
    %c0_167 = arith.constant 0 : index
    %c2_168 = arith.constant 2 : index
    %c0_169 = arith.constant 0 : index
    %c0_170 = arith.constant 0 : index
    %432 = vector.load %arg15[%c0_167, %c2_168, %c0_169, %c0_170] : memref<2x4x8x32xbf16, #tpu.memory_space<vmem>>, vector<1x1x8x32xbf16>
    %433 = vector.shape_cast %432 : vector<1x1x8x32xbf16> to vector<8x32xbf16>
    %cst_171 = arith.constant dense<0.000000e+00> : vector<16x32xf32>
    %434 = tpu.matmul %431, %433, %cst_171 {dimension_numbers = #tpu.dot_dimension_numbers<[1], [0], [0], [1], [0, 0, 1, 1], [], []>} : vector<16x8xbf16>, vector<8x32xbf16>, vector<16x32xf32> -> vector<16x32xf32>
    %435 = arith.addf %407, %434 : vector<16x32xf32>
    %436 = vector.extract_strided_slice %351 {offsets = [0, 24], sizes = [16, 8], strides = [1, 1]} : vector<16x32xf32> to vector<16x8xf32>
    %437 = vector.extract_strided_slice %352 {offsets = [0, 24], sizes = [16, 8], strides = [1, 1]} : vector<16x64xf32> to vector<16x8xf32>
    %438 = vector.extract_strided_slice %352 {offsets = [0, 56], sizes = [16, 8], strides = [1, 1]} : vector<16x64xf32> to vector<16x8xf32>
    %439 = vector.extract_strided_slice %1 {offsets = [3, 0, 0], sizes = [1, 16, 16], strides = [1, 1, 1]} : vector<4x16x16xf32> to vector<1x16x16xf32>
    %440 = vector.shape_cast %439 : vector<1x16x16xf32> to vector<16x16xf32>
    %441 = arith.truncf %436 : vector<16x8xf32> to vector<16x8xbf16>
    %442 = tpu.transpose %437, [1, 0] : vector<16x8xf32> -> vector<8x16xf32>
    %443 = arith.truncf %442 : vector<8x16xf32> to vector<8x16xbf16>
    %cst_172 = arith.constant dense<0.000000e+00> : vector<16x16xf32>
    %444 = tpu.matmul %441, %443, %cst_172 {dimension_numbers = #tpu.dot_dimension_numbers<[1], [0], [0], [1], [0, 0, 1, 1], [], []>} : vector<16x8xbf16>, vector<8x16xbf16>, vector<16x16xf32> -> vector<16x16xf32>
    %445 = arith.addf %444, %440 : vector<16x16xf32>
    %cst_173 = arith.constant dense<0xFF800000> : vector<16xf32>
    %446 = vector.multi_reduction <maximumf>, %445, %cst_173 [1] : vector<16x16xf32> to vector<16xf32>
    %447 = vector.shape_cast %446 : vector<16xf32> to vector<16x1xf32>
    %448 = vector.broadcast %447 : vector<16x1xf32> to vector<16x16xf32>
    %449 = arith.subf %445, %448 : vector<16x16xf32>
    %450 = math.exp %449 : vector<16x16xf32>
    %cst_174 = arith.constant dense<0.000000e+00> : vector<16xf32>
    %451 = vector.multi_reduction <add>, %450, %cst_174 [1] : vector<16x16xf32> to vector<16xf32>
    %452 = vector.shape_cast %451 : vector<16xf32> to vector<16x1xf32>
    %453 = tpu.reciprocal %452 {approx = true} : vector<16x1xf32> -> vector<16x1xf32>
    %454 = vector.broadcast %453 : vector<16x1xf32> to vector<16x16xf32>
    %455 = arith.mulf %450, %454 : vector<16x16xf32>
    %456 = arith.truncf %455 : vector<16x16xf32> to vector<16x16xbf16>
    %457 = arith.truncf %438 : vector<16x8xf32> to vector<16x8xbf16>
    %cst_175 = arith.constant dense<0.000000e+00> : vector<16x8xf32>
    %458 = tpu.matmul %456, %457, %cst_175 {dimension_numbers = #tpu.dot_dimension_numbers<[1], [0], [0], [1], [0, 0, 1, 1], [], []>} : vector<16x16xbf16>, vector<16x8xbf16>, vector<16x8xf32> -> vector<16x8xf32>
    %459 = arith.truncf %458 : vector<16x8xf32> to vector<16x8xbf16>
    %c0_176 = arith.constant 0 : index
    %c3_177 = arith.constant 3 : index
    %c0_178 = arith.constant 0 : index
    %c0_179 = arith.constant 0 : index
    %460 = vector.load %arg15[%c0_176, %c3_177, %c0_178, %c0_179] : memref<2x4x8x32xbf16, #tpu.memory_space<vmem>>, vector<1x1x8x32xbf16>
    %461 = vector.shape_cast %460 : vector<1x1x8x32xbf16> to vector<8x32xbf16>
    %cst_180 = arith.constant dense<0.000000e+00> : vector<16x32xf32>
    %462 = tpu.matmul %459, %461, %cst_180 {dimension_numbers = #tpu.dot_dimension_numbers<[1], [0], [0], [1], [0, 0, 1, 1], [], []>} : vector<16x8xbf16>, vector<8x32xbf16>, vector<16x32xf32> -> vector<16x32xf32>
    %463 = arith.addf %435, %462 : vector<16x32xf32>
    %464 = arith.addf %332, %463 : vector<16x32xf32>
    %c0_181 = arith.constant 0 : index
    %c0_182 = arith.constant 0 : index
    %c0_183 = arith.constant 0 : index
    %465 = vector.load %arg16[%c0_181, %c0_182, %c0_183] : memref<2x1x32xf32, #tpu.memory_space<vmem>>, vector<1x1x32xf32>
    %466 = vector.shape_cast %465 : vector<1x1x32xf32> to vector<1x32xf32>
    %467 = arith.mulf %464, %464 : vector<16x32xf32>
    %cst_184 = arith.constant dense<0.000000e+00> : vector<16xf32>
    %468 = vector.multi_reduction <add>, %467, %cst_184 [1] : vector<16x32xf32> to vector<16xf32>
    %469 = vector.shape_cast %468 : vector<16xf32> to vector<16x1xf32>
    %cst_185 = arith.constant 3.200000e+01 : f32
    %470 = vector.broadcast %cst_185 : f32 to vector<16x1xf32>
    %471 = arith.divf %469, %470 : vector<16x1xf32>
    %cst_186 = arith.constant 9.99999997E-7 : f32
    %472 = vector.broadcast %cst_186 : f32 to vector<16x1xf32>
    %473 = arith.addf %471, %472 : vector<16x1xf32>
    %474 = math.rsqrt %473 : vector<16x1xf32>
    %475 = vector.broadcast %474 : vector<16x1xf32> to vector<16x32xf32>
    %476 = arith.mulf %464, %475 : vector<16x32xf32>
    %477 = vector.broadcast %466 : vector<1x32xf32> to vector<16x32xf32>
    %478 = arith.mulf %476, %477 : vector<16x32xf32>
    %479 = arith.truncf %478 : vector<16x32xf32> to vector<16x32xbf16>
    %c0_187 = arith.constant 0 : index
    %c0_188 = arith.constant 0 : index
    %c0_189 = arith.constant 0 : index
    %480 = vector.load %arg17[%c0_187, %c0_188, %c0_189] : memref<2x32x32xbf16, #tpu.memory_space<vmem>>, vector<1x32x32xbf16>
    %481 = vector.shape_cast %480 : vector<1x32x32xbf16> to vector<32x32xbf16>
    %cst_190 = arith.constant dense<0.000000e+00> : vector<16x32xf32>
    %482 = tpu.matmul %479, %481, %cst_190 {dimension_numbers = #tpu.dot_dimension_numbers<[1], [0], [0], [1], [0, 0, 1, 1], [], []>} : vector<16x32xbf16>, vector<32x32xbf16>, vector<16x32xf32> -> vector<16x32xf32>
    %c0_191 = arith.constant 0 : index
    %c0_192 = arith.constant 0 : index
    %c0_193 = arith.constant 0 : index
    %483 = vector.load %arg18[%c0_191, %c0_192, %c0_193] : memref<2x32x64xbf16, #tpu.memory_space<vmem>>, vector<1x32x64xbf16>
    %484 = vector.shape_cast %483 : vector<1x32x64xbf16> to vector<32x64xbf16>
    %cst_194 = arith.constant dense<0.000000e+00> : vector<16x64xf32>
    %485 = tpu.matmul %331, %484, %cst_194 {dimension_numbers = #tpu.dot_dimension_numbers<[1], [0], [0], [1], [0, 0, 1, 1], [], []>} : vector<16x32xbf16>, vector<32x64xbf16>, vector<16x64xf32> -> vector<16x64xf32>
    %486 = vector.extract_strided_slice %482 {offsets = [0, 0], sizes = [16, 8], strides = [1, 1]} : vector<16x32xf32> to vector<16x8xf32>
    %487 = vector.extract_strided_slice %485 {offsets = [0, 0], sizes = [16, 8], strides = [1, 1]} : vector<16x64xf32> to vector<16x8xf32>
    %488 = vector.extract_strided_slice %485 {offsets = [0, 32], sizes = [16, 8], strides = [1, 1]} : vector<16x64xf32> to vector<16x8xf32>
    %489 = vector.extract_strided_slice %2 {offsets = [0, 0, 0], sizes = [1, 16, 16], strides = [1, 1, 1]} : vector<4x16x16xf32> to vector<1x16x16xf32>
    %490 = vector.shape_cast %489 : vector<1x16x16xf32> to vector<16x16xf32>
    %491 = arith.truncf %486 : vector<16x8xf32> to vector<16x8xbf16>
    %492 = tpu.transpose %487, [1, 0] : vector<16x8xf32> -> vector<8x16xf32>
    %493 = arith.truncf %492 : vector<8x16xf32> to vector<8x16xbf16>
    %cst_195 = arith.constant dense<0.000000e+00> : vector<16x16xf32>
    %494 = tpu.matmul %491, %493, %cst_195 {dimension_numbers = #tpu.dot_dimension_numbers<[1], [0], [0], [1], [0, 0, 1, 1], [], []>} : vector<16x8xbf16>, vector<8x16xbf16>, vector<16x16xf32> -> vector<16x16xf32>
    %495 = arith.addf %494, %490 : vector<16x16xf32>
    %cst_196 = arith.constant dense<0xFF800000> : vector<16xf32>
    %496 = vector.multi_reduction <maximumf>, %495, %cst_196 [1] : vector<16x16xf32> to vector<16xf32>
    %497 = vector.shape_cast %496 : vector<16xf32> to vector<16x1xf32>
    %498 = vector.broadcast %497 : vector<16x1xf32> to vector<16x16xf32>
    %499 = arith.subf %495, %498 : vector<16x16xf32>
    %500 = math.exp %499 : vector<16x16xf32>
    %cst_197 = arith.constant dense<0.000000e+00> : vector<16xf32>
    %501 = vector.multi_reduction <add>, %500, %cst_197 [1] : vector<16x16xf32> to vector<16xf32>
    %502 = vector.shape_cast %501 : vector<16xf32> to vector<16x1xf32>
    %503 = tpu.reciprocal %502 {approx = true} : vector<16x1xf32> -> vector<16x1xf32>
    %504 = vector.broadcast %503 : vector<16x1xf32> to vector<16x16xf32>
    %505 = arith.mulf %500, %504 : vector<16x16xf32>
    %506 = arith.truncf %505 : vector<16x16xf32> to vector<16x16xbf16>
    %507 = arith.truncf %488 : vector<16x8xf32> to vector<16x8xbf16>
    %cst_198 = arith.constant dense<0.000000e+00> : vector<16x8xf32>
    %508 = tpu.matmul %506, %507, %cst_198 {dimension_numbers = #tpu.dot_dimension_numbers<[1], [0], [0], [1], [0, 0, 1, 1], [], []>} : vector<16x16xbf16>, vector<16x8xbf16>, vector<16x8xf32> -> vector<16x8xf32>
    %509 = arith.truncf %508 : vector<16x8xf32> to vector<16x8xbf16>
    %c0_199 = arith.constant 0 : index
    %c0_200 = arith.constant 0 : index
    %c0_201 = arith.constant 0 : index
    %c0_202 = arith.constant 0 : index
    %510 = vector.load %arg19[%c0_199, %c0_200, %c0_201, %c0_202] : memref<2x4x8x32xbf16, #tpu.memory_space<vmem>>, vector<1x1x8x32xbf16>
    %511 = vector.shape_cast %510 : vector<1x1x8x32xbf16> to vector<8x32xbf16>
    %cst_203 = arith.constant dense<0.000000e+00> : vector<16x32xf32>
    %512 = tpu.matmul %509, %511, %cst_203 {dimension_numbers = #tpu.dot_dimension_numbers<[1], [0], [0], [1], [0, 0, 1, 1], [], []>} : vector<16x8xbf16>, vector<8x32xbf16>, vector<16x32xf32> -> vector<16x32xf32>
    %513 = vector.extract_strided_slice %482 {offsets = [0, 8], sizes = [16, 8], strides = [1, 1]} : vector<16x32xf32> to vector<16x8xf32>
    %514 = vector.extract_strided_slice %485 {offsets = [0, 8], sizes = [16, 8], strides = [1, 1]} : vector<16x64xf32> to vector<16x8xf32>
    %515 = vector.extract_strided_slice %485 {offsets = [0, 40], sizes = [16, 8], strides = [1, 1]} : vector<16x64xf32> to vector<16x8xf32>
    %516 = vector.extract_strided_slice %2 {offsets = [1, 0, 0], sizes = [1, 16, 16], strides = [1, 1, 1]} : vector<4x16x16xf32> to vector<1x16x16xf32>
    %517 = vector.shape_cast %516 : vector<1x16x16xf32> to vector<16x16xf32>
    %518 = arith.truncf %513 : vector<16x8xf32> to vector<16x8xbf16>
    %519 = tpu.transpose %514, [1, 0] : vector<16x8xf32> -> vector<8x16xf32>
    %520 = arith.truncf %519 : vector<8x16xf32> to vector<8x16xbf16>
    %cst_204 = arith.constant dense<0.000000e+00> : vector<16x16xf32>
    %521 = tpu.matmul %518, %520, %cst_204 {dimension_numbers = #tpu.dot_dimension_numbers<[1], [0], [0], [1], [0, 0, 1, 1], [], []>} : vector<16x8xbf16>, vector<8x16xbf16>, vector<16x16xf32> -> vector<16x16xf32>
    %522 = arith.addf %521, %517 : vector<16x16xf32>
    %cst_205 = arith.constant dense<0xFF800000> : vector<16xf32>
    %523 = vector.multi_reduction <maximumf>, %522, %cst_205 [1] : vector<16x16xf32> to vector<16xf32>
    %524 = vector.shape_cast %523 : vector<16xf32> to vector<16x1xf32>
    %525 = vector.broadcast %524 : vector<16x1xf32> to vector<16x16xf32>
    %526 = arith.subf %522, %525 : vector<16x16xf32>
    %527 = math.exp %526 : vector<16x16xf32>
    %cst_206 = arith.constant dense<0.000000e+00> : vector<16xf32>
    %528 = vector.multi_reduction <add>, %527, %cst_206 [1] : vector<16x16xf32> to vector<16xf32>
    %529 = vector.shape_cast %528 : vector<16xf32> to vector<16x1xf32>
    %530 = tpu.reciprocal %529 {approx = true} : vector<16x1xf32> -> vector<16x1xf32>
    %531 = vector.broadcast %530 : vector<16x1xf32> to vector<16x16xf32>
    %532 = arith.mulf %527, %531 : vector<16x16xf32>
    %533 = arith.truncf %532 : vector<16x16xf32> to vector<16x16xbf16>
    %534 = arith.truncf %515 : vector<16x8xf32> to vector<16x8xbf16>
    %cst_207 = arith.constant dense<0.000000e+00> : vector<16x8xf32>
    %535 = tpu.matmul %533, %534, %cst_207 {dimension_numbers = #tpu.dot_dimension_numbers<[1], [0], [0], [1], [0, 0, 1, 1], [], []>} : vector<16x16xbf16>, vector<16x8xbf16>, vector<16x8xf32> -> vector<16x8xf32>
    %536 = arith.truncf %535 : vector<16x8xf32> to vector<16x8xbf16>
    %c0_208 = arith.constant 0 : index
    %c1_209 = arith.constant 1 : index
    %c0_210 = arith.constant 0 : index
    %c0_211 = arith.constant 0 : index
    %537 = vector.load %arg19[%c0_208, %c1_209, %c0_210, %c0_211] : memref<2x4x8x32xbf16, #tpu.memory_space<vmem>>, vector<1x1x8x32xbf16>
    %538 = vector.shape_cast %537 : vector<1x1x8x32xbf16> to vector<8x32xbf16>
    %cst_212 = arith.constant dense<0.000000e+00> : vector<16x32xf32>
    %539 = tpu.matmul %536, %538, %cst_212 {dimension_numbers = #tpu.dot_dimension_numbers<[1], [0], [0], [1], [0, 0, 1, 1], [], []>} : vector<16x8xbf16>, vector<8x32xbf16>, vector<16x32xf32> -> vector<16x32xf32>
    %540 = arith.addf %512, %539 : vector<16x32xf32>
    %541 = vector.extract_strided_slice %482 {offsets = [0, 16], sizes = [16, 8], strides = [1, 1]} : vector<16x32xf32> to vector<16x8xf32>
    %542 = vector.extract_strided_slice %485 {offsets = [0, 16], sizes = [16, 8], strides = [1, 1]} : vector<16x64xf32> to vector<16x8xf32>
    %543 = vector.extract_strided_slice %485 {offsets = [0, 48], sizes = [16, 8], strides = [1, 1]} : vector<16x64xf32> to vector<16x8xf32>
    %544 = vector.extract_strided_slice %2 {offsets = [2, 0, 0], sizes = [1, 16, 16], strides = [1, 1, 1]} : vector<4x16x16xf32> to vector<1x16x16xf32>
    %545 = vector.shape_cast %544 : vector<1x16x16xf32> to vector<16x16xf32>
    %546 = arith.truncf %541 : vector<16x8xf32> to vector<16x8xbf16>
    %547 = tpu.transpose %542, [1, 0] : vector<16x8xf32> -> vector<8x16xf32>
    %548 = arith.truncf %547 : vector<8x16xf32> to vector<8x16xbf16>
    %cst_213 = arith.constant dense<0.000000e+00> : vector<16x16xf32>
    %549 = tpu.matmul %546, %548, %cst_213 {dimension_numbers = #tpu.dot_dimension_numbers<[1], [0], [0], [1], [0, 0, 1, 1], [], []>} : vector<16x8xbf16>, vector<8x16xbf16>, vector<16x16xf32> -> vector<16x16xf32>
    %550 = arith.addf %549, %545 : vector<16x16xf32>
    %cst_214 = arith.constant dense<0xFF800000> : vector<16xf32>
    %551 = vector.multi_reduction <maximumf>, %550, %cst_214 [1] : vector<16x16xf32> to vector<16xf32>
    %552 = vector.shape_cast %551 : vector<16xf32> to vector<16x1xf32>
    %553 = vector.broadcast %552 : vector<16x1xf32> to vector<16x16xf32>
    %554 = arith.subf %550, %553 : vector<16x16xf32>
    %555 = math.exp %554 : vector<16x16xf32>
    %cst_215 = arith.constant dense<0.000000e+00> : vector<16xf32>
    %556 = vector.multi_reduction <add>, %555, %cst_215 [1] : vector<16x16xf32> to vector<16xf32>
    %557 = vector.shape_cast %556 : vector<16xf32> to vector<16x1xf32>
    %558 = tpu.reciprocal %557 {approx = true} : vector<16x1xf32> -> vector<16x1xf32>
    %559 = vector.broadcast %558 : vector<16x1xf32> to vector<16x16xf32>
    %560 = arith.mulf %555, %559 : vector<16x16xf32>
    %561 = arith.truncf %560 : vector<16x16xf32> to vector<16x16xbf16>
    %562 = arith.truncf %543 : vector<16x8xf32> to vector<16x8xbf16>
    %cst_216 = arith.constant dense<0.000000e+00> : vector<16x8xf32>
    %563 = tpu.matmul %561, %562, %cst_216 {dimension_numbers = #tpu.dot_dimension_numbers<[1], [0], [0], [1], [0, 0, 1, 1], [], []>} : vector<16x16xbf16>, vector<16x8xbf16>, vector<16x8xf32> -> vector<16x8xf32>
    %564 = arith.truncf %563 : vector<16x8xf32> to vector<16x8xbf16>
    %c0_217 = arith.constant 0 : index
    %c2_218 = arith.constant 2 : index
    %c0_219 = arith.constant 0 : index
    %c0_220 = arith.constant 0 : index
    %565 = vector.load %arg19[%c0_217, %c2_218, %c0_219, %c0_220] : memref<2x4x8x32xbf16, #tpu.memory_space<vmem>>, vector<1x1x8x32xbf16>
    %566 = vector.shape_cast %565 : vector<1x1x8x32xbf16> to vector<8x32xbf16>
    %cst_221 = arith.constant dense<0.000000e+00> : vector<16x32xf32>
    %567 = tpu.matmul %564, %566, %cst_221 {dimension_numbers = #tpu.dot_dimension_numbers<[1], [0], [0], [1], [0, 0, 1, 1], [], []>} : vector<16x8xbf16>, vector<8x32xbf16>, vector<16x32xf32> -> vector<16x32xf32>
    %568 = arith.addf %540, %567 : vector<16x32xf32>
    %569 = vector.extract_strided_slice %482 {offsets = [0, 24], sizes = [16, 8], strides = [1, 1]} : vector<16x32xf32> to vector<16x8xf32>
    %570 = vector.extract_strided_slice %485 {offsets = [0, 24], sizes = [16, 8], strides = [1, 1]} : vector<16x64xf32> to vector<16x8xf32>
    %571 = vector.extract_strided_slice %485 {offsets = [0, 56], sizes = [16, 8], strides = [1, 1]} : vector<16x64xf32> to vector<16x8xf32>
    %572 = vector.extract_strided_slice %2 {offsets = [3, 0, 0], sizes = [1, 16, 16], strides = [1, 1, 1]} : vector<4x16x16xf32> to vector<1x16x16xf32>
    %573 = vector.shape_cast %572 : vector<1x16x16xf32> to vector<16x16xf32>
    %574 = arith.truncf %569 : vector<16x8xf32> to vector<16x8xbf16>
    %575 = tpu.transpose %570, [1, 0] : vector<16x8xf32> -> vector<8x16xf32>
    %576 = arith.truncf %575 : vector<8x16xf32> to vector<8x16xbf16>
    %cst_222 = arith.constant dense<0.000000e+00> : vector<16x16xf32>
    %577 = tpu.matmul %574, %576, %cst_222 {dimension_numbers = #tpu.dot_dimension_numbers<[1], [0], [0], [1], [0, 0, 1, 1], [], []>} : vector<16x8xbf16>, vector<8x16xbf16>, vector<16x16xf32> -> vector<16x16xf32>
    %578 = arith.addf %577, %573 : vector<16x16xf32>
    %cst_223 = arith.constant dense<0xFF800000> : vector<16xf32>
    %579 = vector.multi_reduction <maximumf>, %578, %cst_223 [1] : vector<16x16xf32> to vector<16xf32>
    %580 = vector.shape_cast %579 : vector<16xf32> to vector<16x1xf32>
    %581 = vector.broadcast %580 : vector<16x1xf32> to vector<16x16xf32>
    %582 = arith.subf %578, %581 : vector<16x16xf32>
    %583 = math.exp %582 : vector<16x16xf32>
    %cst_224 = arith.constant dense<0.000000e+00> : vector<16xf32>
    %584 = vector.multi_reduction <add>, %583, %cst_224 [1] : vector<16x16xf32> to vector<16xf32>
    %585 = vector.shape_cast %584 : vector<16xf32> to vector<16x1xf32>
    %586 = tpu.reciprocal %585 {approx = true} : vector<16x1xf32> -> vector<16x1xf32>
    %587 = vector.broadcast %586 : vector<16x1xf32> to vector<16x16xf32>
    %588 = arith.mulf %583, %587 : vector<16x16xf32>
    %589 = arith.truncf %588 : vector<16x16xf32> to vector<16x16xbf16>
    %590 = arith.truncf %571 : vector<16x8xf32> to vector<16x8xbf16>
    %cst_225 = arith.constant dense<0.000000e+00> : vector<16x8xf32>
    %591 = tpu.matmul %589, %590, %cst_225 {dimension_numbers = #tpu.dot_dimension_numbers<[1], [0], [0], [1], [0, 0, 1, 1], [], []>} : vector<16x16xbf16>, vector<16x8xbf16>, vector<16x8xf32> -> vector<16x8xf32>
    %592 = arith.truncf %591 : vector<16x8xf32> to vector<16x8xbf16>
    %c0_226 = arith.constant 0 : index
    %c3_227 = arith.constant 3 : index
    %c0_228 = arith.constant 0 : index
    %c0_229 = arith.constant 0 : index
    %593 = vector.load %arg19[%c0_226, %c3_227, %c0_228, %c0_229] : memref<2x4x8x32xbf16, #tpu.memory_space<vmem>>, vector<1x1x8x32xbf16>
    %594 = vector.shape_cast %593 : vector<1x1x8x32xbf16> to vector<8x32xbf16>
    %cst_230 = arith.constant dense<0.000000e+00> : vector<16x32xf32>
    %595 = tpu.matmul %592, %594, %cst_230 {dimension_numbers = #tpu.dot_dimension_numbers<[1], [0], [0], [1], [0, 0, 1, 1], [], []>} : vector<16x8xbf16>, vector<8x32xbf16>, vector<16x32xf32> -> vector<16x32xf32>
    %596 = arith.addf %568, %595 : vector<16x32xf32>
    %597 = arith.addf %464, %596 : vector<16x32xf32>
    %c0_231 = arith.constant 0 : index
    %c0_232 = arith.constant 0 : index
    %c0_233 = arith.constant 0 : index
    %598 = vector.load %arg20[%c0_231, %c0_232, %c0_233] : memref<2x1x32xf32, #tpu.memory_space<vmem>>, vector<1x1x32xf32>
    %599 = vector.shape_cast %598 : vector<1x1x32xf32> to vector<1x32xf32>
    %600 = arith.mulf %597, %597 : vector<16x32xf32>
    %cst_234 = arith.constant dense<0.000000e+00> : vector<16xf32>
    %601 = vector.multi_reduction <add>, %600, %cst_234 [1] : vector<16x32xf32> to vector<16xf32>
    %602 = vector.shape_cast %601 : vector<16xf32> to vector<16x1xf32>
    %cst_235 = arith.constant 3.200000e+01 : f32
    %603 = vector.broadcast %cst_235 : f32 to vector<16x1xf32>
    %604 = arith.divf %602, %603 : vector<16x1xf32>
    %cst_236 = arith.constant 9.99999997E-7 : f32
    %605 = vector.broadcast %cst_236 : f32 to vector<16x1xf32>
    %606 = arith.addf %604, %605 : vector<16x1xf32>
    %607 = math.rsqrt %606 : vector<16x1xf32>
    %608 = vector.broadcast %607 : vector<16x1xf32> to vector<16x32xf32>
    %609 = arith.mulf %597, %608 : vector<16x32xf32>
    %610 = vector.broadcast %599 : vector<1x32xf32> to vector<16x32xf32>
    %611 = arith.mulf %609, %610 : vector<16x32xf32>
    %612 = arith.truncf %611 : vector<16x32xf32> to vector<16x32xbf16>
    %c0_237 = arith.constant 0 : index
    %c0_238 = arith.constant 0 : index
    %c0_239 = arith.constant 0 : index
    %613 = vector.load %arg21[%c0_237, %c0_238, %c0_239] : memref<2x32x64xbf16, #tpu.memory_space<vmem>>, vector<1x32x64xbf16>
    %614 = vector.shape_cast %613 : vector<1x32x64xbf16> to vector<32x64xbf16>
    %cst_240 = arith.constant dense<0.000000e+00> : vector<16x64xf32>
    %615 = tpu.matmul %612, %614, %cst_240 {dimension_numbers = #tpu.dot_dimension_numbers<[1], [0], [0], [1], [0, 0, 1, 1], [], []>} : vector<16x32xbf16>, vector<32x64xbf16>, vector<16x64xf32> -> vector<16x64xf32>
    %cst_241 = arith.constant 0.000000e+00 : f32
    %616 = vector.broadcast %cst_241 : f32 to vector<16x64xf32>
    %617 = arith.maximumf %615, %616 : vector<16x64xf32>
    %618 = arith.truncf %617 : vector<16x64xf32> to vector<16x64xbf16>
    %c0_242 = arith.constant 0 : index
    %c0_243 = arith.constant 0 : index
    %c0_244 = arith.constant 0 : index
    %619 = vector.load %arg22[%c0_242, %c0_243, %c0_244] : memref<2x64x32xbf16, #tpu.memory_space<vmem>>, vector<1x64x32xbf16>
    %620 = vector.shape_cast %619 : vector<1x64x32xbf16> to vector<64x32xbf16>
    %cst_245 = arith.constant dense<0.000000e+00> : vector<16x32xf32>
    %621 = tpu.matmul %618, %620, %cst_245 {dimension_numbers = #tpu.dot_dimension_numbers<[1], [0], [0], [1], [0, 0, 1, 1], [], []>} : vector<16x64xbf16>, vector<64x32xbf16>, vector<16x32xf32> -> vector<16x32xf32>
    %622 = arith.addf %597, %621 : vector<16x32xf32>
    %c1_246 = arith.constant 1 : index
    %c0_247 = arith.constant 0 : index
    %c0_248 = arith.constant 0 : index
    %623 = vector.load %arg13[%c1_246, %c0_247, %c0_248] : memref<2x1x32xf32, #tpu.memory_space<vmem>>, vector<1x1x32xf32>
    %624 = vector.shape_cast %623 : vector<1x1x32xf32> to vector<1x32xf32>
    %625 = arith.mulf %622, %622 : vector<16x32xf32>
    %cst_249 = arith.constant dense<0.000000e+00> : vector<16xf32>
    %626 = vector.multi_reduction <add>, %625, %cst_249 [1] : vector<16x32xf32> to vector<16xf32>
    %627 = vector.shape_cast %626 : vector<16xf32> to vector<16x1xf32>
    %cst_250 = arith.constant 3.200000e+01 : f32
    %628 = vector.broadcast %cst_250 : f32 to vector<16x1xf32>
    %629 = arith.divf %627, %628 : vector<16x1xf32>
    %cst_251 = arith.constant 9.99999997E-7 : f32
    %630 = vector.broadcast %cst_251 : f32 to vector<16x1xf32>
    %631 = arith.addf %629, %630 : vector<16x1xf32>
    %632 = math.rsqrt %631 : vector<16x1xf32>
    %633 = vector.broadcast %632 : vector<16x1xf32> to vector<16x32xf32>
    %634 = arith.mulf %622, %633 : vector<16x32xf32>
    %635 = vector.broadcast %624 : vector<1x32xf32> to vector<16x32xf32>
    %636 = arith.mulf %634, %635 : vector<16x32xf32>
    %637 = arith.truncf %636 : vector<16x32xf32> to vector<16x32xbf16>
    %c1_252 = arith.constant 1 : index
    %c0_253 = arith.constant 0 : index
    %c0_254 = arith.constant 0 : index
    %638 = vector.load %arg14[%c1_252, %c0_253, %c0_254] : memref<2x32x96xbf16, #tpu.memory_space<vmem>>, vector<1x32x96xbf16>
    %639 = vector.shape_cast %638 : vector<1x32x96xbf16> to vector<32x96xbf16>
    %cst_255 = arith.constant dense<0.000000e+00> : vector<16x96xf32>
    %640 = tpu.matmul %637, %639, %cst_255 {dimension_numbers = #tpu.dot_dimension_numbers<[1], [0], [0], [1], [0, 0, 1, 1], [], []>} : vector<16x32xbf16>, vector<32x96xbf16>, vector<16x96xf32> -> vector<16x96xf32>
    %641 = vector.extract_strided_slice %640 {offsets = [0, 0], sizes = [16, 32], strides = [1, 1]} : vector<16x96xf32> to vector<16x32xf32>
    %642 = vector.extract_strided_slice %640 {offsets = [0, 32], sizes = [16, 64], strides = [1, 1]} : vector<16x96xf32> to vector<16x64xf32>
    %643 = vector.extract_strided_slice %641 {offsets = [0, 0], sizes = [16, 8], strides = [1, 1]} : vector<16x32xf32> to vector<16x8xf32>
    %644 = vector.extract_strided_slice %642 {offsets = [0, 0], sizes = [16, 8], strides = [1, 1]} : vector<16x64xf32> to vector<16x8xf32>
    %645 = vector.extract_strided_slice %642 {offsets = [0, 32], sizes = [16, 8], strides = [1, 1]} : vector<16x64xf32> to vector<16x8xf32>
    %646 = vector.extract_strided_slice %1 {offsets = [0, 0, 0], sizes = [1, 16, 16], strides = [1, 1, 1]} : vector<4x16x16xf32> to vector<1x16x16xf32>
    %647 = vector.shape_cast %646 : vector<1x16x16xf32> to vector<16x16xf32>
    %648 = arith.truncf %643 : vector<16x8xf32> to vector<16x8xbf16>
    %649 = tpu.transpose %644, [1, 0] : vector<16x8xf32> -> vector<8x16xf32>
    %650 = arith.truncf %649 : vector<8x16xf32> to vector<8x16xbf16>
    %cst_256 = arith.constant dense<0.000000e+00> : vector<16x16xf32>
    %651 = tpu.matmul %648, %650, %cst_256 {dimension_numbers = #tpu.dot_dimension_numbers<[1], [0], [0], [1], [0, 0, 1, 1], [], []>} : vector<16x8xbf16>, vector<8x16xbf16>, vector<16x16xf32> -> vector<16x16xf32>
    %652 = arith.addf %651, %647 : vector<16x16xf32>
    %cst_257 = arith.constant dense<0xFF800000> : vector<16xf32>
    %653 = vector.multi_reduction <maximumf>, %652, %cst_257 [1] : vector<16x16xf32> to vector<16xf32>
    %654 = vector.shape_cast %653 : vector<16xf32> to vector<16x1xf32>
    %655 = vector.broadcast %654 : vector<16x1xf32> to vector<16x16xf32>
    %656 = arith.subf %652, %655 : vector<16x16xf32>
    %657 = math.exp %656 : vector<16x16xf32>
    %cst_258 = arith.constant dense<0.000000e+00> : vector<16xf32>
    %658 = vector.multi_reduction <add>, %657, %cst_258 [1] : vector<16x16xf32> to vector<16xf32>
    %659 = vector.shape_cast %658 : vector<16xf32> to vector<16x1xf32>
    %660 = tpu.reciprocal %659 {approx = true} : vector<16x1xf32> -> vector<16x1xf32>
    %661 = vector.broadcast %660 : vector<16x1xf32> to vector<16x16xf32>
    %662 = arith.mulf %657, %661 : vector<16x16xf32>
    %663 = arith.truncf %662 : vector<16x16xf32> to vector<16x16xbf16>
    %664 = arith.truncf %645 : vector<16x8xf32> to vector<16x8xbf16>
    %cst_259 = arith.constant dense<0.000000e+00> : vector<16x8xf32>
    %665 = tpu.matmul %663, %664, %cst_259 {dimension_numbers = #tpu.dot_dimension_numbers<[1], [0], [0], [1], [0, 0, 1, 1], [], []>} : vector<16x16xbf16>, vector<16x8xbf16>, vector<16x8xf32> -> vector<16x8xf32>
    %666 = arith.truncf %665 : vector<16x8xf32> to vector<16x8xbf16>
    %c1_260 = arith.constant 1 : index
    %c0_261 = arith.constant 0 : index
    %c0_262 = arith.constant 0 : index
    %c0_263 = arith.constant 0 : index
    %667 = vector.load %arg15[%c1_260, %c0_261, %c0_262, %c0_263] : memref<2x4x8x32xbf16, #tpu.memory_space<vmem>>, vector<1x1x8x32xbf16>
    %668 = vector.shape_cast %667 : vector<1x1x8x32xbf16> to vector<8x32xbf16>
    %cst_264 = arith.constant dense<0.000000e+00> : vector<16x32xf32>
    %669 = tpu.matmul %666, %668, %cst_264 {dimension_numbers = #tpu.dot_dimension_numbers<[1], [0], [0], [1], [0, 0, 1, 1], [], []>} : vector<16x8xbf16>, vector<8x32xbf16>, vector<16x32xf32> -> vector<16x32xf32>
    %670 = vector.extract_strided_slice %641 {offsets = [0, 8], sizes = [16, 8], strides = [1, 1]} : vector<16x32xf32> to vector<16x8xf32>
    %671 = vector.extract_strided_slice %642 {offsets = [0, 8], sizes = [16, 8], strides = [1, 1]} : vector<16x64xf32> to vector<16x8xf32>
    %672 = vector.extract_strided_slice %642 {offsets = [0, 40], sizes = [16, 8], strides = [1, 1]} : vector<16x64xf32> to vector<16x8xf32>
    %673 = vector.extract_strided_slice %1 {offsets = [1, 0, 0], sizes = [1, 16, 16], strides = [1, 1, 1]} : vector<4x16x16xf32> to vector<1x16x16xf32>
    %674 = vector.shape_cast %673 : vector<1x16x16xf32> to vector<16x16xf32>
    %675 = arith.truncf %670 : vector<16x8xf32> to vector<16x8xbf16>
    %676 = tpu.transpose %671, [1, 0] : vector<16x8xf32> -> vector<8x16xf32>
    %677 = arith.truncf %676 : vector<8x16xf32> to vector<8x16xbf16>
    %cst_265 = arith.constant dense<0.000000e+00> : vector<16x16xf32>
    %678 = tpu.matmul %675, %677, %cst_265 {dimension_numbers = #tpu.dot_dimension_numbers<[1], [0], [0], [1], [0, 0, 1, 1], [], []>} : vector<16x8xbf16>, vector<8x16xbf16>, vector<16x16xf32> -> vector<16x16xf32>
    %679 = arith.addf %678, %674 : vector<16x16xf32>
    %cst_266 = arith.constant dense<0xFF800000> : vector<16xf32>
    %680 = vector.multi_reduction <maximumf>, %679, %cst_266 [1] : vector<16x16xf32> to vector<16xf32>
    %681 = vector.shape_cast %680 : vector<16xf32> to vector<16x1xf32>
    %682 = vector.broadcast %681 : vector<16x1xf32> to vector<16x16xf32>
    %683 = arith.subf %679, %682 : vector<16x16xf32>
    %684 = math.exp %683 : vector<16x16xf32>
    %cst_267 = arith.constant dense<0.000000e+00> : vector<16xf32>
    %685 = vector.multi_reduction <add>, %684, %cst_267 [1] : vector<16x16xf32> to vector<16xf32>
    %686 = vector.shape_cast %685 : vector<16xf32> to vector<16x1xf32>
    %687 = tpu.reciprocal %686 {approx = true} : vector<16x1xf32> -> vector<16x1xf32>
    %688 = vector.broadcast %687 : vector<16x1xf32> to vector<16x16xf32>
    %689 = arith.mulf %684, %688 : vector<16x16xf32>
    %690 = arith.truncf %689 : vector<16x16xf32> to vector<16x16xbf16>
    %691 = arith.truncf %672 : vector<16x8xf32> to vector<16x8xbf16>
    %cst_268 = arith.constant dense<0.000000e+00> : vector<16x8xf32>
    %692 = tpu.matmul %690, %691, %cst_268 {dimension_numbers = #tpu.dot_dimension_numbers<[1], [0], [0], [1], [0, 0, 1, 1], [], []>} : vector<16x16xbf16>, vector<16x8xbf16>, vector<16x8xf32> -> vector<16x8xf32>
    %693 = arith.truncf %692 : vector<16x8xf32> to vector<16x8xbf16>
    %c1_269 = arith.constant 1 : index
    %c1_270 = arith.constant 1 : index
    %c0_271 = arith.constant 0 : index
    %c0_272 = arith.constant 0 : index
    %694 = vector.load %arg15[%c1_269, %c1_270, %c0_271, %c0_272] : memref<2x4x8x32xbf16, #tpu.memory_space<vmem>>, vector<1x1x8x32xbf16>
    %695 = vector.shape_cast %694 : vector<1x1x8x32xbf16> to vector<8x32xbf16>
    %cst_273 = arith.constant dense<0.000000e+00> : vector<16x32xf32>
    %696 = tpu.matmul %693, %695, %cst_273 {dimension_numbers = #tpu.dot_dimension_numbers<[1], [0], [0], [1], [0, 0, 1, 1], [], []>} : vector<16x8xbf16>, vector<8x32xbf16>, vector<16x32xf32> -> vector<16x32xf32>
    %697 = arith.addf %669, %696 : vector<16x32xf32>
    %698 = vector.extract_strided_slice %641 {offsets = [0, 16], sizes = [16, 8], strides = [1, 1]} : vector<16x32xf32> to vector<16x8xf32>
    %699 = vector.extract_strided_slice %642 {offsets = [0, 16], sizes = [16, 8], strides = [1, 1]} : vector<16x64xf32> to vector<16x8xf32>
    %700 = vector.extract_strided_slice %642 {offsets = [0, 48], sizes = [16, 8], strides = [1, 1]} : vector<16x64xf32> to vector<16x8xf32>
    %701 = vector.extract_strided_slice %1 {offsets = [2, 0, 0], sizes = [1, 16, 16], strides = [1, 1, 1]} : vector<4x16x16xf32> to vector<1x16x16xf32>
    %702 = vector.shape_cast %701 : vector<1x16x16xf32> to vector<16x16xf32>
    %703 = arith.truncf %698 : vector<16x8xf32> to vector<16x8xbf16>
    %704 = tpu.transpose %699, [1, 0] : vector<16x8xf32> -> vector<8x16xf32>
    %705 = arith.truncf %704 : vector<8x16xf32> to vector<8x16xbf16>
    %cst_274 = arith.constant dense<0.000000e+00> : vector<16x16xf32>
    %706 = tpu.matmul %703, %705, %cst_274 {dimension_numbers = #tpu.dot_dimension_numbers<[1], [0], [0], [1], [0, 0, 1, 1], [], []>} : vector<16x8xbf16>, vector<8x16xbf16>, vector<16x16xf32> -> vector<16x16xf32>
    %707 = arith.addf %706, %702 : vector<16x16xf32>
    %cst_275 = arith.constant dense<0xFF800000> : vector<16xf32>
    %708 = vector.multi_reduction <maximumf>, %707, %cst_275 [1] : vector<16x16xf32> to vector<16xf32>
    %709 = vector.shape_cast %708 : vector<16xf32> to vector<16x1xf32>
    %710 = vector.broadcast %709 : vector<16x1xf32> to vector<16x16xf32>
    %711 = arith.subf %707, %710 : vector<16x16xf32>
    %712 = math.exp %711 : vector<16x16xf32>
    %cst_276 = arith.constant dense<0.000000e+00> : vector<16xf32>
    %713 = vector.multi_reduction <add>, %712, %cst_276 [1] : vector<16x16xf32> to vector<16xf32>
    %714 = vector.shape_cast %713 : vector<16xf32> to vector<16x1xf32>
    %715 = tpu.reciprocal %714 {approx = true} : vector<16x1xf32> -> vector<16x1xf32>
    %716 = vector.broadcast %715 : vector<16x1xf32> to vector<16x16xf32>
    %717 = arith.mulf %712, %716 : vector<16x16xf32>
    %718 = arith.truncf %717 : vector<16x16xf32> to vector<16x16xbf16>
    %719 = arith.truncf %700 : vector<16x8xf32> to vector<16x8xbf16>
    %cst_277 = arith.constant dense<0.000000e+00> : vector<16x8xf32>
    %720 = tpu.matmul %718, %719, %cst_277 {dimension_numbers = #tpu.dot_dimension_numbers<[1], [0], [0], [1], [0, 0, 1, 1], [], []>} : vector<16x16xbf16>, vector<16x8xbf16>, vector<16x8xf32> -> vector<16x8xf32>
    %721 = arith.truncf %720 : vector<16x8xf32> to vector<16x8xbf16>
    %c1_278 = arith.constant 1 : index
    %c2_279 = arith.constant 2 : index
    %c0_280 = arith.constant 0 : index
    %c0_281 = arith.constant 0 : index
    %722 = vector.load %arg15[%c1_278, %c2_279, %c0_280, %c0_281] : memref<2x4x8x32xbf16, #tpu.memory_space<vmem>>, vector<1x1x8x32xbf16>
    %723 = vector.shape_cast %722 : vector<1x1x8x32xbf16> to vector<8x32xbf16>
    %cst_282 = arith.constant dense<0.000000e+00> : vector<16x32xf32>
    %724 = tpu.matmul %721, %723, %cst_282 {dimension_numbers = #tpu.dot_dimension_numbers<[1], [0], [0], [1], [0, 0, 1, 1], [], []>} : vector<16x8xbf16>, vector<8x32xbf16>, vector<16x32xf32> -> vector<16x32xf32>
    %725 = arith.addf %697, %724 : vector<16x32xf32>
    %726 = vector.extract_strided_slice %641 {offsets = [0, 24], sizes = [16, 8], strides = [1, 1]} : vector<16x32xf32> to vector<16x8xf32>
    %727 = vector.extract_strided_slice %642 {offsets = [0, 24], sizes = [16, 8], strides = [1, 1]} : vector<16x64xf32> to vector<16x8xf32>
    %728 = vector.extract_strided_slice %642 {offsets = [0, 56], sizes = [16, 8], strides = [1, 1]} : vector<16x64xf32> to vector<16x8xf32>
    %729 = vector.extract_strided_slice %1 {offsets = [3, 0, 0], sizes = [1, 16, 16], strides = [1, 1, 1]} : vector<4x16x16xf32> to vector<1x16x16xf32>
    %730 = vector.shape_cast %729 : vector<1x16x16xf32> to vector<16x16xf32>
    %731 = arith.truncf %726 : vector<16x8xf32> to vector<16x8xbf16>
    %732 = tpu.transpose %727, [1, 0] : vector<16x8xf32> -> vector<8x16xf32>
    %733 = arith.truncf %732 : vector<8x16xf32> to vector<8x16xbf16>
    %cst_283 = arith.constant dense<0.000000e+00> : vector<16x16xf32>
    %734 = tpu.matmul %731, %733, %cst_283 {dimension_numbers = #tpu.dot_dimension_numbers<[1], [0], [0], [1], [0, 0, 1, 1], [], []>} : vector<16x8xbf16>, vector<8x16xbf16>, vector<16x16xf32> -> vector<16x16xf32>
    %735 = arith.addf %734, %730 : vector<16x16xf32>
    %cst_284 = arith.constant dense<0xFF800000> : vector<16xf32>
    %736 = vector.multi_reduction <maximumf>, %735, %cst_284 [1] : vector<16x16xf32> to vector<16xf32>
    %737 = vector.shape_cast %736 : vector<16xf32> to vector<16x1xf32>
    %738 = vector.broadcast %737 : vector<16x1xf32> to vector<16x16xf32>
    %739 = arith.subf %735, %738 : vector<16x16xf32>
    %740 = math.exp %739 : vector<16x16xf32>
    %cst_285 = arith.constant dense<0.000000e+00> : vector<16xf32>
    %741 = vector.multi_reduction <add>, %740, %cst_285 [1] : vector<16x16xf32> to vector<16xf32>
    %742 = vector.shape_cast %741 : vector<16xf32> to vector<16x1xf32>
    %743 = tpu.reciprocal %742 {approx = true} : vector<16x1xf32> -> vector<16x1xf32>
    %744 = vector.broadcast %743 : vector<16x1xf32> to vector<16x16xf32>
    %745 = arith.mulf %740, %744 : vector<16x16xf32>
    %746 = arith.truncf %745 : vector<16x16xf32> to vector<16x16xbf16>
    %747 = arith.truncf %728 : vector<16x8xf32> to vector<16x8xbf16>
    %cst_286 = arith.constant dense<0.000000e+00> : vector<16x8xf32>
    %748 = tpu.matmul %746, %747, %cst_286 {dimension_numbers = #tpu.dot_dimension_numbers<[1], [0], [0], [1], [0, 0, 1, 1], [], []>} : vector<16x16xbf16>, vector<16x8xbf16>, vector<16x8xf32> -> vector<16x8xf32>
    %749 = arith.truncf %748 : vector<16x8xf32> to vector<16x8xbf16>
    %c1_287 = arith.constant 1 : index
    %c3_288 = arith.constant 3 : index
    %c0_289 = arith.constant 0 : index
    %c0_290 = arith.constant 0 : index
    %750 = vector.load %arg15[%c1_287, %c3_288, %c0_289, %c0_290] : memref<2x4x8x32xbf16, #tpu.memory_space<vmem>>, vector<1x1x8x32xbf16>
    %751 = vector.shape_cast %750 : vector<1x1x8x32xbf16> to vector<8x32xbf16>
    %cst_291 = arith.constant dense<0.000000e+00> : vector<16x32xf32>
    %752 = tpu.matmul %749, %751, %cst_291 {dimension_numbers = #tpu.dot_dimension_numbers<[1], [0], [0], [1], [0, 0, 1, 1], [], []>} : vector<16x8xbf16>, vector<8x32xbf16>, vector<16x32xf32> -> vector<16x32xf32>
    %753 = arith.addf %725, %752 : vector<16x32xf32>
    %754 = arith.addf %622, %753 : vector<16x32xf32>
    %c1_292 = arith.constant 1 : index
    %c0_293 = arith.constant 0 : index
    %c0_294 = arith.constant 0 : index
    %755 = vector.load %arg16[%c1_292, %c0_293, %c0_294] : memref<2x1x32xf32, #tpu.memory_space<vmem>>, vector<1x1x32xf32>
    %756 = vector.shape_cast %755 : vector<1x1x32xf32> to vector<1x32xf32>
    %757 = arith.mulf %754, %754 : vector<16x32xf32>
    %cst_295 = arith.constant dense<0.000000e+00> : vector<16xf32>
    %758 = vector.multi_reduction <add>, %757, %cst_295 [1] : vector<16x32xf32> to vector<16xf32>
    %759 = vector.shape_cast %758 : vector<16xf32> to vector<16x1xf32>
    %cst_296 = arith.constant 3.200000e+01 : f32
    %760 = vector.broadcast %cst_296 : f32 to vector<16x1xf32>
    %761 = arith.divf %759, %760 : vector<16x1xf32>
    %cst_297 = arith.constant 9.99999997E-7 : f32
    %762 = vector.broadcast %cst_297 : f32 to vector<16x1xf32>
    %763 = arith.addf %761, %762 : vector<16x1xf32>
    %764 = math.rsqrt %763 : vector<16x1xf32>
    %765 = vector.broadcast %764 : vector<16x1xf32> to vector<16x32xf32>
    %766 = arith.mulf %754, %765 : vector<16x32xf32>
    %767 = vector.broadcast %756 : vector<1x32xf32> to vector<16x32xf32>
    %768 = arith.mulf %766, %767 : vector<16x32xf32>
    %769 = arith.truncf %768 : vector<16x32xf32> to vector<16x32xbf16>
    %c1_298 = arith.constant 1 : index
    %c0_299 = arith.constant 0 : index
    %c0_300 = arith.constant 0 : index
    %770 = vector.load %arg17[%c1_298, %c0_299, %c0_300] : memref<2x32x32xbf16, #tpu.memory_space<vmem>>, vector<1x32x32xbf16>
    %771 = vector.shape_cast %770 : vector<1x32x32xbf16> to vector<32x32xbf16>
    %cst_301 = arith.constant dense<0.000000e+00> : vector<16x32xf32>
    %772 = tpu.matmul %769, %771, %cst_301 {dimension_numbers = #tpu.dot_dimension_numbers<[1], [0], [0], [1], [0, 0, 1, 1], [], []>} : vector<16x32xbf16>, vector<32x32xbf16>, vector<16x32xf32> -> vector<16x32xf32>
    %c1_302 = arith.constant 1 : index
    %c0_303 = arith.constant 0 : index
    %c0_304 = arith.constant 0 : index
    %773 = vector.load %arg18[%c1_302, %c0_303, %c0_304] : memref<2x32x64xbf16, #tpu.memory_space<vmem>>, vector<1x32x64xbf16>
    %774 = vector.shape_cast %773 : vector<1x32x64xbf16> to vector<32x64xbf16>
    %cst_305 = arith.constant dense<0.000000e+00> : vector<16x64xf32>
    %775 = tpu.matmul %331, %774, %cst_305 {dimension_numbers = #tpu.dot_dimension_numbers<[1], [0], [0], [1], [0, 0, 1, 1], [], []>} : vector<16x32xbf16>, vector<32x64xbf16>, vector<16x64xf32> -> vector<16x64xf32>
    %776 = vector.extract_strided_slice %772 {offsets = [0, 0], sizes = [16, 8], strides = [1, 1]} : vector<16x32xf32> to vector<16x8xf32>
    %777 = vector.extract_strided_slice %775 {offsets = [0, 0], sizes = [16, 8], strides = [1, 1]} : vector<16x64xf32> to vector<16x8xf32>
    %778 = vector.extract_strided_slice %775 {offsets = [0, 32], sizes = [16, 8], strides = [1, 1]} : vector<16x64xf32> to vector<16x8xf32>
    %779 = vector.extract_strided_slice %2 {offsets = [0, 0, 0], sizes = [1, 16, 16], strides = [1, 1, 1]} : vector<4x16x16xf32> to vector<1x16x16xf32>
    %780 = vector.shape_cast %779 : vector<1x16x16xf32> to vector<16x16xf32>
    %781 = arith.truncf %776 : vector<16x8xf32> to vector<16x8xbf16>
    %782 = tpu.transpose %777, [1, 0] : vector<16x8xf32> -> vector<8x16xf32>
    %783 = arith.truncf %782 : vector<8x16xf32> to vector<8x16xbf16>
    %cst_306 = arith.constant dense<0.000000e+00> : vector<16x16xf32>
    %784 = tpu.matmul %781, %783, %cst_306 {dimension_numbers = #tpu.dot_dimension_numbers<[1], [0], [0], [1], [0, 0, 1, 1], [], []>} : vector<16x8xbf16>, vector<8x16xbf16>, vector<16x16xf32> -> vector<16x16xf32>
    %785 = arith.addf %784, %780 : vector<16x16xf32>
    %cst_307 = arith.constant dense<0xFF800000> : vector<16xf32>
    %786 = vector.multi_reduction <maximumf>, %785, %cst_307 [1] : vector<16x16xf32> to vector<16xf32>
    %787 = vector.shape_cast %786 : vector<16xf32> to vector<16x1xf32>
    %788 = vector.broadcast %787 : vector<16x1xf32> to vector<16x16xf32>
    %789 = arith.subf %785, %788 : vector<16x16xf32>
    %790 = math.exp %789 : vector<16x16xf32>
    %cst_308 = arith.constant dense<0.000000e+00> : vector<16xf32>
    %791 = vector.multi_reduction <add>, %790, %cst_308 [1] : vector<16x16xf32> to vector<16xf32>
    %792 = vector.shape_cast %791 : vector<16xf32> to vector<16x1xf32>
    %793 = tpu.reciprocal %792 {approx = true} : vector<16x1xf32> -> vector<16x1xf32>
    %794 = vector.broadcast %793 : vector<16x1xf32> to vector<16x16xf32>
    %795 = arith.mulf %790, %794 : vector<16x16xf32>
    %796 = arith.truncf %795 : vector<16x16xf32> to vector<16x16xbf16>
    %797 = arith.truncf %778 : vector<16x8xf32> to vector<16x8xbf16>
    %cst_309 = arith.constant dense<0.000000e+00> : vector<16x8xf32>
    %798 = tpu.matmul %796, %797, %cst_309 {dimension_numbers = #tpu.dot_dimension_numbers<[1], [0], [0], [1], [0, 0, 1, 1], [], []>} : vector<16x16xbf16>, vector<16x8xbf16>, vector<16x8xf32> -> vector<16x8xf32>
    %799 = arith.truncf %798 : vector<16x8xf32> to vector<16x8xbf16>
    %c1_310 = arith.constant 1 : index
    %c0_311 = arith.constant 0 : index
    %c0_312 = arith.constant 0 : index
    %c0_313 = arith.constant 0 : index
    %800 = vector.load %arg19[%c1_310, %c0_311, %c0_312, %c0_313] : memref<2x4x8x32xbf16, #tpu.memory_space<vmem>>, vector<1x1x8x32xbf16>
    %801 = vector.shape_cast %800 : vector<1x1x8x32xbf16> to vector<8x32xbf16>
    %cst_314 = arith.constant dense<0.000000e+00> : vector<16x32xf32>
    %802 = tpu.matmul %799, %801, %cst_314 {dimension_numbers = #tpu.dot_dimension_numbers<[1], [0], [0], [1], [0, 0, 1, 1], [], []>} : vector<16x8xbf16>, vector<8x32xbf16>, vector<16x32xf32> -> vector<16x32xf32>
    %803 = vector.extract_strided_slice %772 {offsets = [0, 8], sizes = [16, 8], strides = [1, 1]} : vector<16x32xf32> to vector<16x8xf32>
    %804 = vector.extract_strided_slice %775 {offsets = [0, 8], sizes = [16, 8], strides = [1, 1]} : vector<16x64xf32> to vector<16x8xf32>
    %805 = vector.extract_strided_slice %775 {offsets = [0, 40], sizes = [16, 8], strides = [1, 1]} : vector<16x64xf32> to vector<16x8xf32>
    %806 = vector.extract_strided_slice %2 {offsets = [1, 0, 0], sizes = [1, 16, 16], strides = [1, 1, 1]} : vector<4x16x16xf32> to vector<1x16x16xf32>
    %807 = vector.shape_cast %806 : vector<1x16x16xf32> to vector<16x16xf32>
    %808 = arith.truncf %803 : vector<16x8xf32> to vector<16x8xbf16>
    %809 = tpu.transpose %804, [1, 0] : vector<16x8xf32> -> vector<8x16xf32>
    %810 = arith.truncf %809 : vector<8x16xf32> to vector<8x16xbf16>
    %cst_315 = arith.constant dense<0.000000e+00> : vector<16x16xf32>
    %811 = tpu.matmul %808, %810, %cst_315 {dimension_numbers = #tpu.dot_dimension_numbers<[1], [0], [0], [1], [0, 0, 1, 1], [], []>} : vector<16x8xbf16>, vector<8x16xbf16>, vector<16x16xf32> -> vector<16x16xf32>
    %812 = arith.addf %811, %807 : vector<16x16xf32>
    %cst_316 = arith.constant dense<0xFF800000> : vector<16xf32>
    %813 = vector.multi_reduction <maximumf>, %812, %cst_316 [1] : vector<16x16xf32> to vector<16xf32>
    %814 = vector.shape_cast %813 : vector<16xf32> to vector<16x1xf32>
    %815 = vector.broadcast %814 : vector<16x1xf32> to vector<16x16xf32>
    %816 = arith.subf %812, %815 : vector<16x16xf32>
    %817 = math.exp %816 : vector<16x16xf32>
    %cst_317 = arith.constant dense<0.000000e+00> : vector<16xf32>
    %818 = vector.multi_reduction <add>, %817, %cst_317 [1] : vector<16x16xf32> to vector<16xf32>
    %819 = vector.shape_cast %818 : vector<16xf32> to vector<16x1xf32>
    %820 = tpu.reciprocal %819 {approx = true} : vector<16x1xf32> -> vector<16x1xf32>
    %821 = vector.broadcast %820 : vector<16x1xf32> to vector<16x16xf32>
    %822 = arith.mulf %817, %821 : vector<16x16xf32>
    %823 = arith.truncf %822 : vector<16x16xf32> to vector<16x16xbf16>
    %824 = arith.truncf %805 : vector<16x8xf32> to vector<16x8xbf16>
    %cst_318 = arith.constant dense<0.000000e+00> : vector<16x8xf32>
    %825 = tpu.matmul %823, %824, %cst_318 {dimension_numbers = #tpu.dot_dimension_numbers<[1], [0], [0], [1], [0, 0, 1, 1], [], []>} : vector<16x16xbf16>, vector<16x8xbf16>, vector<16x8xf32> -> vector<16x8xf32>
    %826 = arith.truncf %825 : vector<16x8xf32> to vector<16x8xbf16>
    %c1_319 = arith.constant 1 : index
    %c1_320 = arith.constant 1 : index
    %c0_321 = arith.constant 0 : index
    %c0_322 = arith.constant 0 : index
    %827 = vector.load %arg19[%c1_319, %c1_320, %c0_321, %c0_322] : memref<2x4x8x32xbf16, #tpu.memory_space<vmem>>, vector<1x1x8x32xbf16>
    %828 = vector.shape_cast %827 : vector<1x1x8x32xbf16> to vector<8x32xbf16>
    %cst_323 = arith.constant dense<0.000000e+00> : vector<16x32xf32>
    %829 = tpu.matmul %826, %828, %cst_323 {dimension_numbers = #tpu.dot_dimension_numbers<[1], [0], [0], [1], [0, 0, 1, 1], [], []>} : vector<16x8xbf16>, vector<8x32xbf16>, vector<16x32xf32> -> vector<16x32xf32>
    %830 = arith.addf %802, %829 : vector<16x32xf32>
    %831 = vector.extract_strided_slice %772 {offsets = [0, 16], sizes = [16, 8], strides = [1, 1]} : vector<16x32xf32> to vector<16x8xf32>
    %832 = vector.extract_strided_slice %775 {offsets = [0, 16], sizes = [16, 8], strides = [1, 1]} : vector<16x64xf32> to vector<16x8xf32>
    %833 = vector.extract_strided_slice %775 {offsets = [0, 48], sizes = [16, 8], strides = [1, 1]} : vector<16x64xf32> to vector<16x8xf32>
    %834 = vector.extract_strided_slice %2 {offsets = [2, 0, 0], sizes = [1, 16, 16], strides = [1, 1, 1]} : vector<4x16x16xf32> to vector<1x16x16xf32>
    %835 = vector.shape_cast %834 : vector<1x16x16xf32> to vector<16x16xf32>
    %836 = arith.truncf %831 : vector<16x8xf32> to vector<16x8xbf16>
    %837 = tpu.transpose %832, [1, 0] : vector<16x8xf32> -> vector<8x16xf32>
    %838 = arith.truncf %837 : vector<8x16xf32> to vector<8x16xbf16>
    %cst_324 = arith.constant dense<0.000000e+00> : vector<16x16xf32>
    %839 = tpu.matmul %836, %838, %cst_324 {dimension_numbers = #tpu.dot_dimension_numbers<[1], [0], [0], [1], [0, 0, 1, 1], [], []>} : vector<16x8xbf16>, vector<8x16xbf16>, vector<16x16xf32> -> vector<16x16xf32>
    %840 = arith.addf %839, %835 : vector<16x16xf32>
    %cst_325 = arith.constant dense<0xFF800000> : vector<16xf32>
    %841 = vector.multi_reduction <maximumf>, %840, %cst_325 [1] : vector<16x16xf32> to vector<16xf32>
    %842 = vector.shape_cast %841 : vector<16xf32> to vector<16x1xf32>
    %843 = vector.broadcast %842 : vector<16x1xf32> to vector<16x16xf32>
    %844 = arith.subf %840, %843 : vector<16x16xf32>
    %845 = math.exp %844 : vector<16x16xf32>
    %cst_326 = arith.constant dense<0.000000e+00> : vector<16xf32>
    %846 = vector.multi_reduction <add>, %845, %cst_326 [1] : vector<16x16xf32> to vector<16xf32>
    %847 = vector.shape_cast %846 : vector<16xf32> to vector<16x1xf32>
    %848 = tpu.reciprocal %847 {approx = true} : vector<16x1xf32> -> vector<16x1xf32>
    %849 = vector.broadcast %848 : vector<16x1xf32> to vector<16x16xf32>
    %850 = arith.mulf %845, %849 : vector<16x16xf32>
    %851 = arith.truncf %850 : vector<16x16xf32> to vector<16x16xbf16>
    %852 = arith.truncf %833 : vector<16x8xf32> to vector<16x8xbf16>
    %cst_327 = arith.constant dense<0.000000e+00> : vector<16x8xf32>
    %853 = tpu.matmul %851, %852, %cst_327 {dimension_numbers = #tpu.dot_dimension_numbers<[1], [0], [0], [1], [0, 0, 1, 1], [], []>} : vector<16x16xbf16>, vector<16x8xbf16>, vector<16x8xf32> -> vector<16x8xf32>
    %854 = arith.truncf %853 : vector<16x8xf32> to vector<16x8xbf16>
    %c1_328 = arith.constant 1 : index
    %c2_329 = arith.constant 2 : index
    %c0_330 = arith.constant 0 : index
    %c0_331 = arith.constant 0 : index
    %855 = vector.load %arg19[%c1_328, %c2_329, %c0_330, %c0_331] : memref<2x4x8x32xbf16, #tpu.memory_space<vmem>>, vector<1x1x8x32xbf16>
    %856 = vector.shape_cast %855 : vector<1x1x8x32xbf16> to vector<8x32xbf16>
    %cst_332 = arith.constant dense<0.000000e+00> : vector<16x32xf32>
    %857 = tpu.matmul %854, %856, %cst_332 {dimension_numbers = #tpu.dot_dimension_numbers<[1], [0], [0], [1], [0, 0, 1, 1], [], []>} : vector<16x8xbf16>, vector<8x32xbf16>, vector<16x32xf32> -> vector<16x32xf32>
    %858 = arith.addf %830, %857 : vector<16x32xf32>
    %859 = vector.extract_strided_slice %772 {offsets = [0, 24], sizes = [16, 8], strides = [1, 1]} : vector<16x32xf32> to vector<16x8xf32>
    %860 = vector.extract_strided_slice %775 {offsets = [0, 24], sizes = [16, 8], strides = [1, 1]} : vector<16x64xf32> to vector<16x8xf32>
    %861 = vector.extract_strided_slice %775 {offsets = [0, 56], sizes = [16, 8], strides = [1, 1]} : vector<16x64xf32> to vector<16x8xf32>
    %862 = vector.extract_strided_slice %2 {offsets = [3, 0, 0], sizes = [1, 16, 16], strides = [1, 1, 1]} : vector<4x16x16xf32> to vector<1x16x16xf32>
    %863 = vector.shape_cast %862 : vector<1x16x16xf32> to vector<16x16xf32>
    %864 = arith.truncf %859 : vector<16x8xf32> to vector<16x8xbf16>
    %865 = tpu.transpose %860, [1, 0] : vector<16x8xf32> -> vector<8x16xf32>
    %866 = arith.truncf %865 : vector<8x16xf32> to vector<8x16xbf16>
    %cst_333 = arith.constant dense<0.000000e+00> : vector<16x16xf32>
    %867 = tpu.matmul %864, %866, %cst_333 {dimension_numbers = #tpu.dot_dimension_numbers<[1], [0], [0], [1], [0, 0, 1, 1], [], []>} : vector<16x8xbf16>, vector<8x16xbf16>, vector<16x16xf32> -> vector<16x16xf32>
    %868 = arith.addf %867, %863 : vector<16x16xf32>
    %cst_334 = arith.constant dense<0xFF800000> : vector<16xf32>
    %869 = vector.multi_reduction <maximumf>, %868, %cst_334 [1] : vector<16x16xf32> to vector<16xf32>
    %870 = vector.shape_cast %869 : vector<16xf32> to vector<16x1xf32>
    %871 = vector.broadcast %870 : vector<16x1xf32> to vector<16x16xf32>
    %872 = arith.subf %868, %871 : vector<16x16xf32>
    %873 = math.exp %872 : vector<16x16xf32>
    %cst_335 = arith.constant dense<0.000000e+00> : vector<16xf32>
    %874 = vector.multi_reduction <add>, %873, %cst_335 [1] : vector<16x16xf32> to vector<16xf32>
    %875 = vector.shape_cast %874 : vector<16xf32> to vector<16x1xf32>
    %876 = tpu.reciprocal %875 {approx = true} : vector<16x1xf32> -> vector<16x1xf32>
    %877 = vector.broadcast %876 : vector<16x1xf32> to vector<16x16xf32>
    %878 = arith.mulf %873, %877 : vector<16x16xf32>
    %879 = arith.truncf %878 : vector<16x16xf32> to vector<16x16xbf16>
    %880 = arith.truncf %861 : vector<16x8xf32> to vector<16x8xbf16>
    %cst_336 = arith.constant dense<0.000000e+00> : vector<16x8xf32>
    %881 = tpu.matmul %879, %880, %cst_336 {dimension_numbers = #tpu.dot_dimension_numbers<[1], [0], [0], [1], [0, 0, 1, 1], [], []>} : vector<16x16xbf16>, vector<16x8xbf16>, vector<16x8xf32> -> vector<16x8xf32>
    %882 = arith.truncf %881 : vector<16x8xf32> to vector<16x8xbf16>
    %c1_337 = arith.constant 1 : index
    %c3_338 = arith.constant 3 : index
    %c0_339 = arith.constant 0 : index
    %c0_340 = arith.constant 0 : index
    %883 = vector.load %arg19[%c1_337, %c3_338, %c0_339, %c0_340] : memref<2x4x8x32xbf16, #tpu.memory_space<vmem>>, vector<1x1x8x32xbf16>
    %884 = vector.shape_cast %883 : vector<1x1x8x32xbf16> to vector<8x32xbf16>
    %cst_341 = arith.constant dense<0.000000e+00> : vector<16x32xf32>
    %885 = tpu.matmul %882, %884, %cst_341 {dimension_numbers = #tpu.dot_dimension_numbers<[1], [0], [0], [1], [0, 0, 1, 1], [], []>} : vector<16x8xbf16>, vector<8x32xbf16>, vector<16x32xf32> -> vector<16x32xf32>
    %886 = arith.addf %858, %885 : vector<16x32xf32>
    %887 = arith.addf %754, %886 : vector<16x32xf32>
    %c1_342 = arith.constant 1 : index
    %c0_343 = arith.constant 0 : index
    %c0_344 = arith.constant 0 : index
    %888 = vector.load %arg20[%c1_342, %c0_343, %c0_344] : memref<2x1x32xf32, #tpu.memory_space<vmem>>, vector<1x1x32xf32>
    %889 = vector.shape_cast %888 : vector<1x1x32xf32> to vector<1x32xf32>
    %890 = arith.mulf %887, %887 : vector<16x32xf32>
    %cst_345 = arith.constant dense<0.000000e+00> : vector<16xf32>
    %891 = vector.multi_reduction <add>, %890, %cst_345 [1] : vector<16x32xf32> to vector<16xf32>
    %892 = vector.shape_cast %891 : vector<16xf32> to vector<16x1xf32>
    %cst_346 = arith.constant 3.200000e+01 : f32
    %893 = vector.broadcast %cst_346 : f32 to vector<16x1xf32>
    %894 = arith.divf %892, %893 : vector<16x1xf32>
    %cst_347 = arith.constant 9.99999997E-7 : f32
    %895 = vector.broadcast %cst_347 : f32 to vector<16x1xf32>
    %896 = arith.addf %894, %895 : vector<16x1xf32>
    %897 = math.rsqrt %896 : vector<16x1xf32>
    %898 = vector.broadcast %897 : vector<16x1xf32> to vector<16x32xf32>
    %899 = arith.mulf %887, %898 : vector<16x32xf32>
    %900 = vector.broadcast %889 : vector<1x32xf32> to vector<16x32xf32>
    %901 = arith.mulf %899, %900 : vector<16x32xf32>
    %902 = arith.truncf %901 : vector<16x32xf32> to vector<16x32xbf16>
    %c1_348 = arith.constant 1 : index
    %c0_349 = arith.constant 0 : index
    %c0_350 = arith.constant 0 : index
    %903 = vector.load %arg21[%c1_348, %c0_349, %c0_350] : memref<2x32x64xbf16, #tpu.memory_space<vmem>>, vector<1x32x64xbf16>
    %904 = vector.shape_cast %903 : vector<1x32x64xbf16> to vector<32x64xbf16>
    %cst_351 = arith.constant dense<0.000000e+00> : vector<16x64xf32>
    %905 = tpu.matmul %902, %904, %cst_351 {dimension_numbers = #tpu.dot_dimension_numbers<[1], [0], [0], [1], [0, 0, 1, 1], [], []>} : vector<16x32xbf16>, vector<32x64xbf16>, vector<16x64xf32> -> vector<16x64xf32>
    %cst_352 = arith.constant 0.000000e+00 : f32
    %906 = vector.broadcast %cst_352 : f32 to vector<16x64xf32>
    %907 = arith.maximumf %905, %906 : vector<16x64xf32>
    %908 = arith.truncf %907 : vector<16x64xf32> to vector<16x64xbf16>
    %c1_353 = arith.constant 1 : index
    %c0_354 = arith.constant 0 : index
    %c0_355 = arith.constant 0 : index
    %909 = vector.load %arg22[%c1_353, %c0_354, %c0_355] : memref<2x64x32xbf16, #tpu.memory_space<vmem>>, vector<1x64x32xbf16>
    %910 = vector.shape_cast %909 : vector<1x64x32xbf16> to vector<64x32xbf16>
    %cst_356 = arith.constant dense<0.000000e+00> : vector<16x32xf32>
    %911 = tpu.matmul %908, %910, %cst_356 {dimension_numbers = #tpu.dot_dimension_numbers<[1], [0], [0], [1], [0, 0, 1, 1], [], []>} : vector<16x64xbf16>, vector<64x32xbf16>, vector<16x32xf32> -> vector<16x32xf32>
    %912 = arith.addf %887, %911 : vector<16x32xf32>
    %c0_357 = arith.constant 0 : index
    %c0_358 = arith.constant 0 : index
    %913 = vector.load %arg23[%c0_357, %c0_358] : memref<1x32xf32, #tpu.memory_space<vmem>>, vector<1x32xf32>
    %914 = arith.mulf %912, %912 : vector<16x32xf32>
    %cst_359 = arith.constant dense<0.000000e+00> : vector<16xf32>
    %915 = vector.multi_reduction <add>, %914, %cst_359 [1] : vector<16x32xf32> to vector<16xf32>
    %916 = vector.shape_cast %915 : vector<16xf32> to vector<16x1xf32>
    %cst_360 = arith.constant 3.200000e+01 : f32
    %917 = vector.broadcast %cst_360 : f32 to vector<16x1xf32>
    %918 = arith.divf %916, %917 : vector<16x1xf32>
    %cst_361 = arith.constant 9.99999997E-7 : f32
    %919 = vector.broadcast %cst_361 : f32 to vector<16x1xf32>
    %920 = arith.addf %918, %919 : vector<16x1xf32>
    %921 = math.rsqrt %920 : vector<16x1xf32>
    %922 = vector.broadcast %921 : vector<16x1xf32> to vector<16x32xf32>
    %923 = arith.mulf %912, %922 : vector<16x32xf32>
    %924 = vector.broadcast %913 : vector<1x32xf32> to vector<16x32xf32>
    %925 = arith.mulf %923, %924 : vector<16x32xf32>
    %926 = arith.truncf %925 : vector<16x32xf32> to vector<16x32xbf16>
    %c0_362 = arith.constant 0 : index
    %c0_363 = arith.constant 0 : index
    %927 = vector.load %arg24[%c0_362, %c0_363] : memref<32x64xbf16, #tpu.memory_space<vmem>>, vector<32x64xbf16>
    %cst_364 = arith.constant dense<0.000000e+00> : vector<16x64xf32>
    %928 = tpu.matmul %926, %927, %cst_364 {dimension_numbers = #tpu.dot_dimension_numbers<[1], [0], [0], [1], [0, 0, 1, 1], [], []>} : vector<16x32xbf16>, vector<32x64xbf16>, vector<16x64xf32> -> vector<16x64xf32>
    %c0_365 = arith.constant 0 : index
    %c0_366 = arith.constant 0 : index
    %929 = vector.load %arg26[%c0_365, %c0_366] : memref<16x64xf32, #tpu.memory_space<vmem>>, vector<16x64xf32>
    tpu.vector_store %arg26[%c0_365, %c0_366], %928 {strides = array<i32>} : memref<16x64xf32, #tpu.memory_space<vmem>>, vector<16x64xf32>,
    %c0_367 = arith.constant 0 : index
    %c0_368 = arith.constant 0 : index
    %930 = vector.load %arg5[%c0_367, %c0_368] : memref<16x1xi32, #tpu.memory_space<vmem>>, vector<16x1xi32>
    %cst_369 = arith.constant dense<0xFF800000> : vector<16xf32>
    %931 = vector.multi_reduction <maximumf>, %928, %cst_369 [1] : vector<16x64xf32> to vector<16xf32>
    %932 = vector.shape_cast %931 : vector<16xf32> to vector<16x1xf32>
    %933 = vector.broadcast %932 : vector<16x1xf32> to vector<16x64xf32>
    %934 = arith.subf %928, %933 : vector<16x64xf32>
    %935 = math.exp %934 : vector<16x64xf32>
    %cst_370 = arith.constant dense<0.000000e+00> : vector<16xf32>
    %936 = vector.multi_reduction <add>, %935, %cst_370 [1] : vector<16x64xf32> to vector<16xf32>
    %937 = vector.shape_cast %936 : vector<16xf32> to vector<16x1xf32>
    %938 = math.log %937 : vector<16x1xf32>
    %939 = arith.addf %938, %932 : vector<16x1xf32>
    %940 = tpu.iota {dimensions = array<i32: 1>} : vector<16x64xi32>
    %941 = vector.broadcast %930 : vector<16x1xi32> to vector<16x64xi32>
    %942 = arith.cmpi eq, %940, %941 : vector<16x64xi32>
    %943 = arith.extui %942 : vector<16x64xi1> to vector<16x64xi32>
    %944 = arith.sitofp %943 : vector<16x64xi32> to vector<16x64xf32>
    %945 = arith.mulf %944, %928 : vector<16x64xf32>
    %cst_371 = arith.constant dense<0.000000e+00> : vector<16xf32>
    %946 = vector.multi_reduction <add>, %945, %cst_371 [1] : vector<16x64xf32> to vector<16xf32>
    %947 = vector.shape_cast %946 : vector<16xf32> to vector<16x1xf32>
    %c-100_i32 = arith.constant -100 : i32
    %948 = vector.broadcast %c-100_i32 : i32 to vector<16x1xi32>
    %949 = arith.cmpi ne, %930, %948 : vector<16x1xi32>
    %950 = arith.extui %949 : vector<16x1xi1> to vector<16x1xi32>
    %951 = arith.sitofp %950 : vector<16x1xi32> to vector<16x1xf32>
    %952 = arith.subf %939, %947 : vector<16x1xf32>
    %953 = arith.mulf %952, %951 : vector<16x1xf32>
    %954 = vector.shape_cast %953 : vector<16x1xf32> to vector<1x16x1xf32>
    %cst_372 = arith.constant dense<0.000000e+00> : vector<1xf32>
    %955 = vector.multi_reduction <add>, %954, %cst_372 [1, 2] : vector<1x16x1xf32> to vector<1xf32>
    %956 = vector.shape_cast %955 : vector<1xf32> to vector<1x1x1xf32>
    %957 = vector.extract %956[0, 0, 0] : f32 from vector<1x1x1xf32>
    %958 = vector.shape_cast %951 : vector<16x1xf32> to vector<1x16x1xf32>
    %cst_373 = arith.constant dense<0.000000e+00> : vector<1xf32>
    %959 = vector.multi_reduction <add>, %958, %cst_373 [1, 2] : vector<1x16x1xf32> to vector<1xf32>
    %960 = vector.shape_cast %959 : vector<1xf32> to vector<1x1x1xf32>
    %961 = vector.extract %960[0, 0, 0] : f32 from vector<1x1x1xf32>
    %cst_374 = arith.constant 1.000000e+00 : f32
    %962 = arith.maximumf %961, %cst_374 : f32
    %963 = arith.divf %957, %962 : f32
    %964 = vector.broadcast %963 : f32 to vector<1x1xf32>
    %c0_375 = arith.constant 0 : index
    %c0_376 = arith.constant 0 : index
    %965 = vector.load %arg25[%c0_375, %c0_376] : memref<1x1xf32, #tpu.memory_space<vmem>>, vector<1x1xf32>
    tpu.vector_store %arg25[%c0_375, %c0_376], %964 {strides = array<i32>} : memref<1x1xf32, #tpu.memory_space<vmem>>, vector<1x1xf32>,
    return
  }
}

</mosaic_0001>

<bundles_post_ra>
// kernel: t5_forward.1
= control target key start
LH: loop header
LB: loop body
LE: loop exit
PB: predicated region body
PF: predicated region fallthrough
CT: control target
= control target key end

     0   :  { %s6541_s0 = inlined_call_operand.vmem [shape: f32[16,32], index: 0, kind: input, shape index: {}]   ;;  %s6542_s1 = inlined_call_operand.vmem [shape: f32[16,32], index: 1, kind: input, shape index: {}]   ;;  %s6543_s2 = inlined_call_operand.vmem [shape: f32[4,16,16], index: 2, kind: input, shape index: {}]   ;;  %s6544_s3 = inlined_call_operand.vmem [shape: f32[4,16,16], index: 3, kind: input, shape index: {}]   ;;  %s6545_s4 = inlined_call_operand.vmem [shape: f32[4,16,16], index: 4, kind: input, shape index: {}]   ;;  %s6546_s5 = inlined_call_operand.vmem [shape: s32[16,1], index: 5, kind: input, shape index: {}]   ;;  %s6547_s6 = inlined_call_operand.vmem [shape: f32[2,1,32], index: 6, kind: input, shape index: {}]   ;;  %s6548_s7 = inlined_call_operand.vmem [shape: bf16[2,32,96], index: 7, kind: input, shape index: {}]   ;;  %s6549_s8 = inlined_call_operand.vmem [shape: bf16[2,4,8,32], index: 8, kind: input, shape index: {}]   ;;  %s6550_s9 = inlined_call_operand.vmem [shape: f32[2,1,32], index: 9, kind: input, shape index: {}]   ;;  %s6551_s10 = inlined_call_operand.vmem [shape: bf16[2,32,64], index: 10, kind: input, shape index: {}]   ;;  %s6552_s11 = inlined_call_operand.vmem [shape: bf16[2,64,32], index: 11, kind: input, shape index: {}]   ;;  %s6553_s12 = inlined_call_operand.vmem [shape: f32[1,32], index: 12, kind: input, shape index: {}]   ;;  %s6554_s13 = inlined_call_operand.vmem [shape: f32[2,1,32], index: 13, kind: input, shape index: {}]   ;;  %s6555_s14 = inlined_call_operand.vmem [shape: bf16[2,32,96], index: 14, kind: input, shape index: {}]   ;;  %s6556_s15 = inlined_call_operand.vmem [shape: bf16[2,4,8,32], index: 15, kind: input, shape index: {}]   ;;  %s6557_s16 = inlined_call_operand.vmem [shape: f32[2,1,32], index: 16, kind: input, shape index: {}]   ;;  %s6558_s17 = inlined_call_operand.vmem [shape: bf16[2,32,32], index: 17, kind: input, shape index: {}]   ;;  %s6559_s18 = inlined_call_operand.vmem [shape: bf16[2,32,64], index: 18, kind: input, shape index: {}]   ;;  %s6560_s19 = inlined_call_operand.vmem [shape: bf16[2,4,8,32], index: 19, kind: input, shape index: {}]   ;;  %s6561_s20 = inlined_call_operand.vmem [shape: f32[2,1,32], index: 20, kind: input, shape index: {}]   ;;  %s6562_s21 = inlined_call_operand.vmem [shape: bf16[2,32,64], index: 21, kind: input, shape index: {}]   ;;  %s6563_s22 = inlined_call_operand.vmem [shape: bf16[2,64,32], index: 22, kind: input, shape index: {}]   ;;  %s6564_s23 = inlined_call_operand.vmem [shape: f32[1,32], index: 23, kind: input, shape index: {}]   ;;  %s6565_s24 = inlined_call_operand.vmem [shape: bf16[32,64], index: 24, kind: input, shape index: {}]   ;;  %s6566_s25 = inlined_call_operand.hbm [shape: f32[1,1], index: 25, kind: output, shape index: {0}]   ;;  %s6567_s26 = inlined_call_operand.hbm [shape: f32[16,64], index: 26, kind: output, shape index: {1}]  }
   0x1   :  { %6601 = sst [smem:[#allocation8_spill]] %s6541_s0 }
   0x2   :  { %6602 = sst [smem:[#allocation9_spill]] %s6542_s1 }
   0x3   :  { %6603 = sst [smem:[#allocation10_spill]] %s6543_s2 }
   0x4   :  { %6604 = sst [smem:[#allocation11_spill]] %s6544_s3 }
   0x5   :  { %6605 = sst [smem:[#allocation12_spill]] %s6545_s4 }
   0x6   :  { %6606 = sst [smem:[#allocation13_spill]] %s6546_s5 }
   0x7   :  { %6607 = sst [smem:[#allocation14_spill]] %s6547_s6 }
   0x8   :  { %6608 = sst [smem:[#allocation15_spill]] %s6548_s7 }
   0x9   :  { %6609 = sst [smem:[#allocation16_spill]] %s6549_s8 }
   0xa   :  { %6610 = sst [smem:[#allocation17_spill]] %s6550_s9 }
   0xb   :  { %6611 = sst [smem:[#allocation18_spill]] %s6551_s10 }
   0xc   :  { %6612 = sst [smem:[#allocation19_spill]] %s6564_s23 }
   0xd   :  { %6613 = sst [smem:[#allocation20_spill]] %s6566_s25 }
   0xe   :  { %6614 = sst [smem:[#allocation21_spill]] %s6567_s26 }
   0xf   :  { %32 = vsyncpa [#allocation3], 0  ;;  %s6615_s7 = sld [smem:[#allocation8_spill]]  ;;  %vm114_vm0 = vcmask 261120  }
  0x15   :  { %v5490_v0 = vld [vmem:[%s6615_s7] sm:$0xff]  ;;  %v5495_v1 = vld [vmem:[%s6615_s7 + $0x8] sm:$0xff] }
  0x16   :  { %v112_v2 = vmul.f32 %v5490_v0, %v5490_v0  ;;  %v113_v4 = vmul.f32 %v5495_v1, %v5495_v1 }
  0x18   :  { %v115_v3 = vsel %vm114_vm0, %v112_v2, 0.0 }
  0x19   :  { %116 = vadd.xlane.f32.xlu0 %v115_v3 }
  0x1a   :  { %33 = vsyncpa [#allocation5], 0  ;;  %v118_v5 = vsel %vm114_vm0, %v113_v4, 0.0  ;;  %v5333_v6 = vmov 32.0   ;;  %s6616_s0 = sld [smem:[#allocation15_spill]]  ;;  %s6597_s6 = smov 96  }
  0x1b   :  { %5011 = vrcp.f32 %v5333_v6  ;;  %s6617_s10 = sld [smem:[#allocation14_spill]]  ;;  %vm239_vm8 = vcmask 1043456   ;;  %vm235_vm9 = vcmask 64512   ;;  %vm257_vm10 = vcmask 130048   ;;  %s6579_s8 = smov 120  }
  0x1c   :  { %s6618_s3 = sld [smem:[#allocation10_spill]]  ;;  %s6589_s4 = smov 112  }
  0x1d   :  { %s6587_s29 = smov 104   ;;  %s6599_s9 = smov 64  }
  0x1e   :  { %s6595_s30 = smov 88   ;;  %s6591_s2 = smov 80  }
  0x1f   :  { %s6593_s5 = smov 72   ;;  %s6619_s7 = sld [smem:[#allocation16_spill]] }
  0x20   :  { %v4825_v12 = vld [vmem:[%s6616_s0 + $0x8] sm:$0xff]  ;;  %v4824_v14 = vld [vmem:[%s6616_s0] sm:$0xff]  ;;  %s6581_s28 = smov 48   ;;  %s6585_s1 = smov 40  }
  0x21   :  { %119 = vadd.xlane.f32.xlu0 %v118_v5  ;;  %v5012_v7 = vpop.eup %5011  ;;  %185 = vmatpush.bf16.msra.mxu0 %v4825_v12  ;;  %v4999_v35 = vld [vmem:[%s6617_s10] ss:$0 sm:$0xff]  ;;  %s6625_s27 = smov 120   ;;  %s5349_s26 = smov 8  }
  0x22   :  { %v122_v8 = vmul.f32 32.0, %v5012_v7  ;;  %vm126_vm1 = vweird.f32 %v5012_v7  ;;  %v5529_v49 = vld [vmem:[%s6618_s3] sm:$0xff]  ;;  %v5536_v53 = vld [vmem:[%s6618_s3 + $0x8] sm:$0xff] }
  0x24   :  { %v123_v9 = vsub.f32 1.0, %v122_v8 }
  0x25   :  { %186 = vmatpush.bf16.msra.mxu0 %v4824_v14 }
  0x26   :  { %v124_v10 = vmul.f32 %v5012_v7, %v123_v9 }
  0x28   :  { %v125_v11 = vadd.f32 %v5012_v7, %v124_v10 }
  0x2a   :  { %v5506_v13 = vsel %vm126_vm1, %v5012_v7, %v125_v11 }
  0x8c   :  { %v117_v15 = vpop.xlane.xlu0 %116 }
  0x8d   :  { %v128_v16 = vmul.f32 %v5506_v13, %v117_v15 }
  0x8f   :  { %v130_v17 = vadd.f32 1e-06, %v128_v16 }
  0x91   :  { %5013 = vrsqrt.f32 %v130_v17  ;;  %vm138_vm3 = vweird.f32 %v130_v17 }
  0x94   :  { %v120_v18 = vpop.xlane.xlu0 %119 }
  0x95   :  { %v129_v19 = vmul.f32 %v5506_v13, %v120_v18 }
  0x97   :  { %v5014_v20 = vpop.eup %5013  ;;  %v131_v21 = vadd.f32 1e-06, %v129_v19 }
  0x98   :  { %v133_v22 = vmul.f32 %v5014_v20, %v130_v17  ;;  %vm139_vm2 = vweird.f32 %v5014_v20 }
  0x99   :  { %5015 = vrsqrt.f32 %v131_v21  ;;  %vm140_vm4 = vmor %vm138_vm3, %vm139_vm2  ;;  %vm148_vm6 = vweird.f32 %v131_v21  ;;  %vm820_vm2 = vcmask 523264  }
  0x9a   :  { %v134_v23 = vmul.f32 %v5014_v20, %v133_v22 }
  0x9c   :  { %v135_v24 = vmul.f32 0.5, %v134_v23 }
  0x9e   :  { %v136_v25 = vsub.f32 1.5, %v135_v24 }
  0x9f   :  { %v5016_v26 = vpop.eup %5015 }
  0xa0   :  { %v143_v27 = vmul.f32 %v5016_v26, %v131_v21  ;;  %v137_v28 = vmul.f32 %v5014_v20, %v136_v25  ;;  %vm149_vm5 = vweird.f32 %v5016_v26 }
  0xa1   :  { %vm150_vm7 = vmor %vm148_vm6, %vm149_vm5 }
  0xa2   :  { %v144_v29 = vmul.f32 %v5016_v26, %v143_v27  ;;  %v141_v32 = vsel %vm140_vm4, %v5014_v20, %v137_v28  ;;  %v303_v27 = vld [vmem:[%s6619_s7] sm:$0xf] }
  0xa3   :  { %v152_v34 = vmul.f32 %v141_v32, %v5490_v0 }
  0xa4   :  { %v145_v30 = vmul.f32 0.5, %v144_v29 }
  0xa5   :  { %v157_v38 = vmul.f32 %v4999_v35, %v152_v34 }
  0xa6   :  { %v146_v31 = vsub.f32 1.5, %v145_v30 }
  0xa8   :  { %v147_v33 = vmul.f32 %v5016_v26, %v146_v31  ;;  %v435_v31 = vsel %vm239_vm8, %v303_v27, 0 }
  0xaa   :  { %v151_v36 = vsel %vm150_vm7, %v5016_v26, %v147_v33 }
  0xab   :  { %v153_v37 = vmul.f32 %v151_v36, %v5495_v1 }
  0xad   :  { %v158_v39 = vmul.f32 %v4999_v35, %v153_v37 }
  0xaf   :  { %v159_v40 = vpack.c.bf16 %v158_v39, %v157_v38 }
  0xb1   :  { %4505 = vmatmul.msk.bf16.vlgmr.msra.gmra.mxu0 %vm114_vm0, %v159_v40 }
 0x12e   :  { %v188_v41 = vpop.f32.mrf.mxu0 }
 0x12f   :  { %196 = vrot.lane.b32.xlu1 %v188_v41, %s6597_s6 }
 0x136   :  { %v190_v42 = vpop.f32.mrf.mxu0 }
 0x137   :  { %198 = vrot.lane.b32.xlu1 %v190_v42, %s6597_s6  ;;  %v5522_v48 = vpack.c.bf16 %v190_v42, %v188_v41  ;;  %v4891_v5 = vpack.i.bf16 %v190_v42, %v188_v41 }
 0x1a1   :  { %v197_v43 = vpop.permute.xlu1 %196 }
 0x1a2   :  { %202 = vxpose.xlu2.b32.start [1/2] (short) (narrow) %v197_v43, 8 }
 0x1a9   :  { %v199_v44 = vpop.permute.xlu1 %198 }
 0x1aa   :  { %203 = vxpose.xlu2.b32.end [2/2] (short) (narrow) %v199_v44, 8  ;;  %v5568_v44 = vld [vmem:[%s6618_s3 + $0x10] sm:$0xff] }
 0x23b   :  { %v218_v45 = vpop.trf.xlu2 }
 0x23c   :  { %v234_v46 = vpack.c.bf16 %v218_v45, %v218_v45 }
 0x23e   :  { %v241_v47 = vsel %vm239_vm8, %v234_v46, 0 }
 0x23f   :  { %250 = vmatpush.bf16.msra.mxu1 %v241_v47 }
 0x242   :  { %4506 = vmatmul.msk.bf16.vlgmr.msra.gmra.mxu1 %vm235_vm9, %v5522_v48 }
 0x2bf   :  { %v252_v50 = vpop.f32.mrf.mxu1 }
 0x2c0   :  { %v253_v51 = vadd.f32 %v252_v50, %v5529_v49  ;;  %v5575_v50 = vld [vmem:[%s6618_s3 + $0x18] sm:$0xff] }
 0x2c2   :  { %v258_v52 = vsel %vm257_vm10, %v253_v51, -inf }
 0x2c3   :  { %259 = vmax.xlane.f32.xlu0 %v258_v52 }
 0x2c7   :  { %v254_v54 = vpop.f32.mrf.mxu1 }
 0x2c8   :  { %v255_v55 = vadd.f32 %v254_v54, %v5536_v53 }
 0x2ca   :  { %v261_v56 = vsel %vm257_vm10, %v255_v55, -inf }
 0x2cb   :  { %262 = vmax.xlane.f32.xlu1 %v261_v56 }
 0x2e4   :  { %343 = vrot.lane.b32.xlu1 %v5522_v48, %s6579_s8  ;;  %s6629_s8 = smov 48  }
 0x2ec   :  { %490 = vrot.lane.b32.xlu1 %v5522_v48, %s6589_s4  ;;  %s6636_s4 = sld [smem:[#allocation13_spill]] }
 0x2f4   :  { %619 = vrot.lane.b32.xlu1 %v5522_v48, %s6587_s29  ;;  %s6623_s29 = smov 112  }
 0x336   :  { %v260_v57 = vpop.xlane.xlu0 %259 }
 0x337   :  { %v264_v58 = vsub.f32 %v253_v51, %v260_v57 }
 0x339   :  { %v266_v59 = vmul.f32 1.442695, %v264_v58 }
 0x33b   :  { %5017 = vpow2.f32 %v266_v59 }
 0x33e   :  { %v263_v60 = vpop.xlane.xlu1 %262 }
 0x33f   :  { %v265_v61 = vsub.f32 %v255_v55, %v263_v60  ;;  %v5582_v55 = vld [vmem:[%s6618_s3 + $0x20] sm:$0xff]  ;;  %v5591_v60 = vld [vmem:[%s6618_s3 + $0x28] sm:$0xff] }
 0x341   :  { %v5018_v62 = vpop.eup %5017  ;;  %v268_v63 = vmul.f32 1.442695, %v265_v61 }
 0x342   :  { %v270_v2 = vsel %vm257_vm10, %v5018_v62, 0.0 }
 0x343   :  { %5019 = vpow2.f32 %v268_v63  ;;  %271 = vadd.xlane.f32.xlu2 %v270_v2 }
 0x349   :  { %v5020_v3 = vpop.eup %5019 }
 0x34a   :  { %v273_v4 = vsel %vm257_vm10, %v5020_v3, 0.0 }
 0x34b   :  { %274 = vadd.xlane.f32.xlu0 %v273_v4 }
 0x356   :  { %v344_v26 = vpop.permute.xlu1 %343 }
 0x35e   :  { %v491_v28 = vpop.permute.xlu1 %490 }
 0x35f   :  { %282 = vrot.lane.b32.xlu0 %v5522_v48, %s6599_s9 }
 0x366   :  { %v620_v34 = vpop.permute.xlu1 %619 }
 0x367   :  { %4892 = vrot.lane.b32.xlu0 %v4891_v5, %s6595_s30 }
 0x36f   :  { %4897 = vrot.lane.b32.xlu0 %v4891_v5, %s6591_s2  ;;  %s6624_s2 = smov 104  }
 0x377   :  { %4902 = vrot.lane.b32.xlu0 %v4891_v5, %s6593_s5 }
 0x3b6   :  { %v272_v7 = vpop.xlane.xlu2 %271 }
 0x3be   :  { %v275_v6 = vpop.xlane.xlu0 %274 }
 0x3bf   :  { %5021 = vrcp.f32 %v275_v6 }
 0x3c0   :  { %5023 = vrcp.f32 %v272_v7  ;;  %v5607_v7 = vld [vmem:[%s6618_s3 + $0x38] sm:$0xff] }
 0x3c5   :  { %v5022_v8 = vpop.eup %5021 }
 0x3c6   :  { %v5024_v9 = vpop.eup %5023  ;;  %v279_v10 = vmul.f32 %v5022_v8, %v5020_v3  ;;  %v5600_v3 = vld [vmem:[%s6618_s3 + $0x30] sm:$0xff]  ;;  %s6583_s3 = smov 56  }
 0x3c7   :  { %v278_v12 = vmul.f32 %v5024_v9, %v5018_v62 }
 0x3c9   :  { %v280_v14 = vpack.c.bf16 %v279_v10, %v278_v12 }
 0x3d1   :  { %v283_v11 = vpop.permute.xlu0 %282 }
 0x3d2   :  { %295 = vmatpush.bf16.msra.mxu2 %v283_v11 }
 0x3d5   :  { %4507 = vmatmul.msk.bf16.vlgmr.msra.gmra.mxu2 %vm257_vm10, %v280_v14 }
 0x3d9   :  { %v4893_v15 = vpop.permute.xlu0 %4892 }
 0x3da   :  { %v4894_v16 = vunpack.i.l.bf16 %v4893_v15  ;;  %v4895_v18 = vunpack.i.h.bf16 %v4893_v15 }
 0x3dc   :  { %310 = vxpose.xlu0.b32.start [1/2] (short) (narrow) %v4894_v16, 8 }
 0x3e1   :  { %v4898_v17 = vpop.permute.xlu0 %4897 }
 0x3e2   :  { %v4899_v21 = vunpack.i.l.bf16 %v4898_v17  ;;  %v4900_v24 = vunpack.i.h.bf16 %v4898_v17 }
 0x3e4   :  { %311 = vxpose.xlu0.b32.end [2/2] (short) (narrow) %v4895_v18, 8 }
 0x3e9   :  { %v4903_v19 = vpop.permute.xlu0 %4902 }
 0x3ea   :  { %v4904_v20 = vunpack.i.l.bf16 %v4903_v19  ;;  %v4905_v23 = vunpack.i.h.bf16 %v4903_v19 }
 0x3ec   :  { %v4906_v22 = vpack.i.bf16 %v4904_v20, %v4899_v21  ;;  %v4908_v25 = vpack.i.bf16 %v4905_v23, %v4900_v24 }
 0x3ee   :  { %4907 = vxpose.xlu1.b32.start [1/2] (short) (narrow) %v4906_v22, 8 }
 0x3f6   :  { %4909 = vxpose.xlu1.b32.end [2/2] (short) (narrow) %v4908_v25, 8 }
 0x458   :  { %v297_v33 = vpop.f32.mrf.mxu2 }
 0x460   :  { %v299_v35 = vpop.f32.mrf.mxu2 }
 0x461   :  { %v302_v39 = vpack.c.bf16 %v299_v35, %v297_v33 }
 0x480   :  { %v326_v29 = vpop.trf.xlu0 }
 0x481   :  { %v342_v30 = vpack.c.bf16 %v326_v29, %v326_v29 }
 0x483   :  { %v349_v32 = vsel %vm239_vm8, %v342_v30, 0 }
 0x484   :  { %358 = vmatpush.bf16.msra.mxu3 %v349_v32 }
 0x487   :  { %4508 = vmatmul.msk.bf16.vlgmr.msra.gmra.mxu3 %vm235_vm9, %v344_v26 }
 0x488   :  { %444 = vmatpush.bf16.msrb.mxu3 %v435_v31 }
 0x492   :  { %v4910_v36 = vpop.trf.xlu1 }
 0x493   :  { %v4911_v37 = vunpack.i.l.bf16 %v4910_v36  ;;  %v4914_v38 = vunpack.i.h.bf16 %v4910_v36 }
 0x495   :  { %v489_v40 = vpack.c.bf16 %v4911_v37, %v4911_v37  ;;  %v618_v41 = vpack.c.bf16 %v4914_v38, %v4914_v38 }
 0x497   :  { %4512 = vmatmul.msk.bf16.vlgmr.msrb.gmra.mxu3 %vm235_vm9, %v302_v39  ;;  %v496_v42 = vsel %vm239_vm8, %v489_v40, 0  ;;  %v625_v43 = vsel %vm239_vm8, %v618_v41, 0 }
 0x498   :  { %505 = vmatpush.bf16.msrb.mxu0 %v496_v42  ;;  %634 = vmatpush.bf16.msra.mxu3 %v625_v43 }
 0x49b   :  { %4513 = vmatmul.msk.bf16.vlgmr.msrb.gmra.mxu0 %vm235_vm9, %v491_v28 }
 0x4a7   :  { %4517 = vmatmul.msk.bf16.vlgmr.msra.gmra.mxu3 %vm235_vm9, %v620_v34 }
 0x50a   :  { %v360_v45 = vpop.f32.mrf.mxu3 }
 0x50b   :  { %v361_v46 = vadd.f32 %v360_v45, %v5568_v44 }
 0x50d   :  { %v365_v47 = vsel %vm257_vm10, %v361_v46, -inf }
 0x50e   :  { %366 = vmax.xlane.f32.xlu0 %v365_v47 }
 0x512   :  { %v362_v51 = vpop.f32.mrf.mxu3 }
 0x513   :  { %v363_v52 = vadd.f32 %v362_v51, %v5575_v50 }
 0x515   :  { %v368_v54 = vsel %vm257_vm10, %v363_v52, -inf }
 0x516   :  { %369 = vmax.xlane.f32.xlu2 %v368_v54 }
 0x518   :  { %v507_v56 = vpop.f32.mrf.mxu0 }
 0x519   :  { %v508_v57 = vadd.f32 %v507_v56, %v5582_v55 }
 0x51a   :  { %v5585_v58 = vpop.f32.mrf.mxu3 }
 0x51b   :  { %v512_v59 = vsel %vm257_vm10, %v508_v57, -inf }
 0x51e   :  { %513 = vmax.xlane.f32.xlu2 %v512_v59 }
 0x520   :  { %v509_v61 = vpop.f32.mrf.mxu0 }
 0x521   :  { %v510_v62 = vadd.f32 %v509_v61, %v5591_v60 }
 0x522   :  { %v5594_v63 = vpop.f32.mrf.mxu3 }
 0x523   :  { %v515_v2 = vsel %vm257_vm10, %v510_v62, -inf }
 0x526   :  { %516 = vmax.xlane.f32.xlu2 %v515_v2 }
 0x52a   :  { %v636_v4 = vpop.f32.mrf.mxu3 }
 0x52b   :  { %v637_v5 = vadd.f32 %v636_v4, %v5600_v3 }
 0x52d   :  { %v641_v6 = vsel %vm257_vm10, %v637_v5, -inf }
 0x52e   :  { %642 = vmax.xlane.f32.xlu2 %v641_v6 }
 0x532   :  { %v638_v8 = vpop.f32.mrf.mxu3 }
 0x533   :  { %v639_v9 = vadd.f32 %v638_v8, %v5607_v7 }
 0x535   :  { %v644_v10 = vsel %vm257_vm10, %v639_v9, -inf }
 0x536   :  { %645 = vmax.xlane.f32.xlu1 %v644_v10 }
 0x581   :  { %v367_v11 = vpop.xlane.xlu0 %366 }
 0x582   :  { %v371_v12 = vsub.f32 %v361_v46, %v367_v11 }
 0x584   :  { %v373_v14 = vmul.f32 1.442695, %v371_v12 }
 0x586   :  { %5025 = vpow2.f32 %v373_v14 }
 0x589   :  { %v370_v15 = vpop.xlane.xlu2 %369 }
 0x58a   :  { %v372_v16 = vsub.f32 %v363_v52, %v370_v15  ;;  %v4510_v15 = vld [vmem:[%s6619_s7 + $0x4] sm:$0xf] }
 0x58c   :  { %v5026_v17 = vpop.eup %5025  ;;  %v375_v18 = vmul.f32 1.442695, %v372_v16  ;;  %v415_v16 = vsel %vm239_vm8, %v4510_v15, 0 }
 0x58d   :  { %v377_v19 = vsel %vm257_vm10, %v5026_v17, 0.0  ;;  %424 = vmatpush.bf16.msrb.mxu2 %v415_v16 }
 0x58e   :  { %5027 = vpow2.f32 %v375_v18  ;;  %378 = vadd.xlane.f32.xlu2 %v377_v19 }
 0x591   :  { %v514_v20 = vpop.xlane.xlu2 %513 }
 0x592   :  { %v518_v33 = vsub.f32 %v508_v57, %v514_v20  ;;  %v4515_v20 = vld [vmem:[%s6619_s7 + $0x8] sm:$0xf] }
 0x594   :  { %v5028_v21 = vpop.eup %5027  ;;  %v520_v34 = vmul.f32 1.442695, %v518_v33 }
 0x595   :  { %v380_v22 = vsel %vm257_vm10, %v5028_v21, 0.0 }
 0x596   :  { %381 = vadd.xlane.f32.xlu2 %v380_v22  ;;  %v4519_v22 = vld [vmem:[%s6619_s7 + $0xc] sm:$0xf] }
 0x599   :  { %v517_v23 = vpop.xlane.xlu2 %516 }
 0x59a   :  { %v519_v24 = vsub.f32 %v510_v62, %v517_v23  ;;  %v691_v23 = vsel %vm239_vm8, %v4519_v22, 0  ;;  %v4830_v22 = vld [vmem:[%s6552_s11 + $0x10] sm:$0xff] }
 0x59c   :  { %v522_v25 = vmul.f32 1.442695, %v519_v24 }
 0x59e   :  { %5029 = vpow2.f32 %v522_v25 }
 0x5a1   :  { %v643_v26 = vpop.xlane.xlu2 %642 }
 0x5a2   :  { %v647_v27 = vsub.f32 %v637_v5, %v643_v26 }
 0x5a4   :  { %v5030_v28 = vpop.eup %5029  ;;  %v649_v29 = vmul.f32 1.442695, %v647_v27 }
 0x5a5   :  { %v527_v30 = vsel %vm257_vm10, %v5030_v28, 0.0 }
 0x5a6   :  { %5031 = vpow2.f32 %v649_v29  ;;  %528 = vadd.xlane.f32.xlu0 %v527_v30 }
 0x5a7   :  { %5033 = vpow2.f32 %v520_v34 }
 0x5a9   :  { %v646_v35 = vpop.xlane.xlu1 %645 }
 0x5aa   :  { %v648_v36 = vsub.f32 %v639_v9, %v646_v35 }
 0x5ac   :  { %v5032_v31 = vpop.eup %5031  ;;  %v651_v37 = vmul.f32 1.442695, %v648_v36 }
 0x5ad   :  { %v653_v32 = vsel %vm257_vm10, %v5032_v31, 0.0  ;;  %v5034_v38 = vpop.eup %5033 }
 0x5ae   :  { %654 = vadd.xlane.f32.xlu0 %v653_v32  ;;  %388 = vrot.lane.b32.xlu2 %v5522_v48, %s6583_s3  ;;  %5035 = vpow2.f32 %v651_v37  ;;  %v524_v39 = vsel %vm257_vm10, %v5034_v38, 0.0  ;;  %s6621_s3 = sld [smem:[#allocation17_spill]] }
 0x5b4   :  { %v5036_v40 = vpop.eup %5035  ;;  %v5000_v15 = vld [vmem:[%s6621_s3] ss:$0 sm:$0xff] }
 0x5b5   :  { %v656_v41 = vsel %vm257_vm10, %v5036_v40, 0.0 }
 0x5c2   :  { %535 = vrot.lane.b32.xlu0 %v5522_v48, %s6581_s28  ;;  %s6620_s28 = sld [smem:[#allocation18_spill]] }
 0x5d7   :  { %525 = vadd.xlane.f32.xlu2 %v524_v39 }
 0x5df   :  { %657 = vadd.xlane.f32.xlu2 %v656_v41 }
 0x5f7   :  { %664 = vrot.lane.b32.xlu2 %v5522_v48, %s6585_s1  ;;  %s6626_s1 = sld [smem:[#allocation9_spill]] }
 0x601   :  { %v379_v42 = vpop.xlane.xlu2 %378 }
 0x602   :  { %5037 = vrcp.f32 %v379_v42 }
 0x608   :  { %v5038_v45 = vpop.eup %5037 }
 0x609   :  { %v382_v43 = vpop.xlane.xlu2 %381  ;;  %v385_v47 = vmul.f32 %v5038_v45, %v5026_v17 }
 0x60a   :  { %5039 = vrcp.f32 %v382_v43 }
 0x610   :  { %v5040_v46 = vpop.eup %5039 }
 0x611   :  { %v386_v51 = vmul.f32 %v5040_v46, %v5028_v21  ;;  %v389_v52 = vpop.permute.xlu2 %388  ;;  %v562_v21 = vsel %vm239_vm8, %v4515_v20, 0 }
 0x612   :  { %401 = vmatpush.bf16.msrb.mxu1 %v389_v52  ;;  %571 = vmatpush.bf16.msra.mxu2 %v562_v21 }
 0x613   :  { %v387_v54 = vpack.c.bf16 %v386_v51, %v385_v47  ;;  %v4826_v51 = vld [vmem:[%s6620_s28] sm:$0xff] }
 0x615   :  { %4509 = vmatmul.msk.bf16.vlgmr.msrb.gmra.mxu1 %vm257_vm10, %v387_v54  ;;  %v4831_v54 = vld [vmem:[%s6552_s11 + $0x18] sm:$0xff] }
 0x616   :  { %828 = vmatpush.bf16.msrb.mxu3 %v4831_v54 }
 0x619   :  { %v529_v56 = vpop.xlane.xlu0 %528 }
 0x61a   :  { %5041 = vrcp.f32 %v529_v56  ;;  %829 = vmatpush.bf16.msrb.mxu3 %v4830_v22 }
 0x620   :  { %v5042_v48 = vpop.eup %5041 }
 0x621   :  { %v655_v57 = vpop.xlane.xlu0 %654  ;;  %v533_v2 = vmul.f32 %v5042_v48, %v5030_v28 }
 0x634   :  { %v536_v59 = vpop.permute.xlu0 %535 }
 0x635   :  { %548 = vmatpush.bf16.msra.mxu1 %v536_v59 }
 0x639   :  { %700 = vmatpush.bf16.msrb.mxu1 %v691_v23  ;;  %v4829_v23 = vld [vmem:[%s6552_s11 + $0x8] sm:$0xff] }
 0x63a   :  { %830 = vmatpush.bf16.msrb.mxu3 %v4829_v23 }
 0x64a   :  { %v526_v61 = vpop.xlane.xlu2 %525 }
 0x64b   :  { %5043 = vrcp.f32 %v526_v61 }
 0x64c   :  { %5045 = vrcp.f32 %v655_v57 }
 0x651   :  { %v5044_v62 = vpop.eup %5043 }
 0x652   :  { %v532_v4 = vmul.f32 %v5044_v62, %v5034_v38  ;;  %v658_v5 = vpop.xlane.xlu2 %657  ;;  %v5046_v8 = vpop.eup %5045 }
 0x653   :  { %5047 = vrcp.f32 %v658_v5  ;;  %v661_v10 = vmul.f32 %v5046_v8, %v5032_v31 }
 0x654   :  { %v534_v6 = vpack.c.bf16 %v533_v2, %v532_v4 }
 0x656   :  { %4514 = vmatmul.msk.bf16.vlgmr.msra.gmra.mxu1 %vm257_vm10, %v534_v6 }
 0x659   :  { %v5048_v9 = vpop.eup %5047 }
 0x65a   :  { %v662_v11 = vmul.f32 %v5048_v9, %v5036_v40  ;;  %v665_v12 = vpop.permute.xlu2 %664 }
 0x65b   :  { %677 = vmatpush.bf16.msra.mxu0 %v665_v12 }
 0x65c   :  { %v663_v14 = vpack.c.bf16 %v662_v11, %v661_v10 }
 0x65e   :  { %4518 = vmatmul.msk.bf16.vlgmr.msra.gmra.mxu0 %vm257_vm10, %v663_v14 }
 0x692   :  { %v403_v17 = vpop.f32.mrf.mxu1 }
 0x69a   :  { %v405_v18 = vpop.f32.mrf.mxu1 }
 0x69b   :  { %v408_v19 = vpack.c.bf16 %v405_v18, %v403_v17 }
 0x69d   :  { %4511 = vmatmul.msk.bf16.vlgmr.msrb.gmra.mxu2 %vm235_vm9, %v408_v19 }
 0x6d3   :  { %v550_v24 = vpop.f32.mrf.mxu1 }
 0x6db   :  { %v552_v25 = vpop.f32.mrf.mxu1  ;;  %v679_v26 = vpop.f32.mrf.mxu0 }
 0x6dc   :  { %v555_v27 = vpack.c.bf16 %v552_v25, %v550_v24  ;;  %v4828_v24 = vld [vmem:[%s6552_s11] sm:$0xff] }
 0x6dd   :  { %831 = vmatpush.bf16.msrb.mxu3 %v4828_v24 }
 0x6de   :  { %4516 = vmatmul.msk.bf16.vlgmr.msra.gmra.mxu2 %vm235_vm9, %v555_v27 }
 0x6e3   :  { %v681_v28 = vpop.f32.mrf.mxu0 }
 0x6e4   :  { %v684_v29 = vpack.c.bf16 %v681_v28, %v679_v26 }
 0x6e6   :  { %4520 = vmatmul.msk.bf16.vlgmr.msrb.gmra.mxu1 %vm235_vm9, %v684_v29 }
 0x720   :  { %v426_v30 = vpop.f32.mrf.mxu2 }
 0x721   :  { %v447_v32 = vadd.f32 %v5585_v58, %v426_v30 }
 0x728   :  { %v428_v31 = vpop.f32.mrf.mxu2 }
 0x729   :  { %v449_v38 = vadd.f32 %v5594_v63, %v428_v31  ;;  %v4827_v63 = vld [vmem:[%s6620_s28 + $0x8] sm:$0xff] }
 0x72a   :  { %777 = vmatpush.bf16.msrb.mxu2 %v4827_v63 }
 0x72e   :  { %778 = vmatpush.bf16.msrb.mxu2 %v4826_v51 }
 0x761   :  { %v573_v33 = vpop.f32.mrf.mxu2 }
 0x762   :  { %v578_v34 = vadd.f32 %v573_v33, %v447_v32 }
 0x763   :  { %v702_v35 = vpop.f32.mrf.mxu1 }
 0x764   :  { %v707_v36 = vadd.f32 %v702_v35, %v578_v34 }
 0x766   :  { %v5643_v37 = vadd.f32 %v707_v36, %v5490_v0 }
 0x768   :  { %v712_v39 = vmul.f32 %v5643_v37, %v5643_v37 }
 0x769   :  { %v575_v40 = vpop.f32.mrf.mxu2 }
 0x76a   :  { %v579_v41 = vadd.f32 %v575_v40, %v449_v38  ;;  %v714_v42 = vsel %vm114_vm0, %v712_v39, 0.0  ;;  %v4832_v40 = vld [vmem:[%s6616_s0 + $0x10] sm:$0xff] }
 0x76b   :  { %v704_v43 = vpop.f32.mrf.mxu1  ;;  %715 = vadd.xlane.f32.xlu1 %v714_v42 }
 0x76c   :  { %v708_v45 = vadd.f32 %v704_v43, %v579_v41 }
 0x76e   :  { %v5650_v58 = vadd.f32 %v708_v45, %v5495_v1 }
 0x770   :  { %v713_v46 = vmul.f32 %v5650_v58, %v5650_v58 }
 0x772   :  { %v717_v0 = vsel %vm114_vm0, %v713_v46, 0.0 }
 0x773   :  { %718 = vadd.xlane.f32.xlu1 %v717_v0 }
 0x7de   :  { %v716_v47 = vpop.xlane.xlu1 %715 }
 0x7df   :  { %v720_v52 = vmul.f32 %v716_v47, %v5506_v13 }
 0x7e1   :  { %v722_v1 = vadd.f32 1e-06, %v720_v52 }
 0x7e3   :  { %5049 = vrsqrt.f32 %v722_v1  ;;  %vm730_vm12 = vweird.f32 %v722_v1 }
 0x7e6   :  { %v719_v56 = vpop.xlane.xlu1 %718 }
 0x7e7   :  { %v721_v57 = vmul.f32 %v719_v56, %v5506_v13 }
 0x7e9   :  { %v5050_v59 = vpop.eup %5049  ;;  %v723_v61 = vadd.f32 1e-06, %v721_v57 }
 0x7ea   :  { %v725_v48 = vmul.f32 %v5050_v59, %v722_v1  ;;  %vm731_vm11 = vweird.f32 %v5050_v59 }
 0x7eb   :  { %5051 = vrsqrt.f32 %v723_v61  ;;  %vm732_vm13 = vmor %vm730_vm12, %vm731_vm11  ;;  %vm740_vm15 = vweird.f32 %v723_v61 }
 0x7ec   :  { %v726_v62 = vmul.f32 %v5050_v59, %v725_v48 }
 0x7ee   :  { %v727_v2 = vmul.f32 0.5, %v726_v62  ;;  %v5001_v62 = vld [vmem:[%s6617_s10 + $0x1] ss:$0 sm:$0xff]  ;;  %s6622_s10 = smov 80  }
 0x7f0   :  { %v728_v4 = vsub.f32 1.5, %v727_v2 }
 0x7f1   :  { %v5052_v5 = vpop.eup %5051 }
 0x7f2   :  { %v735_v6 = vmul.f32 %v5052_v5, %v723_v61  ;;  %v729_v8 = vmul.f32 %v5050_v59, %v728_v4  ;;  %vm741_vm14 = vweird.f32 %v5052_v5 }
 0x7f3   :  { %vm742_vm1 = vmor %vm740_vm15, %vm741_vm14 }
 0x7f4   :  { %v736_v9 = vmul.f32 %v5052_v5, %v735_v6  ;;  %v733_v11 = vsel %vm732_vm13, %v5050_v59, %v729_v8 }
 0x7f5   :  { %v744_v16 = vmul.f32 %v733_v11, %v5643_v37 }
 0x7f6   :  { %v737_v10 = vmul.f32 0.5, %v736_v9 }
 0x7f7   :  { %v749_v19 = vmul.f32 %v5000_v15, %v744_v16 }
 0x7f8   :  { %v738_v12 = vsub.f32 1.5, %v737_v10 }
 0x7fa   :  { %v739_v14 = vmul.f32 %v5052_v5, %v738_v12 }
 0x7fc   :  { %v743_v17 = vsel %vm742_vm1, %v5052_v5, %v739_v14 }
 0x7fd   :  { %v745_v18 = vmul.f32 %v743_v17, %v5650_v58 }
 0x7ff   :  { %v750_v20 = vmul.f32 %v5000_v15, %v745_v18 }
 0x801   :  { %v751_v21 = vpack.c.bf16 %v750_v20, %v749_v19 }
 0x803   :  { %4529 = vmatmul.msk.bf16.vlgmr.msrb.gmra.mxu2 %vm114_vm0, %v751_v21 }
 0x886   :  { %v780_v25 = vpop.f32.mrf.mxu2 }
 0x887   :  { %v785_v27 = vmax.f32 %v780_v25, 0.0 }
 0x88e   :  { %v782_v26 = vpop.f32.mrf.mxu2 }
 0x88f   :  { %v786_v28 = vmax.f32 %v782_v26, 0.0 }
 0x891   :  { %v787_v29 = vpack.c.bf16 %v786_v28, %v785_v27 }
 0x893   :  { %4546 = vmatmul.msk.bf16.vlgmr.msrb.gmra.mxu3 %vm820_vm2, %v787_v29 }
 0x916   :  { %v833_v30 = vpop.f32.mrf.mxu3 }
 0x917   :  { %v5683_v31 = vadd.f32 %v833_v30, %v5643_v37  ;;  %v4833_v37 = vld [vmem:[%s6616_s0 + $0x18] sm:$0xff]  ;;  %s6633_s0 = smov 72  }
 0x918   :  { %908 = vmatpush.bf16.msrb.mxu0 %v4833_v37 }
 0x919   :  { %v842_v32 = vmul.f32 %v5683_v31, %v5683_v31 }
 0x91b   :  { %v844_v33 = vsel %vm114_vm0, %v842_v32, 0.0 }
 0x91c   :  { %845 = vadd.xlane.f32.xlu0 %v844_v33  ;;  %909 = vmatpush.bf16.msrb.mxu0 %v4832_v40 }
 0x91e   :  { %v835_v34 = vpop.f32.mrf.mxu3 }
 0x91f   :  { %v5689_v35 = vadd.f32 %v835_v34, %v5650_v58 }
 0x921   :  { %v843_v36 = vmul.f32 %v5689_v35, %v5689_v35 }
 0x923   :  { %v847_v38 = vsel %vm114_vm0, %v843_v36, 0.0 }
 0x924   :  { %848 = vadd.xlane.f32.xlu1 %v847_v38 }
 0x98f   :  { %v846_v39 = vpop.xlane.xlu0 %845 }
 0x990   :  { %v850_v41 = vmul.f32 %v846_v39, %v5506_v13 }
 0x992   :  { %v852_v42 = vadd.f32 1e-06, %v850_v41 }
 0x994   :  { %5053 = vrsqrt.f32 %v852_v42  ;;  %vm860_vm4 = vweird.f32 %v852_v42 }
 0x997   :  { %v849_v43 = vpop.xlane.xlu1 %848 }
 0x998   :  { %v851_v45 = vmul.f32 %v849_v43, %v5506_v13 }
 0x99a   :  { %v5054_v58 = vpop.eup %5053  ;;  %v853_v46 = vadd.f32 1e-06, %v851_v45 }
 0x99b   :  { %v855_v0 = vmul.f32 %v5054_v58, %v852_v42  ;;  %vm861_vm3 = vweird.f32 %v5054_v58 }
 0x99c   :  { %5055 = vrsqrt.f32 %v853_v46  ;;  %vm862_vm5 = vmor %vm860_vm4, %vm861_vm3  ;;  %vm870_vm7 = vweird.f32 %v853_v46 }
 0x99d   :  { %v856_v63 = vmul.f32 %v5054_v58, %v855_v0 }
 0x99f   :  { %v857_v47 = vmul.f32 0.5, %v856_v63 }
 0x9a1   :  { %v858_v51 = vsub.f32 1.5, %v857_v47  ;;  %v4563_v47 = vld [vmem:[%s6619_s7 + $0x10] sm:$0xf] }
 0x9a2   :  { %v5056_v52 = vpop.eup %5055 }
 0x9a3   :  { %v865_v1 = vmul.f32 %v5056_v52, %v853_v46  ;;  %v859_v54 = vmul.f32 %v5054_v58, %v858_v51  ;;  %vm871_vm6 = vweird.f32 %v5056_v52  ;;  %v1156_v51 = vsel %vm239_vm8, %v4563_v47, 0 }
 0x9a4   :  { %vm872_vm11 = vmor %vm870_vm7, %vm871_vm6 }
 0x9a5   :  { %v866_v56 = vmul.f32 %v5056_v52, %v865_v1  ;;  %v863_v59 = vsel %vm862_vm5, %v5054_v58, %v859_v54 }
 0x9a6   :  { %v874_v2 = vmul.f32 %v863_v59, %v5683_v31 }
 0x9a7   :  { %v867_v57 = vmul.f32 0.5, %v866_v56 }
 0x9a8   :  { %v879_v6 = vmul.f32 %v5001_v62, %v874_v2 }
 0x9a9   :  { %v868_v61 = vsub.f32 1.5, %v867_v57 }
 0x9ab   :  { %v869_v48 = vmul.f32 %v5056_v52, %v868_v61 }
 0x9ad   :  { %v873_v4 = vsel %vm872_vm11, %v5056_v52, %v869_v48 }
 0x9ae   :  { %v875_v5 = vmul.f32 %v873_v4, %v5689_v35 }
 0x9b0   :  { %v880_v8 = vmul.f32 %v5001_v62, %v875_v5 }
 0x9b2   :  { %v881_v9 = vpack.c.bf16 %v880_v8, %v879_v6 }
 0x9b4   :  { %4560 = vmatmul.msk.bf16.vlgmr.msrb.gmra.mxu0 %vm114_vm0, %v881_v9 }
 0xa31   :  { %v911_v10 = vpop.f32.mrf.mxu0 }
 0xa32   :  { %919 = vrot.lane.b32.xlu2 %v911_v10, %s6597_s6 }
 0xa39   :  { %v913_v11 = vpop.f32.mrf.mxu0 }
 0xa3a   :  { %921 = vrot.lane.b32.xlu1 %v913_v11, %s6597_s6  ;;  %v5710_v15 = vpack.c.bf16 %v913_v11, %v911_v10 }
 0xa8c   :  { %v920_v12 = vpop.permute.xlu2 %919 }
 0xa8d   :  { %925 = vxpose.xlu2.b32.start [1/2] (short) (narrow) %v920_v12, 8 }
 0xaac   :  { %v922_v14 = vpop.permute.xlu1 %921 }
 0xaad   :  { %926 = vxpose.xlu2.b32.end [2/2] (short) (narrow) %v922_v14, 8 }
 0xb16   :  { %1002 = vrot.lane.b32.xlu2 %v5710_v15, %s6599_s9  ;;  %s6632_s9 = smov 88  }
 0xb3e   :  { %v941_v16 = vpop.trf.xlu2 }
 0xb3f   :  { %v957_v17 = vpack.c.bf16 %v941_v16, %v941_v16 }
 0xb41   :  { %v962_v18 = vsel %vm239_vm8, %v957_v17, 0 }
 0xb42   :  { %971 = vmatpush.bf16.msra.mxu1 %v962_v18 }
 0xb45   :  { %4561 = vmatmul.msk.bf16.vlgmr.msra.gmra.mxu1 %vm235_vm9, %v5710_v15 }
 0xb70   :  { %v1003_v19 = vpop.permute.xlu2 %1002 }
 0xb71   :  { %1015 = vmatpush.bf16.msra.mxu2 %v1003_v19 }
 0xb75   :  { %1165 = vmatpush.bf16.msrb.mxu2 %v1156_v51 }
 0xbc2   :  { %v973_v20 = vpop.f32.mrf.mxu1 }
 0xbc3   :  { %v974_v21 = vadd.f32 %v973_v20, %v5529_v49  ;;  %v5758_v20 = vld [vmem:[%s6626_s1] sm:$0xff] }
 0xbc5   :  { %v978_v22 = vsel %vm257_vm10, %v974_v21, -inf }
 0xbc6   :  { %979 = vmax.xlane.f32.xlu1 %v978_v22 }
 0xbca   :  { %v975_v23 = vpop.f32.mrf.mxu1 }
 0xbcb   :  { %v976_v24 = vadd.f32 %v975_v23, %v5536_v53 }
 0xbcd   :  { %v981_v25 = vsel %vm257_vm10, %v976_v24, -inf }
 0xbce   :  { %982 = vmax.xlane.f32.xlu0 %v981_v25 }
 0xbdf   :  { %1303 = vrot.lane.b32.xlu1 %v913_v11, %s6593_s5 }
 0xbe7   :  { %1025 = vrot.lane.b32.xlu1 %v911_v10, %s6595_s30 }
 0xbef   :  { %1027 = vrot.lane.b32.xlu1 %v913_v11, %s6595_s30  ;;  %s6628_s30 = smov 56  }
 0xbf7   :  { %1172 = vrot.lane.b32.xlu1 %v911_v10, %s6622_s10 }
 0xbff   :  { %1174 = vrot.lane.b32.xlu1 %v913_v11, %s6622_s10 }
 0xc07   :  { %1211 = vrot.lane.b32.xlu1 %v5710_v15, %s6623_s29 }
 0xc39   :  { %v980_v49 = vpop.xlane.xlu1 %979 }
 0xc3a   :  { %v984_v26 = vsub.f32 %v974_v21, %v980_v49  ;;  %v1607_v21 = vmul.f32 %v5758_v20, %v5758_v20 }
 0xc3c   :  { %v986_v27 = vmul.f32 1.442695, %v984_v26  ;;  %v1609_v22 = vsel %vm114_vm0, %v1607_v21, 0.0 }
 0xc3e   :  { %5057 = vpow2.f32 %v986_v27 }
 0xc41   :  { %v983_v53 = vpop.xlane.xlu0 %982 }
 0xc42   :  { %v985_v28 = vsub.f32 %v976_v24, %v983_v53 }
 0xc44   :  { %v5058_v29 = vpop.eup %5057  ;;  %v988_v30 = vmul.f32 1.442695, %v985_v28 }
 0xc45   :  { %v990_v32 = vsel %vm257_vm10, %v5058_v29, 0.0 }
 0xc46   :  { %5059 = vpow2.f32 %v988_v30  ;;  %991 = vadd.xlane.f32.xlu0 %v990_v32 }
 0xc4c   :  { %v5060_v33 = vpop.eup %5059 }
 0xc4d   :  { %v993_v34 = vsel %vm257_vm10, %v5060_v33, 0.0 }
 0xc4e   :  { %994 = vadd.xlane.f32.xlu0 %v993_v34 }
 0xc51   :  { %v1304_v36 = vpop.permute.xlu1 %1303 }
 0xc59   :  { %v1026_v38 = vpop.permute.xlu1 %1025 }
 0xc5a   :  { %1031 = vxpose.xlu1.b32.start [1/2] (short) (narrow) %v1026_v38, 8 }
 0xc61   :  { %v1028_v37 = vpop.permute.xlu1 %1027 }
 0xc62   :  { %1301 = vrot.lane.b32.xlu0 %v911_v10, %s6593_s5  ;;  %1032 = vxpose.xlu1.b32.end [2/2] (short) (narrow) %v1028_v37, 8  ;;  %s6627_s5 = smov 40  }
 0xc69   :  { %v1173_v39 = vpop.permute.xlu1 %1172 }
 0xc6a   :  { %1340 = vrot.lane.b32.xlu0 %v5710_v15, %s6624_s2  ;;  %1178 = vxpose.xlu2.b32.start [1/2] (short) (narrow) %v1173_v39, 8 }
 0xc71   :  { %v1175_v40 = vpop.permute.xlu1 %1174 }
 0xc72   :  { %1179 = vxpose.xlu2.b32.end [2/2] (short) (narrow) %v1175_v40, 8 }
 0xc79   :  { %v1212_v1 = vpop.permute.xlu1 %1211 }
 0xcb9   :  { %v992_v41 = vpop.xlane.xlu0 %991 }
 0xcba   :  { %5061 = vrcp.f32 %v992_v41 }
 0xcc0   :  { %v5062_v43 = vpop.eup %5061 }
 0xcc1   :  { %v995_v42 = vpop.xlane.xlu0 %994  ;;  %v998_v58 = vmul.f32 %v5062_v43, %v5058_v29 }
 0xcc2   :  { %5063 = vrcp.f32 %v995_v42 }
 0xcc8   :  { %v5064_v45 = vpop.eup %5063 }
 0xcc9   :  { %v999_v46 = vmul.f32 %v5064_v45, %v5060_v33 }
 0xccb   :  { %v1000_v0 = vpack.c.bf16 %v999_v46, %v998_v58 }
 0xccd   :  { %4562 = vmatmul.msk.bf16.vlgmr.msra.gmra.mxu2 %vm257_vm10, %v1000_v0 }
 0xcd4   :  { %v1302_v63 = vpop.permute.xlu0 %1301 }
 0xcd5   :  { %1307 = vxpose.xlu0.b32.start [1/2] (short) (narrow) %v1302_v63, 8 }
 0xcdc   :  { %v1341_v48 = vpop.permute.xlu0 %1340 }
 0xcdd   :  { %1308 = vxpose.xlu0.b32.end [2/2] (short) (narrow) %v1304_v36, 8 }
 0xcfe   :  { %v1047_v57 = vpop.trf.xlu1 }
 0xcff   :  { %v1063_v59 = vpack.c.bf16 %v1047_v57, %v1047_v57 }
 0xd01   :  { %v1070_v61 = vsel %vm239_vm8, %v1063_v59, 0 }
 0xd02   :  { %1079 = vmatpush.bf16.msra.mxu3 %v1070_v61 }
 0xd03   :  { %v1194_v5 = vpop.trf.xlu2 }
 0xd04   :  { %v1210_v6 = vpack.c.bf16 %v1194_v5, %v1194_v5 }
 0xd06   :  { %v1217_v8 = vsel %vm239_vm8, %v1210_v6, 0  ;;  %v4841_v6 = vld [vmem:[%s6555_s14 + $0x8] sm:$0xff] }
 0xd07   :  { %1226 = vmatpush.bf16.msrb.mxu3 %v1217_v8 }
 0xd4b   :  { %1064 = vrot.lane.b32.xlu0 %v5710_v15, %s6625_s27 }
 0xd50   :  { %v1017_v52 = vpop.f32.mrf.mxu2 }
 0xd58   :  { %v1019_v54 = vpop.f32.mrf.mxu2 }
 0xd59   :  { %v1022_v56 = vpack.c.bf16 %v1019_v54, %v1017_v52 }
 0xd5b   :  { %4568 = vmatmul.msk.bf16.vlgmr.msrb.gmra.mxu2 %vm235_vm9, %v1022_v56 }
 0xd75   :  { %1610 = vadd.xlane.f32.xlu0 %v1609_v22 }
 0xd79   :  { %v1323_v62 = vpop.trf.xlu0 }
 0xd7a   :  { %v1339_v2 = vpack.c.bf16 %v1323_v62, %v1323_v62 }
 0xd7c   :  { %v1346_v4 = vsel %vm239_vm8, %v1339_v2, 0 }
 0xd7d   :  { %1355 = vmatpush.bf16.msra.mxu2 %v1346_v4 }
 0xd80   :  { %4573 = vmatmul.msk.bf16.vlgmr.msra.gmra.mxu2 %vm235_vm9, %v1341_v48 }
 0xdbd   :  { %v1065_v9 = vpop.permute.xlu0 %1064 }
 0xdbe   :  { %4564 = vmatmul.msk.bf16.vlgmr.msra.gmra.mxu3 %vm235_vm9, %v1065_v9 }
 0xdce   :  { %4569 = vmatmul.msk.bf16.vlgmr.msrb.gmra.mxu3 %vm235_vm9, %v1212_v1 }
 0xdde   :  { %v5747_v10 = vpop.f32.mrf.mxu2 }
 0xde6   :  { %v5749_v11 = vpop.f32.mrf.mxu2 }
 0xde8   :  { %v1611_v58 = vpop.xlane.xlu0 %1610 }
 0xde9   :  { %v1615_v46 = vmul.f32 %v1611_v58, %v5506_v13 }
 0xe03   :  { %v1357_v12 = vpop.f32.mrf.mxu2 }
 0xe04   :  { %v1358_v14 = vadd.f32 %v1357_v12, %v5600_v3  ;;  %v5765_v3 = vld [vmem:[%s6626_s1 + $0x8] sm:$0xff] }
 0xe05   :  { %v1608_v23 = vmul.f32 %v5765_v3, %v5765_v3 }
 0xe06   :  { %v1362_v16 = vsel %vm257_vm10, %v1358_v14, -inf }
 0xe07   :  { %1363 = vmax.xlane.f32.xlu1 %v1362_v16  ;;  %v1612_v24 = vsel %vm114_vm0, %v1608_v23, 0.0 }
 0xe08   :  { %1613 = vadd.xlane.f32.xlu0 %v1612_v24 }
 0xe0b   :  { %v1359_v17 = vpop.f32.mrf.mxu2 }
 0xe0c   :  { %v1360_v18 = vadd.f32 %v1359_v17, %v5607_v7 }
 0xe0e   :  { %v1365_v19 = vsel %vm257_vm10, %v1360_v18, -inf }
 0xe0f   :  { %1366 = vmax.xlane.f32.xlu2 %v1365_v19 }
 0xe41   :  { %v1081_v7 = vpop.f32.mrf.mxu3 }
 0xe42   :  { %v1082_v39 = vadd.f32 %v1081_v7, %v5568_v44 }
 0xe44   :  { %v1086_v40 = vsel %vm257_vm10, %v1082_v39, -inf }
 0xe49   :  { %v1083_v25 = vpop.f32.mrf.mxu3 }
 0xe4a   :  { %v1084_v41 = vadd.f32 %v1083_v25, %v5575_v50  ;;  %v1617_v50 = vadd.f32 1e-06, %v1615_v46 }
 0xe4c   :  { %v1089_v42 = vsel %vm257_vm10, %v1084_v41, -inf  ;;  %vm1625_vm12 = vweird.f32 %v1617_v50 }
 0xe51   :  { %v1228_v49 = vpop.f32.mrf.mxu3 }
 0xe52   :  { %v5785_v43 = vadd.f32 %v1228_v49, %v5582_v55 }
 0xe54   :  { %v1233_v45 = vsel %vm257_vm10, %v5785_v43, -inf }
 0xe59   :  { %v1230_v26 = vpop.f32.mrf.mxu3 }
 0xe5a   :  { %v5772_v27 = vadd.f32 %v1230_v26, %v5591_v60 }
 0xe5c   :  { %v1236_v53 = vsel %vm257_vm10, %v5772_v27, -inf }
 0xe5d   :  { %1237 = vmax.xlane.f32.xlu2 %v1236_v53  ;;  %v5002_v53 = vld [vmem:[%s6554_s13] ss:$0 sm:$0xff] }
 0xe7a   :  { %v1364_v28 = vpop.xlane.xlu1 %1363 }
 0xe7b   :  { %v1368_v29 = vsub.f32 %v1358_v14, %v1364_v28  ;;  %v1614_v44 = vpop.xlane.xlu0 %1613 }
 0xe7c   :  { %v1616_v0 = vmul.f32 %v1614_v44, %v5506_v13 }
 0xe7d   :  { %v1370_v30 = vmul.f32 1.442695, %v1368_v29 }
 0xe7e   :  { %v1618_v63 = vadd.f32 1e-06, %v1616_v0 }
 0xe7f   :  { %5065 = vpow2.f32 %v1370_v30 }
 0xe80   :  { %vm1635_vm14 = vweird.f32 %v1618_v63 }
 0xe82   :  { %v1367_v32 = vpop.xlane.xlu2 %1366 }
 0xe83   :  { %v1369_v33 = vsub.f32 %v1360_v18, %v1367_v32  ;;  %v4840_v18 = vld [vmem:[%s6555_s14] sm:$0xff] }
 0xe85   :  { %v5066_v34 = vpop.eup %5065  ;;  %v1372_v36 = vmul.f32 1.442695, %v1369_v33 }
 0xe86   :  { %v1374_v38 = vsel %vm257_vm10, %v5066_v34, 0.0 }
 0xe87   :  { %5067 = vpow2.f32 %v1372_v36  ;;  %1375 = vadd.xlane.f32.xlu0 %v1374_v38 }
 0xe88   :  { %5069 = vrsqrt.f32 %v1617_v50 }
 0xe89   :  { %5071 = vrsqrt.f32 %v1618_v63 }
 0xe8d   :  { %v5068_v37 = vpop.eup %5067 }
 0xe8e   :  { %v1377_v60 = vsel %vm257_vm10, %v5068_v37, 0.0  ;;  %v5070_v47 = vpop.eup %5069 }
 0xe8f   :  { %1378 = vadd.xlane.f32.xlu1 %v1377_v60  ;;  %v5072_v51 = vpop.eup %5071  ;;  %v1620_v52 = vmul.f32 %v5070_v47, %v1617_v50  ;;  %vm1626_vm13 = vweird.f32 %v5070_v47 }
 0xe90   :  { %v1630_v1 = vmul.f32 %v5072_v51, %v1618_v63  ;;  %vm1636_vm15 = vweird.f32 %v5072_v51  ;;  %vm1627_vm1 = vmor %vm1625_vm12, %vm1626_vm13 }
 0xe91   :  { %v1621_v56 = vmul.f32 %v5070_v47, %v1620_v52  ;;  %vm1637_vm3 = vmor %vm1635_vm14, %vm1636_vm15 }
 0xe92   :  { %v1631_v57 = vmul.f32 %v5072_v51, %v1630_v1 }
 0xe93   :  { %v1622_v59 = vmul.f32 0.5, %v1621_v56 }
 0xe94   :  { %v1632_v61 = vmul.f32 0.5, %v1631_v57 }
 0xe95   :  { %v1623_v8 = vsub.f32 1.5, %v1622_v59 }
 0xe96   :  { %v1633_v9 = vsub.f32 1.5, %v1632_v61 }
 0xe97   :  { %1087 = vmax.xlane.f32.xlu1 %v1086_v40  ;;  %v1624_v19 = vmul.f32 %v5070_v47, %v1623_v8 }
 0xe98   :  { %v1634_v21 = vmul.f32 %v5072_v51, %v1633_v9 }
 0xe99   :  { %v1628_v23 = vsel %vm1627_vm1, %v5070_v47, %v1624_v19 }
 0xe9a   :  { %v1638_v24 = vsel %vm1637_vm3, %v5072_v51, %v1634_v21  ;;  %v1639_v28 = vmul.f32 %v1628_v23, %v5758_v20 }
 0xe9b   :  { %1385 = vrot.lane.b32.xlu0 %v5710_v15, %s6627_s5  ;;  %v1640_v29 = vmul.f32 %v1638_v24, %v5765_v3 }
 0xe9c   :  { %v1644_v30 = vmul.f32 %v5002_v53, %v1639_v28 }
 0xe9d   :  { %v1645_v32 = vmul.f32 %v5002_v53, %v1640_v29 }
 0xe9f   :  { %1090 = vmax.xlane.f32.xlu1 %v1089_v42  ;;  %v1646_v36 = vpack.c.bf16 %v1645_v32, %v1644_v30 }
 0xec5   :  { %1234 = vmax.xlane.f32.xlu0 %v1233_v45 }
 0xed0   :  { %v1238_v38 = vpop.xlane.xlu2 %1237 }
 0xed1   :  { %v1240_v3 = vsub.f32 %v5772_v27, %v1238_v38 }
 0xefa   :  { %v1376_v55 = vpop.xlane.xlu0 %1375 }
 0xf02   :  { %v1379_v54 = vpop.xlane.xlu1 %1378 }
 0xf03   :  { %5073 = vrcp.f32 %v1379_v54  ;;  %v4575_v54 = vld [vmem:[%s6619_s7 + $0x1c] sm:$0xf] }
 0xf04   :  { %5075 = vrcp.f32 %v1376_v55  ;;  %v1412_v59 = vsel %vm239_vm8, %v4575_v54, 0 }
 0xf09   :  { %v5074_v48 = vpop.eup %5073 }
 0xf0a   :  { %v5076_v62 = vpop.eup %5075  ;;  %v1088_v2 = vpop.xlane.xlu1 %1087  ;;  %v1383_v4 = vmul.f32 %v5074_v48, %v5068_v37 }
 0xf0b   :  { %v1092_v5 = vsub.f32 %v1082_v39, %v1088_v2  ;;  %v1382_v12 = vmul.f32 %v5076_v62, %v5066_v34  ;;  %v1243_v39 = vmul.f32 1.442695, %v1240_v3 }
 0xf0d   :  { %v1094_v14 = vmul.f32 1.442695, %v1092_v5  ;;  %v1386_v16 = vpop.permute.xlu0 %1385  ;;  %v1384_v17 = vpack.c.bf16 %v1383_v4, %v1382_v12  ;;  %v4566_v5 = vld [vmem:[%s6619_s7 + $0x14] sm:$0xf] }
 0xf0e   :  { %1398 = vmatpush.bf16.msra.mxu3 %v1386_v16 }
 0xf0f   :  { %5077 = vpow2.f32 %v1094_v14 }
 0xf11   :  { %4574 = vmatmul.msk.bf16.vlgmr.msra.gmra.mxu3 %vm257_vm10, %v1384_v17  ;;  %v4571_v17 = vld [vmem:[%s6619_s7 + $0x18] sm:$0xf]  ;;  %s6630_s7 = sld [smem:[#allocation11_spill]] }
 0xf12   :  { %1672 = vmatpush.bf16.msrb.mxu3 %v4841_v6  ;;  %v1091_v22 = vpop.xlane.xlu1 %1090  ;;  %v1136_v6 = vsel %vm239_vm8, %v4566_v5, 0 }
 0xf13   :  { %v1093_v7 = vsub.f32 %v1084_v41, %v1091_v22  ;;  %1145 = vmatpush.bf16.msrb.mxu1 %v1136_v6 }
 0xf15   :  { %v5078_v25 = vpop.eup %5077  ;;  %v1096_v49 = vmul.f32 1.442695, %v1093_v7 }
 0xf16   :  { %1673 = vmatpush.bf16.msrb.mxu3 %v4840_v18  ;;  %v1098_v26 = vsel %vm257_vm10, %v5078_v25, 0.0  ;;  %v1283_v18 = vsel %vm239_vm8, %v4571_v17, 0 }
 0xf17   :  { %5079 = vpow2.f32 %v1096_v49  ;;  %1099 = vadd.xlane.f32.xlu1 %v1098_v26  ;;  %1292 = vmatpush.bf16.msra.mxu1 %v1283_v18 }
 0xf1d   :  { %v5080_v33 = vpop.eup %5079 }
 0xf1e   :  { %v1101_v34 = vsel %vm257_vm10, %v5080_v33, 0.0 }
 0xf1f   :  { %1102 = vadd.xlane.f32.xlu2 %v1101_v34 }
 0xf21   :  { %4624 = vmatmul.msk.bf16.vlgmr.msrb.gmra.mxu3 %vm114_vm0, %v1646_v36 }
 0xf30   :  { %1109 = vrot.lane.b32.xlu1 %v5710_v15, %s6628_s30 }
 0xf38   :  { %v1235_v37 = vpop.xlane.xlu0 %1234 }
 0xf39   :  { %v1239_v20 = vsub.f32 %v5785_v43, %v1235_v37 }
 0xf3b   :  { %v1241_v60 = vmul.f32 1.442695, %v1239_v20 }
 0xf3d   :  { %5081 = vpow2.f32 %v1241_v60 }
 0xf3e   :  { %5083 = vpow2.f32 %v1243_v39 }
 0xf43   :  { %v5082_v40 = vpop.eup %5081 }
 0xf44   :  { %v1245_v41 = vsel %vm257_vm10, %v5082_v40, 0.0  ;;  %v5084_v42 = vpop.eup %5083 }
 0xf45   :  { %1246 = vadd.xlane.f32.xlu2 %v1245_v41  ;;  %v1248_v45 = vsel %vm257_vm10, %v5084_v42, 0.0 }
 0xf4d   :  { %1249 = vadd.xlane.f32.xlu2 %v1248_v45 }
 0xf65   :  { %1256 = vrot.lane.b32.xlu2 %v5710_v15, %s6629_s8 }
 0xf8a   :  { %v1100_v43 = vpop.xlane.xlu1 %1099 }
 0xf92   :  { %v1103_v58 = vpop.xlane.xlu2 %1102 }
 0xf93   :  { %5085 = vrcp.f32 %v1103_v58 }
 0xf94   :  { %v1400_v44 = vpop.f32.mrf.mxu3  ;;  %5087 = vrcp.f32 %v1100_v43 }
 0xf99   :  { %v5086_v46 = vpop.eup %5085 }
 0xf9a   :  { %v5088_v0 = vpop.eup %5087  ;;  %v1107_v50 = vmul.f32 %v5086_v46, %v5080_v33  ;;  %v93_v33 = vld [vmem:[%s6630_s7] sm:$0xff] }
 0xf9b   :  { %v1106_v63 = vmul.f32 %v5088_v0, %v5078_v25 }
 0xf9c   :  { %v1402_v27 = vpop.f32.mrf.mxu3 }
 0xf9d   :  { %v1108_v51 = vpack.c.bf16 %v1107_v50, %v1106_v63  ;;  %v1405_v4 = vpack.c.bf16 %v1402_v27, %v1400_v44  ;;  %v4834_v50 = vld [vmem:[%s6620_s28 + $0x10] sm:$0xff] }
 0xfa2   :  { %v1110_v47 = vpop.permute.xlu1 %1109 }
 0xfa3   :  { %1122 = vmatpush.bf16.msra.mxu0 %v1110_v47 }
 0xfa4   :  { %v5814_v52 = vpop.f32.mrf.mxu3 }
 0xfa5   :  { %1683 = vrot.lane.b32.xlu1 %v5814_v52, %s6597_s6 }
 0xfa6   :  { %4565 = vmatmul.msk.bf16.vlgmr.msra.gmra.mxu0 %vm257_vm10, %v1108_v51 }
 0xfac   :  { %v5819_v15 = vpop.f32.mrf.mxu3 }
 0xfad   :  { %1685 = vrot.lane.b32.xlu0 %v5819_v15, %s6597_s6  ;;  %v5842_v25 = vpack.c.bf16 %v5819_v15, %v5814_v52  ;;  %s6631_s6 = smov 64   ;;  %v4920_v27 = vpack.i.bf16 %v5819_v15, %v5814_v52 }
 0xfb8   :  { %v1247_v1 = vpop.xlane.xlu2 %1246 }
 0xfb9   :  { %5089 = vrcp.f32 %v1247_v1 }
 0xfbf   :  { %v5090_v56 = vpop.eup %5089 }
 0xfc0   :  { %v1250_v55 = vpop.xlane.xlu2 %1249  ;;  %v1253_v61 = vmul.f32 %v5090_v56, %v5082_v40 }
 0xfc1   :  { %5091 = vrcp.f32 %v1250_v55 }
 0xfc7   :  { %v5092_v57 = vpop.eup %5091 }
 0xfc8   :  { %v1254_v48 = vmul.f32 %v5092_v57, %v5084_v42  ;;  %v1257_v62 = vpop.permute.xlu2 %1256 }
 0xfc9   :  { %1269 = vmatpush.bf16.msrb.mxu0 %v1257_v62 }
 0xfca   :  { %v1255_v2 = vpack.c.bf16 %v1254_v48, %v1253_v61 }
 0xfcc   :  { %4570 = vmatmul.msk.bf16.vlgmr.msrb.gmra.mxu0 %vm257_vm10, %v1255_v2 }
 0xfcd   :  { %1421 = vmatpush.bf16.msra.mxu0 %v1412_v59 }
 0xfdc   :  { %4576 = vmatmul.msk.bf16.vlgmr.msra.gmra.mxu0 %vm235_vm9, %v1405_v4 }
0x1017   :  { %v1684_v8 = vpop.permute.xlu1 %1683 }
0x1018   :  { %1689 = vxpose.xlu1.b32.start [1/2] (short) (narrow) %v1684_v8, 8 }
0x101f   :  { %v1686_v9 = vpop.permute.xlu0 %1685 }
0x1020   :  { %1690 = vxpose.xlu1.b32.end [2/2] (short) (narrow) %v1686_v9, 8 }
0x1023   :  { %v1124_v12 = vpop.f32.mrf.mxu0 }
0x102b   :  { %v1126_v14 = vpop.f32.mrf.mxu0 }
0x102c   :  { %v1129_v16 = vpack.c.bf16 %v1126_v14, %v1124_v12 }
0x102e   :  { %4567 = vmatmul.msk.bf16.vlgmr.msrb.gmra.mxu1 %vm235_vm9, %v1129_v16 }
0x1049   :  { %v1271_v19 = vpop.f32.mrf.mxu0 }
0x1051   :  { %v1273_v21 = vpop.f32.mrf.mxu0 }
0x1052   :  { %v1276_v22 = vpack.c.bf16 %v1273_v21, %v1271_v19 }
0x1054   :  { %4572 = vmatmul.msk.bf16.vlgmr.msra.gmra.mxu1 %vm235_vm9, %v1276_v22 }
0x1059   :  { %v1423_v26 = vpop.f32.mrf.mxu0 }
0x1061   :  { %v1425_v29 = vpop.f32.mrf.mxu0 }
0x10ab   :  { %v1147_v49 = vpop.f32.mrf.mxu1 }
0x10ac   :  { %v1168_v30 = vadd.f32 %v5747_v10, %v1147_v49  ;;  %v94_v10 = vld [vmem:[%s6630_s7 + $0x8] sm:$0xff] }
0x10b3   :  { %v1149_v53 = vpop.f32.mrf.mxu1 }
0x10b4   :  { %v1170_v37 = vadd.f32 %v5749_v11, %v1149_v53 }
0x10bc   :  { %v1705_v7 = vpop.trf.xlu1 }
0x10bd   :  { %v1721_v23 = vpack.c.bf16 %v1705_v7, %v1705_v7  ;;  %v5003_v7 = vld [vmem:[%s6621_s3 + $0x1] ss:$0 sm:$0xff] }
0x10bf   :  { %v1726_v24 = vsel %vm239_vm8, %v1721_v23, 0 }
0x10c0   :  { %1735 = vmatpush.bf16.msrb.mxu0 %v1726_v24 }
0x10c3   :  { %4625 = vmatmul.msk.bf16.vlgmr.msrb.gmra.mxu0 %vm235_vm9, %v5842_v25 }
0x10d1   :  { %v1294_v28 = vpop.f32.mrf.mxu1 }
0x10d2   :  { %v1299_v32 = vadd.f32 %v1294_v28, %v1168_v30 }
0x10d4   :  { %v1428_v34 = vadd.f32 %v1423_v26, %v1299_v32 }
0x10d6   :  { %v5852_v3 = vadd.f32 %v1428_v34, %v5683_v31 }
0x10d8   :  { %v1434_v41 = vmul.f32 %v5852_v3, %v5852_v3 }
0x10d9   :  { %v1296_v36 = vpop.f32.mrf.mxu1 }
0x10da   :  { %v1300_v60 = vadd.f32 %v1296_v36, %v1170_v37  ;;  %v1436_v58 = vsel %vm114_vm0, %v1434_v41, 0.0  ;;  %v4837_v36 = vld [vmem:[%s6552_s11 + $0x28] sm:$0xff] }
0x10dc   :  { %v1429_v40 = vadd.f32 %v1425_v29, %v1300_v60  ;;  %v4839_v29 = vld [vmem:[%s6552_s11 + $0x38] sm:$0xff] }
0x10dd   :  { %1551 = vmatpush.bf16.msrb.mxu2 %v4839_v29 }
0x10de   :  { %v5861_v11 = vadd.f32 %v1429_v40, %v5689_v35  ;;  %v4835_v35 = vld [vmem:[%s6620_s28 + $0x18] sm:$0xff]  ;;  %s5350_s28 = smov 1.0  }
0x10df   :  { %1500 = vmatpush.bf16.msrb.mxu1 %v4835_v35 }
0x10e0   :  { %v1435_v44 = vmul.f32 %v5861_v11, %v5861_v11 }
0x10e2   :  { %v1439_v43 = vsel %vm114_vm0, %v1435_v44, 0.0 }
0x10e3   :  { %1501 = vmatpush.bf16.msrb.mxu1 %v4834_v50 }
0x1140   :  { %v1737_v38 = vpop.f32.mrf.mxu0 }
0x1141   :  { %v1738_v20 = vadd.f32 %v1737_v38, %v93_v33  ;;  %v4838_v33 = vld [vmem:[%s6552_s11 + $0x30] sm:$0xff] }
0x1142   :  { %1552 = vmatpush.bf16.msrb.mxu2 %v4838_v33 }
0x1143   :  { %v1742_v39 = vsel %vm257_vm10, %v1738_v20, -inf }
0x1144   :  { %1743 = vmax.xlane.f32.xlu2 %v1742_v39 }
0x1146   :  { %1553 = vmatpush.bf16.msrb.mxu2 %v4837_v36 }
0x1148   :  { %v1739_v42 = vpop.f32.mrf.mxu0 }
0x1149   :  { %v1740_v45 = vadd.f32 %v1739_v42, %v94_v10 }
0x114b   :  { %v1745_v31 = vsel %vm257_vm10, %v1740_v45, -inf }
0x114c   :  { %1746 = vmax.xlane.f32.xlu0 %v1745_v31  ;;  %1437 = vadd.xlane.f32.xlu2 %v1436_v58 }
0x1154   :  { %1440 = vadd.xlane.f32.xlu0 %v1439_v43 }
0x1168   :  { %1766 = vrot.lane.b32.xlu0 %v5842_v25, %s6631_s6 }
0x1170   :  { %4921 = vrot.lane.b32.xlu0 %v4920_v27, %s6622_s10 }
0x1178   :  { %1827 = vrot.lane.b32.xlu0 %v5842_v25, %s6625_s27 }
0x11b7   :  { %v1744_v46 = vpop.xlane.xlu2 %1743 }
0x11b8   :  { %v1748_v0 = vsub.f32 %v1738_v20, %v1744_v46 }
0x11ba   :  { %v1750_v63 = vmul.f32 1.442695, %v1748_v0 }
0x11bc   :  { %5093 = vpow2.f32 %v1750_v63 }
0x11bf   :  { %v1747_v47 = vpop.xlane.xlu0 %1746  ;;  %v1438_v51 = vpop.xlane.xlu2 %1437 }
0x11c0   :  { %v1749_v52 = vsub.f32 %v1740_v45, %v1747_v47  ;;  %v1442_v15 = vmul.f32 %v1438_v51, %v5506_v13  ;;  %v4836_v45 = vld [vmem:[%s6552_s11 + $0x20] sm:$0xff]  ;;  %s6634_s11 = sld [smem:[#allocation12_spill]] }
0x11c1   :  { %1554 = vmatpush.bf16.msrb.mxu2 %v4836_v45  ;;  %v1787_v51 = vld [vmem:[%s6556_s15] sm:$0xf] }
0x11c2   :  { %v5094_v1 = vpop.eup %5093  ;;  %v1752_v55 = vmul.f32 1.442695, %v1749_v52  ;;  %v1444_v54 = vadd.f32 1e-06, %v1442_v15  ;;  %v1919_v52 = vsel %vm239_vm8, %v1787_v51, 0 }
0x11c3   :  { %v1754_v56 = vsel %vm257_vm10, %v5094_v1, 0.0 }
0x11c4   :  { %5095 = vpow2.f32 %v1752_v55  ;;  %1755 = vadd.xlane.f32.xlu1 %v1754_v56  ;;  %vm1452_vm5 = vweird.f32 %v1444_v54 }
0x11c5   :  { %5097 = vrsqrt.f32 %v1444_v54 }
0x11c7   :  { %v1441_v57 = vpop.xlane.xlu0 %1440 }
0x11c8   :  { %v1443_v59 = vmul.f32 %v1441_v57, %v5506_v13 }
0x11ca   :  { %v5096_v61 = vpop.eup %5095  ;;  %v1445_v48 = vadd.f32 1e-06, %v1443_v59 }
0x11cb   :  { %v5098_v62 = vpop.eup %5097  ;;  %v1757_v2 = vsel %vm257_vm10, %v5096_v61, 0.0 }
0x11cc   :  { %v1447_v4 = vmul.f32 %v5098_v62, %v1444_v54  ;;  %5099 = vrsqrt.f32 %v1445_v48  ;;  %1758 = vadd.xlane.f32.xlu2 %v1757_v2  ;;  %vm1453_vm4 = vweird.f32 %v5098_v62  ;;  %vm1462_vm11 = vweird.f32 %v1445_v48 }
0x11cd   :  { %vm1454_vm6 = vmor %vm1452_vm5, %vm1453_vm4 }
0x11ce   :  { %v1448_v5 = vmul.f32 %v5098_v62, %v1447_v4 }
0x11d0   :  { %v1449_v6 = vmul.f32 0.5, %v1448_v5 }
0x11d2   :  { %v5100_v8 = vpop.eup %5099  ;;  %v1450_v9 = vsub.f32 1.5, %v1449_v6 }
0x11d3   :  { %v1457_v12 = vmul.f32 %v5100_v8, %v1445_v48  ;;  %vm1463_vm7 = vweird.f32 %v5100_v8 }
0x11d4   :  { %v1451_v14 = vmul.f32 %v5098_v62, %v1450_v9  ;;  %vm1464_vm12 = vmor %vm1462_vm11, %vm1463_vm7 }
0x11d5   :  { %v1458_v16 = vmul.f32 %v5100_v8, %v1457_v12 }
0x11d6   :  { %v1455_v18 = vsel %vm1454_vm6, %v5098_v62, %v1451_v14 }
0x11d7   :  { %v1459_v17 = vmul.f32 0.5, %v1458_v16  ;;  %v1466_v23 = vmul.f32 %v1455_v18, %v5852_v3 }
0x11d9   :  { %v1460_v19 = vsub.f32 1.5, %v1459_v17  ;;  %v1471_v26 = vmul.f32 %v5003_v7, %v1466_v23  ;;  %v95_v23 = vld [vmem:[%s6630_s7 + $0x10] sm:$0xff] }
0x11da   :  { %v1767_v21 = vpop.permute.xlu0 %1766 }
0x11db   :  { %v1461_v22 = vmul.f32 %v5100_v8, %v1460_v19  ;;  %1779 = vmatpush.bf16.msra.mxu1 %v1767_v21  ;;  %v100_v19 = vld [vmem:[%s6630_s7 + $0x38] sm:$0xff] }
0x11dd   :  { %v1465_v24 = vsel %vm1464_vm12, %v5100_v8, %v1461_v22 }
0x11de   :  { %v1467_v49 = vmul.f32 %v1465_v24, %v5861_v11 }
0x11e0   :  { %v1472_v53 = vmul.f32 %v5003_v7, %v1467_v49 }
0x11e2   :  { %v1473_v28 = vpack.c.bf16 %v1472_v53, %v1471_v26  ;;  %v4922_v38 = vpop.permute.xlu0 %4921  ;;  %v96_v53 = vld [vmem:[%s6630_s7 + $0x18] sm:$0xff] }
0x11e3   :  { %v4923_v10 = vunpack.i.l.bf16 %v4922_v38  ;;  %v4924_v44 = vunpack.i.h.bf16 %v4922_v38  ;;  %v97_v38 = vld [vmem:[%s6630_s7 + $0x20] sm:$0xff] }
0x11e4   :  { %4916 = vrot.lane.b32.xlu2 %v4920_v27, %s6632_s9  ;;  %4590 = vmatmul.msk.bf16.vlgmr.msrb.gmra.mxu1 %vm114_vm0, %v1473_v28 }
0x11e5   :  { %1928 = vmatpush.bf16.msrb.mxu1 %v1919_v52 }
0x11ea   :  { %v1828_v57 = vpop.permute.xlu0 %1827 }
0x11ec   :  { %4926 = vrot.lane.b32.xlu2 %v4920_v27, %s6633_s0 }
0x11f4   :  { %1974 = vrot.lane.b32.xlu2 %v5842_v25, %s6623_s29 }
0x11fc   :  { %2103 = vrot.lane.b32.xlu2 %v5842_v25, %s6624_s2 }
0x1237   :  { %v1756_v30 = vpop.xlane.xlu1 %1755 }
0x1238   :  { %5101 = vrcp.f32 %v1756_v30 }
0x123e   :  { %v5102_v34 = vpop.eup %5101 }
0x123f   :  { %v1759_v32 = vpop.xlane.xlu2 %1758  ;;  %v1762_v20 = vmul.f32 %v5102_v34, %v5094_v1 }
0x1240   :  { %5103 = vrcp.f32 %v1759_v32  ;;  %v99_v32 = vld [vmem:[%s6630_s7 + $0x30] sm:$0xff] }
0x1246   :  { %v5104_v37 = vpop.eup %5103 }
0x1247   :  { %v1763_v60 = vmul.f32 %v5104_v37, %v5096_v61  ;;  %v4917_v39 = vpop.permute.xlu2 %4916 }
0x1248   :  { %v4918_v40 = vunpack.i.l.bf16 %v4917_v39  ;;  %v4919_v31 = vunpack.i.h.bf16 %v4917_v39 }
0x1249   :  { %v1764_v41 = vpack.c.bf16 %v1763_v60, %v1762_v20  ;;  %v98_v60 = vld [vmem:[%s6630_s7 + $0x28] sm:$0xff] }
0x124a   :  { %v4930_v42 = vpack.i.bf16 %v4923_v10, %v4918_v40  ;;  %v4932_v27 = vpack.i.bf16 %v4924_v44, %v4919_v31 }
0x124b   :  { %4626 = vmatmul.msk.bf16.vlgmr.msra.gmra.mxu1 %vm257_vm10, %v1764_v41 }
0x124c   :  { %4931 = vxpose.xlu0.b32.start [1/2] (short) (narrow) %v4930_v42, 8 }
0x124f   :  { %v4927_v58 = vpop.permute.xlu2 %4926 }
0x1250   :  { %v4928_v43 = vunpack.i.l.bf16 %v4927_v58  ;;  %v4929_v35 = vunpack.i.h.bf16 %v4927_v58 }
0x1252   :  { %2070 = vxpose.xlu2.b32.start [1/2] (short) (narrow) %v4928_v43, 8 }
0x1254   :  { %4933 = vxpose.xlu0.b32.end [2/2] (short) (narrow) %v4932_v27, 8 }
0x1257   :  { %v1975_v54 = vpop.permute.xlu2 %1974 }
0x125a   :  { %2071 = vxpose.xlu2.b32.end [2/2] (short) (narrow) %v4929_v35, 8 }
0x125f   :  { %v2104_v56 = vpop.permute.xlu2 %2103 }
0x1261   :  { %v1503_v46 = vpop.f32.mrf.mxu1 }
0x1262   :  { %v1508_v50 = vmax.f32 %v1503_v46, 0.0 }
0x1269   :  { %v1505_v0 = vpop.f32.mrf.mxu1 }
0x126a   :  { %v1509_v63 = vmax.f32 %v1505_v0, 0.0 }
0x126c   :  { %v1510_v47 = vpack.c.bf16 %v1509_v63, %v1508_v50 }
0x126e   :  { %4615 = vmatmul.msk.bf16.vlgmr.msrb.gmra.mxu2 %vm820_vm2, %v1510_v47 }
0x12c8   :  { %v1781_v15 = vpop.f32.mrf.mxu1 }
0x12d0   :  { %v1783_v1 = vpop.f32.mrf.mxu1 }
0x12d1   :  { %v1786_v55 = vpack.c.bf16 %v1783_v1, %v1781_v15 }
0x12d3   :  { %4631 = vmatmul.msk.bf16.vlgmr.msrb.gmra.mxu1 %vm235_vm9, %v1786_v55 }
0x12eb   :  { %v2086_v59 = vpop.trf.xlu2 }
0x12ec   :  { %v2102_v61 = vpack.c.bf16 %v2086_v59, %v2086_v59 }
0x12ee   :  { %v2109_v48 = vsel %vm239_vm8, %v2102_v61, 0 }
0x12ef   :  { %2118 = vmatpush.bf16.msra.mxu1 %v2109_v48 }
0x12f0   :  { %v4934_v62 = vpop.trf.xlu0 }
0x12f1   :  { %v4938_v2 = vunpack.i.h.bf16 %v4934_v62  ;;  %v4935_v4 = vunpack.i.l.bf16 %v4934_v62  ;;  %v5926_v16 = vpop.f32.mrf.mxu2 }
0x12f2   :  { %4636 = vmatmul.msk.bf16.vlgmr.msra.gmra.mxu1 %vm235_vm9, %v2104_v56 }
0x12f3   :  { %v1826_v5 = vpack.c.bf16 %v4935_v4, %v4935_v4  ;;  %v1973_v6 = vpack.c.bf16 %v4938_v2, %v4938_v2 }
0x12f5   :  { %v1833_v8 = vsel %vm239_vm8, %v1826_v5, 0  ;;  %v1980_v9 = vsel %vm239_vm8, %v1973_v6, 0  ;;  %v5970_v6 = vadd.f32 %v5926_v16, %v5852_v3 }
0x12f6   :  { %1842 = vmatpush.bf16.msra.mxu2 %v1833_v8 }
0x12f9   :  { %4627 = vmatmul.msk.bf16.vlgmr.msra.gmra.mxu2 %vm235_vm9, %v1828_v57  ;;  %v5928_v18 = vpop.f32.mrf.mxu2 }
0x12fa   :  { %1989 = vmatpush.bf16.msrb.mxu2 %v1980_v9  ;;  %v5977_v9 = vadd.f32 %v5928_v18, %v5861_v11 }
0x1309   :  { %4632 = vmatmul.msk.bf16.vlgmr.msrb.gmra.mxu2 %vm235_vm9, %v1975_v54 }
0x1350   :  { %v5922_v12 = vpop.f32.mrf.mxu1 }
0x1358   :  { %v5924_v14 = vpop.f32.mrf.mxu1 }
0x136f   :  { %v2120_v17 = vpop.f32.mrf.mxu1 }
0x1370   :  { %v2121_v33 = vadd.f32 %v2120_v17, %v99_v32 }
0x1372   :  { %v2125_v36 = vsel %vm257_vm10, %v2121_v33, -inf }
0x1377   :  { %v2122_v21 = vpop.f32.mrf.mxu1 }
0x1378   :  { %v2123_v22 = vadd.f32 %v2122_v21, %v100_v19  ;;  %v1565_v19 = vmul.f32 %v5977_v9, %v5977_v9 }
0x137a   :  { %v2128_v7 = vsel %vm257_vm10, %v2123_v22, -inf  ;;  %v1569_v21 = vsel %vm114_vm0, %v1565_v19, 0.0  ;;  %v4634_v19 = vld [vmem:[%s6556_s15 + $0x8] sm:$0xf] }
0x137b   :  { %2129 = vmax.xlane.f32.xlu2 %v2128_v7 }
0x137c   :  { %v1844_v24 = vpop.f32.mrf.mxu2 }
0x137d   :  { %v1845_v49 = vadd.f32 %v1844_v24, %v95_v23 }
0x137f   :  { %v1849_v26 = vsel %vm257_vm10, %v1845_v49, -inf }
0x1380   :  { %1850 = vmax.xlane.f32.xlu0 %v1849_v26 }
0x1384   :  { %v1846_v28 = vpop.f32.mrf.mxu2 }
0x1385   :  { %v1847_v29 = vadd.f32 %v1846_v28, %v96_v53 }
0x1387   :  { %v1852_v30 = vsel %vm257_vm10, %v1847_v29, -inf }
0x1388   :  { %1853 = vmax.xlane.f32.xlu1 %v1852_v30 }
0x138c   :  { %v1991_v34 = vpop.f32.mrf.mxu2 }
0x138d   :  { %v1992_v37 = vadd.f32 %v1991_v34, %v97_v38 }
0x138f   :  { %v1996_v20 = vsel %vm257_vm10, %v1992_v37, -inf }
0x1390   :  { %2126 = vmax.xlane.f32.xlu1 %v2125_v36 }
0x1393   :  { %2019 = vrot.lane.b32.xlu2 %v5842_v25, %s6629_s8 }
0x1394   :  { %v1993_v39 = vpop.f32.mrf.mxu2 }
0x1395   :  { %v1994_v10 = vadd.f32 %v1993_v39, %v98_v60 }
0x1397   :  { %v1999_v40 = vsel %vm257_vm10, %v1994_v10, -inf }
0x1398   :  { %1997 = vmax.xlane.f32.xlu1 %v1996_v20  ;;  %v4845_v20 = vld [vmem:[%s6559_s18 + $0x8] sm:$0xff] }
0x1399   :  { %2294 = vmatpush.bf16.msrb.mxu1 %v4845_v20 }
0x13a0   :  { %2000 = vmax.xlane.f32.xlu1 %v1999_v40 }
0x13ee   :  { %v2130_v50 = vpop.xlane.xlu2 %2129 }
0x13ef   :  { %v2132_v51 = vsub.f32 %v2123_v22, %v2130_v50 }
0x13f1   :  { %v2135_v15 = vmul.f32 1.442695, %v2132_v51 }
0x13f3   :  { %v1851_v41 = vpop.xlane.xlu0 %1850 }
0x13f4   :  { %v1855_v42 = vsub.f32 %v1845_v49, %v1851_v41 }
0x13f6   :  { %v1857_v45 = vmul.f32 1.442695, %v1855_v42  ;;  %v2020_v11 = vpop.permute.xlu2 %2019  ;;  %v4844_v42 = vld [vmem:[%s6559_s18] sm:$0xff] }
0x13f7   :  { %2295 = vmatpush.bf16.msrb.mxu1 %v4844_v42 }
0x13f8   :  { %5105 = vpow2.f32 %v1857_v45 }
0x13fb   :  { %v1854_v31 = vpop.xlane.xlu1 %1853 }
0x13fc   :  { %v1856_v58 = vsub.f32 %v1847_v29, %v1854_v31 }
0x13fe   :  { %v5106_v44 = vpop.eup %5105  ;;  %v1859_v43 = vmul.f32 1.442695, %v1856_v58 }
0x13ff   :  { %v1861_v27 = vsel %vm257_vm10, %v5106_v44, 0.0 }
0x1400   :  { %5107 = vpow2.f32 %v1859_v43  ;;  %1862 = vadd.xlane.f32.xlu1 %v1861_v27 }
0x1403   :  { %v2127_v35 = vpop.xlane.xlu1 %2126 }
0x1404   :  { %v2131_v57 = vsub.f32 %v2121_v33, %v2127_v35 }
0x1406   :  { %v5108_v46 = vpop.eup %5107  ;;  %v2133_v59 = vmul.f32 1.442695, %v2131_v57 }
0x1407   :  { %v1864_v0 = vsel %vm257_vm10, %v5108_v46, 0.0 }
0x1408   :  { %1865 = vadd.xlane.f32.xlu1 %v1864_v0 }
0x140b   :  { %v1998_v63 = vpop.xlane.xlu1 %1997 }
0x140c   :  { %v2002_v47 = vsub.f32 %v1992_v37, %v1998_v63 }
0x140e   :  { %v2004_v52 = vmul.f32 1.442695, %v2002_v47 }
0x1410   :  { %5109 = vpow2.f32 %v2004_v52 }
0x1411   :  { %5111 = vpow2.f32 %v2135_v15 }
0x1412   :  { %5113 = vpow2.f32 %v2133_v59 }
0x1413   :  { %v2001_v61 = vpop.xlane.xlu1 %2000 }
0x1414   :  { %v2003_v48 = vsub.f32 %v1994_v10, %v2001_v61 }
0x1416   :  { %v5958_v1 = vpop.eup %5109  ;;  %v2006_v62 = vmul.f32 1.442695, %v2003_v48 }
0x1417   :  { %v2008_v55 = vsel %vm257_vm10, %v5958_v1, 0.0  ;;  %v5112_v54 = vpop.eup %5111 }
0x1418   :  { %2009 = vadd.xlane.f32.xlu0 %v2008_v55  ;;  %v2140_v56 = vsel %vm257_vm10, %v5112_v54, 0.0  ;;  %v5114_v2 = vpop.eup %5113  ;;  %5115 = vpow2.f32 %v2006_v62 }
0x1419   :  { %v2137_v4 = vsel %vm257_vm10, %v5114_v2, 0.0 }
0x141e   :  { %v5116_v5 = vpop.eup %5115 }
0x141f   :  { %v2011_v8 = vsel %vm257_vm10, %v5116_v5, 0.0 }
0x1420   :  { %2141 = vadd.xlane.f32.xlu0 %v2140_v56  ;;  %v5004_v56 = vld [vmem:[%s6553_s12] ss:$0 sm:$0xff] }
0x1421   :  { %1872 = vrot.lane.b32.xlu1 %v5842_v25, %s6628_s30 }
0x1434   :  { %2148 = vrot.lane.b32.xlu0 %v5842_v25, %s6627_s5  ;;  %v1564_v25 = vmul.f32 %v5970_v6, %v5970_v6 }
0x1436   :  { %v1566_v17 = vsel %vm114_vm0, %v1564_v25, 0.0 }
0x144b   :  { %2138 = vadd.xlane.f32.xlu1 %v2137_v4  ;;  %v4629_v4 = vld [vmem:[%s6556_s15 + $0x4] sm:$0xf] }
0x1453   :  { %2012 = vadd.xlane.f32.xlu1 %v2011_v8 }
0x145b   :  { %1567 = vadd.xlane.f32.xlu1 %v1566_v17 }
0x1463   :  { %1570 = vadd.xlane.f32.xlu1 %v1569_v21  ;;  %v2046_v21 = vsel %vm239_vm8, %v4634_v19, 0 }
0x1473   :  { %v1863_v3 = vpop.xlane.xlu1 %1862 }
0x147b   :  { %v1866_v16 = vpop.xlane.xlu1 %1865 }
0x147c   :  { %5117 = vrcp.f32 %v1866_v16 }
0x147d   :  { %5119 = vrcp.f32 %v1863_v3 }
0x1482   :  { %v5118_v22 = vpop.eup %5117 }
0x1483   :  { %v5120_v7 = vpop.eup %5119  ;;  %v1870_v23 = vmul.f32 %v5118_v22, %v5108_v46 }
0x1484   :  { %v1869_v24 = vmul.f32 %v5120_v7, %v5106_v44 }
0x1486   :  { %v1871_v26 = vpack.c.bf16 %v1870_v23, %v1869_v24 }
0x148b   :  { %v2010_v18 = vpop.xlane.xlu0 %2009 }
0x1493   :  { %v1873_v49 = vpop.permute.xlu1 %1872  ;;  %v2142_v53 = vpop.xlane.xlu0 %2141 }
0x1494   :  { %1885 = vmatpush.bf16.msra.mxu3 %v1873_v49  ;;  %5121 = vrcp.f32 %v2142_v53 }
0x1497   :  { %4628 = vmatmul.msk.bf16.vlgmr.msra.gmra.mxu3 %vm257_vm10, %v1871_v26 }
0x1498   :  { %2032 = vmatpush.bf16.msrb.mxu3 %v2020_v11 }
0x149a   :  { %v5122_v30 = vpop.eup %5121 }
0x149b   :  { %v2146_v33 = vmul.f32 %v5122_v30, %v5112_v54 }
0x14a6   :  { %v2149_v28 = vpop.permute.xlu0 %2148 }
0x14a7   :  { %2161 = vmatpush.bf16.msra.mxu2 %v2149_v28 }
0x14be   :  { %v2139_v29 = vpop.xlane.xlu1 %2138 }
0x14bf   :  { %5123 = vrcp.f32 %v2139_v29 }
0x14c0   :  { %5125 = vrcp.f32 %v2010_v18 }
0x14c5   :  { %v5124_v32 = vpop.eup %5123 }
0x14c6   :  { %v2145_v34 = vmul.f32 %v5124_v32, %v5114_v2  ;;  %v2013_v36 = vpop.xlane.xlu1 %2012  ;;  %v5126_v37 = vpop.eup %5125 }
0x14c7   :  { %5127 = vrcp.f32 %v2013_v36  ;;  %v2016_v39 = vmul.f32 %v5126_v37, %v5958_v1 }
0x14c8   :  { %v2147_v38 = vpack.c.bf16 %v2146_v33, %v2145_v34  ;;  %v5263_v34 = vld [vmem:[%s6626_s1] sm:$0xff] }
0x14ca   :  { %4637 = vmatmul.msk.bf16.vlgmr.msra.gmra.mxu2 %vm257_vm10, %v2147_v38 }
0x14cd   :  { %v5128_v60 = vpop.eup %5127 }
0x14ce   :  { %v2017_v10 = vmul.f32 %v5128_v60, %v5116_v5  ;;  %v1568_v40 = vpop.xlane.xlu1 %1567  ;;  %v1899_v5 = vsel %vm239_vm8, %v4629_v4, 0  ;;  %v5005_v4 = vld [vmem:[%s6557_s16] ss:$0 sm:$0xff] }
0x14cf   :  { %v1572_v41 = vmul.f32 %v1568_v40, %v5506_v13  ;;  %1908 = vmatpush.bf16.msra.mxu0 %v1899_v5  ;;  %v5264_v40 = vld [vmem:[%s6626_s1 + $0x8] sm:$0xff]  ;;  %s6635_s1 = smov 96  }
0x14d0   :  { %v2018_v45 = vpack.c.bf16 %v2017_v10, %v2016_v39 }
0x14d1   :  { %v1574_v31 = vadd.f32 1e-06, %v1572_v41 }
0x14d2   :  { %4633 = vmatmul.msk.bf16.vlgmr.msrb.gmra.mxu3 %vm257_vm10, %v2018_v45 }
0x14d3   :  { %5129 = vrsqrt.f32 %v1574_v31  ;;  %vm1582_vm14 = vweird.f32 %v1574_v31  ;;  %2055 = vmatpush.bf16.msrb.mxu0 %v2046_v21 }
0x14d6   :  { %v1571_v58 = vpop.xlane.xlu1 %1570 }
0x14d7   :  { %v1573_v44 = vmul.f32 %v1571_v58, %v5506_v13 }
0x14d9   :  { %v5130_v43 = vpop.eup %5129  ;;  %v1575_v27 = vadd.f32 1e-06, %v1573_v44  ;;  %v4843_v44 = vld [vmem:[%s6558_s17 + $0x8] sm:$0xff] }
0x14da   :  { %v1577_v35 = vmul.f32 %v5130_v43, %v1574_v31  ;;  %vm1583_vm13 = vweird.f32 %v5130_v43 }
0x14db   :  { %5131 = vrsqrt.f32 %v1575_v27  ;;  %vm1584_vm15 = vmor %vm1582_vm14, %vm1583_vm13  ;;  %vm1592_vm3 = vweird.f32 %v1575_v27 }
0x14dc   :  { %v1578_v46 = vmul.f32 %v5130_v43, %v1577_v35  ;;  %v4842_v35 = vld [vmem:[%s6558_s17] sm:$0xff] }
0x14de   :  { %v1579_v0 = vmul.f32 0.5, %v1578_v46 }
0x14e0   :  { %v1580_v50 = vsub.f32 1.5, %v1579_v0 }
0x14e1   :  { %v5132_v63 = vpop.eup %5131 }
0x14e2   :  { %v1587_v47 = vmul.f32 %v5132_v63, %v1575_v27  ;;  %v1581_v51 = vmul.f32 %v5130_v43, %v1580_v50  ;;  %vm1593_vm1 = vweird.f32 %v5132_v63 }
0x14e3   :  { %vm1594_vm4 = vmor %vm1592_vm3, %vm1593_vm1 }
0x14e4   :  { %v1588_v52 = vmul.f32 %v5132_v63, %v1587_v47  ;;  %v1585_v1 = vsel %vm1584_vm15, %v5130_v43, %v1581_v51 }
0x14e5   :  { %v1596_v57 = vmul.f32 %v1585_v1, %v5970_v6 }
0x14e6   :  { %v1589_v15 = vmul.f32 0.5, %v1588_v52 }
0x14e7   :  { %v1601_v48 = vmul.f32 %v5004_v56, %v1596_v57 }
0x14e8   :  { %v1590_v55 = vsub.f32 1.5, %v1589_v15 }
0x14ea   :  { %v1591_v54 = vmul.f32 %v5132_v63, %v1590_v55 }
0x14ec   :  { %v1595_v59 = vsel %vm1594_vm4, %v5132_v63, %v1591_v54 }
0x14ed   :  { %v1597_v61 = vmul.f32 %v1595_v59, %v5977_v9  ;;  %v4638_v9 = vld [vmem:[%s6556_s15 + $0xc] sm:$0xf] }
0x14ee   :  { %v2175_v17 = vsel %vm239_vm8, %v4638_v9, 0 }
0x14ef   :  { %v1602_v62 = vmul.f32 %v5004_v56, %v1597_v61  ;;  %2184 = vmatpush.bf16.msra.mxu3 %v2175_v17 }
0x14f1   :  { %v6000_v2 = vpack.c.bf16 %v1602_v62, %v1601_v48 }
0x14f3   :  { %4657 = vmatmul.msk.bf16.vlgmr.msrb.gmra.mxu1 %vm114_vm0, %v6000_v2 }
0x151a   :  { %v1887_v8 = vpop.f32.mrf.mxu3 }
0x1522   :  { %v1889_v6 = vpop.f32.mrf.mxu3 }
0x1523   :  { %v1892_v25 = vpack.c.bf16 %v1889_v6, %v1887_v8 }
0x1525   :  { %4630 = vmatmul.msk.bf16.vlgmr.msra.gmra.mxu0 %vm235_vm9, %v1892_v25 }
0x1526   :  { %2261 = vmatpush.bf16.msra.mxu0 %v4843_v44 }
0x152a   :  { %2262 = vmatpush.bf16.msra.mxu0 %v4842_v35 }
0x154d   :  { %v2163_v3 = vpop.f32.mrf.mxu2 }
0x1555   :  { %v2034_v16 = vpop.f32.mrf.mxu3  ;;  %v2165_v22 = vpop.f32.mrf.mxu2 }
0x1556   :  { %v2168_v7 = vpack.c.bf16 %v2165_v22, %v2163_v3 }
0x1558   :  { %4639 = vmatmul.msk.bf16.vlgmr.msra.gmra.mxu3 %vm235_vm9, %v2168_v7 }
0x155d   :  { %v2036_v23 = vpop.f32.mrf.mxu3 }
0x155e   :  { %v2039_v24 = vpack.c.bf16 %v2036_v23, %v2034_v16 }
0x1560   :  { %4635 = vmatmul.msk.bf16.vlgmr.msrb.gmra.mxu0 %vm235_vm9, %v2039_v24  ;;  %v101_v24 = vld [vmem:[%s6634_s11] sm:$0xff] }
0x1570   :  { %v6019_v49 = vpop.f32.mrf.mxu1 }
0x1571   :  { %2303 = vxpose.xlu2.b32.start [1/2] (short) (narrow) %v6019_v49, 8 }
0x1578   :  { %v6022_v11 = vpop.f32.mrf.mxu1 }
0x1579   :  { %2304 = vxpose.xlu2.b32.end [2/2] (short) (narrow) %v6022_v11, 8  ;;  %v4944_v33 = vpack.i.bf16 %v6022_v11, %v6019_v49 }
0x15a2   :  { %v1910_v18 = vpop.f32.mrf.mxu0 }
0x15a3   :  { %v1931_v53 = vadd.f32 %v5922_v12, %v1910_v18 }
0x15aa   :  { %v1912_v26 = vpop.f32.mrf.mxu0 }
0x15ab   :  { %v1933_v38 = vadd.f32 %v5924_v14, %v1912_v26 }
0x15db   :  { %v2186_v28 = vpop.f32.mrf.mxu3 }
0x15dd   :  { %v2057_v29 = vpop.f32.mrf.mxu0 }
0x15de   :  { %v2062_v30 = vadd.f32 %v2057_v29, %v1931_v53 }
0x15e0   :  { %v2191_v32 = vadd.f32 %v2186_v28, %v2062_v30  ;;  %v102_v28 = vld [vmem:[%s6634_s11 + $0x8] sm:$0xff] }
0x15e2   :  { %v6031_v36 = vadd.f32 %v5263_v34, %v2191_v32  ;;  %4945 = vrot.lane.b32.xlu2 %v4944_v33, %s6623_s29 }
0x15e3   :  { %v2188_v39 = vpop.f32.mrf.mxu3 }
0x15e4   :  { %v2196_v12 = vmul.f32 %v6031_v36, %v6031_v36 }
0x15e5   :  { %v2059_v37 = vpop.f32.mrf.mxu0 }
0x15e6   :  { %v2063_v20 = vadd.f32 %v2059_v37, %v1933_v38  ;;  %v2198_v60 = vsel %vm114_vm0, %v2196_v12, 0.0 }
0x15e7   :  { %2199 = vadd.xlane.f32.xlu0 %v2198_v60 }
0x15e8   :  { %v2192_v10 = vadd.f32 %v2188_v39, %v2063_v20 }
0x15ea   :  { %v6041_v41 = vadd.f32 %v5264_v40, %v2192_v10 }
0x15ec   :  { %v2197_v42 = vmul.f32 %v6041_v41, %v6041_v41 }
0x15ee   :  { %v2201_v14 = vsel %vm114_vm0, %v2197_v42, 0.0  ;;  %v6078_v42 = vpack.c.bf16 %v6022_v11, %v6019_v49 }
0x15ef   :  { %2202 = vadd.xlane.f32.xlu1 %v2201_v14 }
0x15fb   :  { %4940 = vrot.lane.b32.xlu0 %v4944_v33, %s6625_s27 }
0x1603   :  { %4950 = vrot.lane.b32.xlu0 %v4944_v33, %s6624_s2 }
0x160a   :  { %v2319_v45 = vpop.trf.xlu2 }
0x160b   :  { %v2335_v31 = vpack.c.bf16 %v2319_v45, %v2319_v45 }
0x160d   :  { %v2340_v58 = vsel %vm239_vm8, %v2335_v31, 0 }
0x160e   :  { %2349 = vmatpush.bf16.msrb.mxu2 %v2340_v58 }
0x163c   :  { %v4946_v14 = vpop.permute.xlu2 %4945 }
0x163d   :  { %v4947_v31 = vunpack.i.l.bf16 %v4946_v14 }
0x165a   :  { %v2200_v43 = vpop.xlane.xlu0 %2199 }
0x165b   :  { %v2204_v27 = vmul.f32 %v2200_v43, %v5506_v13  ;;  %v4948_v43 = vunpack.i.h.bf16 %v4946_v14 }
0x165d   :  { %v2206_v46 = vadd.f32 1e-06, %v2204_v27 }
0x165f   :  { %5133 = vrsqrt.f32 %v2206_v46  ;;  %vm2214_vm6 = vweird.f32 %v2206_v46 }
0x1662   :  { %v2203_v0 = vpop.xlane.xlu1 %2202 }
0x1663   :  { %v2205_v50 = vmul.f32 %v2203_v0, %v5506_v13 }
0x1665   :  { %v5134_v63 = vpop.eup %5133  ;;  %v2207_v47 = vadd.f32 1e-06, %v2205_v50 }
0x1666   :  { %v2209_v51 = vmul.f32 %v5134_v63, %v2206_v46  ;;  %vm2215_vm5 = vweird.f32 %v5134_v63 }
0x1667   :  { %5135 = vrsqrt.f32 %v2207_v47  ;;  %vm2216_vm7 = vmor %vm2214_vm6, %vm2215_vm5  ;;  %vm2224_vm12 = vweird.f32 %v2207_v47 }
0x1668   :  { %v2210_v52 = vmul.f32 %v5134_v63, %v2209_v51 }
0x166a   :  { %v2211_v15 = vmul.f32 0.5, %v2210_v52 }
0x166c   :  { %v2212_v1 = vsub.f32 1.5, %v2211_v15 }
0x166d   :  { %v5136_v55 = vpop.eup %5135  ;;  %v4941_v16 = vpop.permute.xlu0 %4940 }
0x166e   :  { %v2219_v54 = vmul.f32 %v5136_v55, %v2207_v47  ;;  %v2213_v56 = vmul.f32 %v5134_v63, %v2212_v1  ;;  %vm2225_vm11 = vweird.f32 %v5136_v55  ;;  %v4942_v45 = vunpack.i.l.bf16 %v4941_v16  ;;  %v2402_v1 = vld [vmem:[%s6560_s19] sm:$0xf] }
0x166f   :  { %vm2226_vm13 = vmor %vm2224_vm12, %vm2225_vm11  ;;  %v4943_v44 = vunpack.i.h.bf16 %v4941_v16  ;;  %v104_v16 = vld [vmem:[%s6634_s11 + $0x18] sm:$0xff] }
0x1670   :  { %v2220_v57 = vmul.f32 %v5136_v55, %v2219_v54  ;;  %v2217_v61 = vsel %vm2216_vm7, %v5134_v63, %v2213_v56  ;;  %v4954_v58 = vpack.i.bf16 %v4947_v31, %v4942_v45  ;;  %v2537_v54 = vsel %vm239_vm8, %v2402_v1, 0  ;;  %v107_v45 = vld [vmem:[%s6634_s11 + $0x30] sm:$0xff] }
0x1671   :  { %v2228_v5 = vmul.f32 %v2217_v61, %v6031_v36  ;;  %v4956_v27 = vpack.i.bf16 %v4948_v43, %v4943_v44 }
0x1672   :  { %v2221_v59 = vmul.f32 0.5, %v2220_v57 }
0x1673   :  { %v2233_v25 = vmul.f32 %v5005_v4, %v2228_v5 }
0x1674   :  { %v2222_v48 = vsub.f32 1.5, %v2221_v59 }
0x1675   :  { %v4951_v22 = vpop.permute.xlu0 %4950 }
0x1676   :  { %v2223_v62 = vmul.f32 %v5136_v55, %v2222_v48  ;;  %v4952_v7 = vunpack.i.l.bf16 %v4951_v22  ;;  %v4953_v23 = vunpack.i.h.bf16 %v4951_v22 }
0x1678   :  { %v2227_v8 = vsel %vm2226_vm13, %v5136_v55, %v2223_v62 }
0x1679   :  { %v2229_v6 = vmul.f32 %v2227_v8, %v6041_v41 }
0x167b   :  { %v2234_v9 = vmul.f32 %v5005_v4, %v2229_v6 }
0x167d   :  { %v2235_v17 = vpack.c.bf16 %v2234_v9, %v2233_v25 }
0x167f   :  { %4648 = vmatmul.msk.bf16.vlgmr.msra.gmra.mxu0 %vm114_vm0, %v2235_v17  ;;  %v103_v17 = vld [vmem:[%s6634_s11 + $0x10] sm:$0xff] }
0x16fc   :  { %v2264_v19 = vpop.f32.mrf.mxu0 }
0x1704   :  { %v2266_v21 = vpop.f32.mrf.mxu0 }
0x1705   :  { %v2302_v3 = vpack.c.bf16 %v2266_v21, %v2264_v19 }
0x1707   :  { %2592 = vrot.lane.b32.xlu0 %v2302_v3, %s6623_s29  ;;  %4658 = vmatmul.msk.bf16.vlgmr.msrb.gmra.mxu2 %vm235_vm9, %v2302_v3 }
0x170f   :  { %2721 = vrot.lane.b32.xlu0 %v2302_v3, %s6624_s2 }
0x1731   :  { %2688 = vxpose.xlu0.b32.start [1/2] (short) (narrow) %v4952_v7, 8 }
0x1739   :  { %2689 = vxpose.xlu0.b32.end [2/2] (short) (narrow) %v4953_v23, 8 }
0x1779   :  { %v2593_v51 = vpop.permute.xlu0 %2592 }
0x1781   :  { %v2722_v15 = vpop.permute.xlu0 %2721 }
0x178a   :  { %v2351_v18 = vpop.f32.mrf.mxu2 }
0x178b   :  { %v2352_v26 = vadd.f32 %v2351_v18, %v101_v24  ;;  %v105_v24 = vld [vmem:[%s6634_s11 + $0x20] sm:$0xff] }
0x178d   :  { %v2356_v53 = vsel %vm257_vm10, %v2352_v26, -inf }
0x178e   :  { %2357 = vmax.xlane.f32.xlu1 %v2356_v53 }
0x1792   :  { %v2353_v29 = vpop.f32.mrf.mxu2 }
0x1793   :  { %v2354_v30 = vadd.f32 %v2353_v29, %v102_v28  ;;  %v106_v28 = vld [vmem:[%s6634_s11 + $0x28] sm:$0xff] }
0x1795   :  { %v2359_v32 = vsel %vm257_vm10, %v2354_v30, -inf }
0x1796   :  { %2360 = vmax.xlane.f32.xlu1 %v2359_v32 }
0x17d5   :  { %v2704_v48 = vpop.trf.xlu0 }
0x17d6   :  { %v2720_v62 = vpack.c.bf16 %v2704_v48, %v2704_v48 }
0x17d8   :  { %v2727_v8 = vsel %vm239_vm8, %v2720_v62, 0 }
0x1801   :  { %v2358_v33 = vpop.xlane.xlu1 %2357 }
0x1802   :  { %v2362_v34 = vsub.f32 %v2352_v26, %v2358_v33 }
0x1804   :  { %v2364_v38 = vmul.f32 1.442695, %v2362_v34 }
0x1806   :  { %5137 = vpow2.f32 %v2364_v38 }
0x1809   :  { %v2361_v12 = vpop.xlane.xlu1 %2360 }
0x180a   :  { %v2363_v37 = vsub.f32 %v2354_v30, %v2361_v12 }
0x180c   :  { %v5138_v20 = vpop.eup %5137  ;;  %v2366_v60 = vmul.f32 1.442695, %v2363_v37 }
0x180d   :  { %v2368_v39 = vsel %vm257_vm10, %v5138_v20, 0.0 }
0x180e   :  { %5139 = vpow2.f32 %v2366_v60  ;;  %2369 = vadd.xlane.f32.xlu1 %v2368_v39 }
0x1814   :  { %v5140_v10 = vpop.eup %5139 }
0x1815   :  { %v2371_v40 = vsel %vm257_vm10, %v5140_v10, 0.0 }
0x1816   :  { %2372 = vadd.xlane.f32.xlu1 %v2371_v40 }
0x182f   :  { %2381 = vrot.lane.b32.xlu1 %v6078_v42, %s6635_s1 }
0x1837   :  { %2445 = vrot.lane.b32.xlu1 %v2302_v3, %s6625_s27 }
0x186c   :  { %4955 = vxpose.xlu1.b32.start [1/2] (short) (narrow) %v4954_v58, 8 }
0x1874   :  { %4957 = vxpose.xlu1.b32.end [2/2] (short) (narrow) %v4956_v27, 8 }
0x1881   :  { %v2370_v35 = vpop.xlane.xlu1 %2369 }
0x1889   :  { %v2373_v46 = vpop.xlane.xlu1 %2372 }
0x188a   :  { %5141 = vrcp.f32 %v2373_v46 }
0x188b   :  { %5143 = vrcp.f32 %v2370_v35 }
0x1890   :  { %v5142_v49 = vpop.eup %5141 }
0x1891   :  { %v5144_v11 = vpop.eup %5143  ;;  %v2377_v0 = vmul.f32 %v5142_v49, %v5140_v10  ;;  %v108_v49 = vld [vmem:[%s6634_s11 + $0x38] sm:$0xff] }
0x1892   :  { %v2376_v50 = vmul.f32 %v5144_v11, %v5138_v20 }
0x1894   :  { %v2378_v47 = vpack.c.bf16 %v2377_v0, %v2376_v50 }
0x18a1   :  { %v2382_v63 = vpop.permute.xlu1 %2381 }
0x18a2   :  { %2394 = vmatpush.bf16.msrb.mxu3 %v2382_v63 }
0x18a5   :  { %4659 = vmatmul.msk.bf16.vlgmr.msrb.gmra.mxu3 %vm257_vm10, %v2378_v47 }
0x18a6   :  { %2546 = vmatpush.bf16.msra.mxu3 %v2537_v54 }
0x18a9   :  { %v2446_v52 = vpop.permute.xlu1 %2445 }
0x18aa   :  { %2736 = vmatpush.bf16.msrb.mxu3 %v2727_v8 }
0x1910   :  { %v4958_v55 = vpop.trf.xlu1 }
0x1911   :  { %v4962_v56 = vunpack.i.h.bf16 %v4958_v55  ;;  %v4959_v57 = vunpack.i.l.bf16 %v4958_v55 }
0x1913   :  { %v2443_v59 = vpack.c.bf16 %v4959_v57, %v4959_v57  ;;  %v2591_v61 = vpack.c.bf16 %v4962_v56, %v4962_v56 }
0x1915   :  { %v2451_v4 = vsel %vm239_vm8, %v2443_v59, 0  ;;  %v2598_v5 = vsel %vm239_vm8, %v2591_v61, 0 }
0x1916   :  { %2460 = vmatpush.bf16.msrb.mxu0 %v2451_v4 }
0x1919   :  { %4660 = vmatmul.msk.bf16.vlgmr.msrb.gmra.mxu0 %vm235_vm9, %v2446_v52 }
0x191a   :  { %2607 = vmatpush.bf16.msra.mxu0 %v2598_v5 }
0x1928   :  { %v2396_v6 = vpop.f32.mrf.mxu3 }
0x1929   :  { %4665 = vmatmul.msk.bf16.vlgmr.msra.gmra.mxu0 %vm235_vm9, %v2593_v51 }
0x1930   :  { %v2398_v25 = vpop.f32.mrf.mxu3 }
0x1931   :  { %v2401_v9 = vpack.c.bf16 %v2398_v25, %v2396_v6 }
0x1933   :  { %4664 = vmatmul.msk.bf16.vlgmr.msra.gmra.mxu3 %vm235_vm9, %v2401_v9 }
0x1943   :  { %4669 = vmatmul.msk.bf16.vlgmr.msrb.gmra.mxu3 %vm235_vm9, %v2722_v15 }
0x1996   :  { %v2462_v19 = vpop.f32.mrf.mxu0 }
0x1997   :  { %v2463_v21 = vadd.f32 %v2462_v19, %v103_v17 }
0x1999   :  { %v2467_v3 = vsel %vm257_vm10, %v2463_v21, -inf }
0x199a   :  { %2468 = vmax.xlane.f32.xlu0 %v2467_v3 }
0x199e   :  { %v2464_v22 = vpop.f32.mrf.mxu0 }
0x199f   :  { %v2465_v7 = vadd.f32 %v2464_v22, %v104_v16 }
0x19a1   :  { %v2470_v23 = vsel %vm257_vm10, %v2465_v7, -inf }
0x19a2   :  { %2471 = vmax.xlane.f32.xlu1 %v2470_v23 }
0x19a6   :  { %v2609_v18 = vpop.f32.mrf.mxu0 }
0x19a7   :  { %v2610_v26 = vadd.f32 %v2609_v18, %v105_v24 }
0x19a9   :  { %v2614_v53 = vsel %vm257_vm10, %v2610_v26, -inf }
0x19aa   :  { %2615 = vmax.xlane.f32.xlu2 %v2614_v53 }
0x19ae   :  { %v2611_v29 = vpop.f32.mrf.mxu0 }
0x19af   :  { %v2612_v30 = vadd.f32 %v2611_v29, %v106_v28 }
0x19b1   :  { %v2617_v32 = vsel %vm257_vm10, %v2612_v30, -inf }
0x19b2   :  { %2618 = vmax.xlane.f32.xlu2 %v2617_v32 }
0x19b6   :  { %v6111_v33 = vpop.f32.mrf.mxu3 }
0x19be   :  { %v6113_v38 = vpop.f32.mrf.mxu3 }
0x19c6   :  { %v2738_v10 = vpop.f32.mrf.mxu3 }
0x19c7   :  { %v2739_v31 = vadd.f32 %v2738_v10, %v107_v45  ;;  %v4671_v45 = vld [vmem:[%s6560_s19 + $0xc] sm:$0xf] }
0x19c9   :  { %v2743_v46 = vsel %vm257_vm10, %v2739_v31, -inf }
0x19ce   :  { %v2740_v11 = vpop.f32.mrf.mxu3 }
0x19cf   :  { %v2741_v0 = vadd.f32 %v2740_v11, %v108_v49 }
0x19d1   :  { %v2746_v15 = vsel %vm257_vm10, %v2741_v0, -inf }
0x1a0d   :  { %v2469_v34 = vpop.xlane.xlu0 %2468 }
0x1a0e   :  { %v2473_v12 = vsub.f32 %v2463_v21, %v2469_v34 }
0x1a10   :  { %v2475_v37 = vmul.f32 1.442695, %v2473_v12 }
0x1a12   :  { %5145 = vpow2.f32 %v2475_v37 }
0x1a15   :  { %v2472_v20 = vpop.xlane.xlu1 %2471 }
0x1a16   :  { %v2474_v60 = vsub.f32 %v2465_v7, %v2472_v20  ;;  %v4662_v7 = vld [vmem:[%s6560_s19 + $0x4] sm:$0xf] }
0x1a17   :  { %v2517_v23 = vsel %vm239_vm8, %v4662_v7, 0 }
0x1a18   :  { %v5146_v39 = vpop.eup %5145  ;;  %v2477_v40 = vmul.f32 1.442695, %v2474_v60  ;;  %2526 = vmatpush.bf16.msra.mxu2 %v2517_v23 }
0x1a19   :  { %v2479_v14 = vsel %vm257_vm10, %v5146_v39, 0.0 }
0x1a1a   :  { %5147 = vpow2.f32 %v2477_v40  ;;  %2480 = vadd.xlane.f32.xlu2 %v2479_v14 }
0x1a1d   :  { %v2616_v58 = vpop.xlane.xlu2 %2615 }
0x1a1e   :  { %v2620_v44 = vsub.f32 %v2610_v26, %v2616_v58  ;;  %v4667_v58 = vld [vmem:[%s6560_s19 + $0x8] sm:$0xf] }
0x1a20   :  { %v5148_v43 = vpop.eup %5147  ;;  %v2622_v27 = vmul.f32 1.442695, %v2620_v44  ;;  %v2664_v44 = vsel %vm239_vm8, %v4667_v58, 0 }
0x1a21   :  { %v2482_v35 = vsel %vm257_vm10, %v5148_v43, 0.0  ;;  %2673 = vmatpush.bf16.msrb.mxu2 %v2664_v44 }
0x1a22   :  { %5149 = vpow2.f32 %v2622_v27  ;;  %2483 = vadd.xlane.f32.xlu1 %v2482_v35  ;;  %2744 = vmax.xlane.f32.xlu2 %v2743_v46 }
0x1a25   :  { %v2619_v50 = vpop.xlane.xlu2 %2618 }
0x1a26   :  { %v2621_v63 = vsub.f32 %v2612_v30, %v2619_v50 }
0x1a28   :  { %v5150_v47 = vpop.eup %5149  ;;  %v2624_v51 = vmul.f32 1.442695, %v2621_v63 }
0x1a29   :  { %v2626_v52 = vsel %vm257_vm10, %v5150_v47, 0.0 }
0x1a2a   :  { %5151 = vpow2.f32 %v2624_v51  ;;  %2627 = vadd.xlane.f32.xlu1 %v2626_v52  ;;  %2747 = vmax.xlane.f32.xlu2 %v2746_v15 }
0x1a30   :  { %v5152_v1 = vpop.eup %5151 }
0x1a31   :  { %v2629_v55 = vsel %vm257_vm10, %v5152_v1, 0.0 }
0x1a32   :  { %2630 = vadd.xlane.f32.xlu0 %v2629_v55 }
0x1a42   :  { %2490 = vrot.lane.b32.xlu2 %v6078_v42, %s6632_s9 }
0x1a4a   :  { %2766 = vrot.lane.b32.xlu2 %v6078_v42, %s6633_s0 }
0x1a8d   :  { %v2481_v54 = vpop.xlane.xlu2 %2480 }
0x1a95   :  { %v2745_v56 = vpop.xlane.xlu2 %2744  ;;  %v2484_v57 = vpop.xlane.xlu1 %2483 }
0x1a96   :  { %v2749_v59 = vsub.f32 %v2739_v31, %v2745_v56  ;;  %5153 = vrcp.f32 %v2484_v57  ;;  %v2793_v31 = vsel %vm239_vm8, %v4671_v45, 0 }
0x1a98   :  { %v2751_v61 = vmul.f32 1.442695, %v2749_v59 }
0x1a9a   :  { %5155 = vpow2.f32 %v2751_v61 }
0x1a9b   :  { %5157 = vrcp.f32 %v2481_v54 }
0x1a9c   :  { %v5154_v4 = vpop.eup %5153 }
0x1a9d   :  { %v2748_v48 = vpop.xlane.xlu2 %2747  ;;  %v2488_v9 = vmul.f32 %v5154_v4, %v5148_v43  ;;  %v2628_v24 = vpop.xlane.xlu1 %2627 }
0x1a9e   :  { %v2750_v62 = vsub.f32 %v2741_v0, %v2748_v48 }
0x1aa0   :  { %v5156_v5 = vpop.eup %5155  ;;  %v2753_v8 = vmul.f32 1.442695, %v2750_v62 }
0x1aa1   :  { %v2755_v6 = vsel %vm257_vm10, %v5156_v5, 0.0  ;;  %v5158_v25 = vpop.eup %5157 }
0x1aa2   :  { %5159 = vpow2.f32 %v2753_v8  ;;  %2756 = vadd.xlane.f32.xlu1 %v2755_v6  ;;  %v2487_v17 = vmul.f32 %v5158_v25, %v5146_v39  ;;  %v4846_v8 = vld [vmem:[%s6562_s21] sm:$0xff]  ;;  %v4851_v6 = vld [vmem:[%s6563_s22 + $0x18] sm:$0xff] }
0x1aa3   :  { %2929 = vmatpush.bf16.msra.mxu3 %v4851_v6 }
0x1aa4   :  { %v2489_v21 = vpack.c.bf16 %v2488_v9, %v2487_v17 }
0x1aa5   :  { %v2491_v19 = vpop.permute.xlu2 %2490  ;;  %v2631_v18 = vpop.xlane.xlu0 %2630 }
0x1aa6   :  { %2503 = vmatpush.bf16.msra.mxu1 %v2491_v19 }
0x1aa8   :  { %v5160_v3 = vpop.eup %5159 }
0x1aa9   :  { %4661 = vmatmul.msk.bf16.vlgmr.msra.gmra.mxu1 %vm257_vm10, %v2489_v21  ;;  %v2758_v16 = vsel %vm257_vm10, %v5160_v3, 0.0 }
0x1aaa   :  { %2759 = vadd.xlane.f32.xlu0 %v2758_v16 }
0x1aad   :  { %v2767_v22 = vpop.permute.xlu2 %2766 }
0x1aae   :  { %2779 = vmatpush.bf16.msrb.mxu0 %v2767_v22 }
0x1abb   :  { %2637 = vrot.lane.b32.xlu1 %v6078_v42, %s6622_s10 }
0x1b15   :  { %v2757_v26 = vpop.xlane.xlu1 %2756 }
0x1b16   :  { %5161 = vrcp.f32 %v2757_v26 }
0x1b1c   :  { %v5162_v28 = vpop.eup %5161 }
0x1b1d   :  { %v2760_v53 = vpop.xlane.xlu0 %2759  ;;  %v2763_v30 = vmul.f32 %v5162_v28, %v5156_v5 }
0x1b1e   :  { %5163 = vrcp.f32 %v2760_v53 }
0x1b1f   :  { %5165 = vrcp.f32 %v2631_v18 }
0x1b20   :  { %5167 = vrcp.f32 %v2628_v24 }
0x1b24   :  { %v5164_v29 = vpop.eup %5163 }
0x1b25   :  { %v2764_v32 = vmul.f32 %v5164_v29, %v5160_v3  ;;  %v5166_v12 = vpop.eup %5165 }
0x1b26   :  { %v2505_v42 = vpop.f32.mrf.mxu1  ;;  %v5168_v37 = vpop.eup %5167  ;;  %v2635_v20 = vmul.f32 %v5166_v12, %v5152_v1 }
0x1b27   :  { %v2765_v34 = vpack.c.bf16 %v2764_v32, %v2763_v30  ;;  %v2634_v60 = vmul.f32 %v5168_v37, %v5150_v47  ;;  %v5006_v30 = vld [vmem:[%s6561_s20] ss:$0 sm:$0xff] }
0x1b29   :  { %4670 = vmatmul.msk.bf16.vlgmr.msrb.gmra.mxu0 %vm257_vm10, %v2765_v34  ;;  %v2636_v40 = vpack.c.bf16 %v2635_v20, %v2634_v60  ;;  %v4850_v60 = vld [vmem:[%s6563_s22 + $0x10] sm:$0xff] }
0x1b2a   :  { %2930 = vmatpush.bf16.msra.mxu3 %v4850_v60 }
0x1b2d   :  { %v2638_v39 = vpop.permute.xlu1 %2637 }
0x1b2e   :  { %v2507_v10 = vpop.f32.mrf.mxu1  ;;  %2650 = vmatpush.bf16.msrb.mxu1 %v2638_v39  ;;  %v4849_v39 = vld [vmem:[%s6563_s22 + $0x8] sm:$0xff] }
0x1b2f   :  { %v2510_v14 = vpack.c.bf16 %v2507_v10, %v2505_v42  ;;  %2931 = vmatpush.bf16.msra.mxu3 %v4849_v39  ;;  %v4848_v10 = vld [vmem:[%s6563_s22] sm:$0xff] }
0x1b31   :  { %4663 = vmatmul.msk.bf16.vlgmr.msra.gmra.mxu2 %vm235_vm9, %v2510_v14  ;;  %4666 = vmatmul.msk.bf16.vlgmr.msrb.gmra.mxu1 %vm257_vm10, %v2636_v40 }
0x1b32   :  { %2802 = vmatpush.bf16.msra.mxu1 %v2793_v31 }
0x1b33   :  { %2932 = vmatpush.bf16.msra.mxu3 %v4848_v10 }
0x1ba6   :  { %v2781_v43 = vpop.f32.mrf.mxu0 }
0x1bae   :  { %v2652_v27 = vpop.f32.mrf.mxu1  ;;  %v2783_v35 = vpop.f32.mrf.mxu0 }
0x1baf   :  { %v2786_v46 = vpack.c.bf16 %v2783_v35, %v2781_v43 }
0x1bb1   :  { %4672 = vmatmul.msk.bf16.vlgmr.msra.gmra.mxu1 %vm235_vm9, %v2786_v46 }
0x1bb4   :  { %v2528_v0 = vpop.f32.mrf.mxu2 }
0x1bb5   :  { %v2549_v63 = vadd.f32 %v6111_v33, %v2528_v0 }
0x1bb6   :  { %v2654_v49 = vpop.f32.mrf.mxu1 }
0x1bb7   :  { %v2657_v11 = vpack.c.bf16 %v2654_v49, %v2652_v27 }
0x1bb9   :  { %4668 = vmatmul.msk.bf16.vlgmr.msrb.gmra.mxu2 %vm235_vm9, %v2657_v11 }
0x1bbc   :  { %v2530_v50 = vpop.f32.mrf.mxu2 }
0x1bbd   :  { %v2551_v55 = vadd.f32 %v6113_v38, %v2530_v50  ;;  %v4847_v38 = vld [vmem:[%s6562_s21 + $0x8] sm:$0xff]  ;;  %v4853_v50 = vld [vmem:[%s6555_s14 + $0x18] sm:$0xff] }
0x1bbe   :  { %2879 = vmatpush.bf16.msra.mxu2 %v4847_v38  ;;  %3009 = vmatpush.bf16.msra.mxu0 %v4853_v50 }
0x1bc2   :  { %2880 = vmatpush.bf16.msra.mxu2 %v4846_v8 }
0x1c2e   :  { %v2804_v47 = vpop.f32.mrf.mxu1 }
0x1c36   :  { %v2806_v61 = vpop.f32.mrf.mxu1 }
0x1c3c   :  { %v2675_v51 = vpop.f32.mrf.mxu2 }
0x1c3d   :  { %v2680_v52 = vadd.f32 %v2675_v51, %v2549_v63  ;;  %v4852_v51 = vld [vmem:[%s6555_s14 + $0x10] sm:$0xff]  ;;  %s5351_s14 = smov [#allocation2]  }
0x1c3e   :  { %3010 = vmatpush.bf16.msra.mxu0 %v4852_v51 }
0x1c3f   :  { %v2809_v15 = vadd.f32 %v2804_v47, %v2680_v52 }
0x1c41   :  { %v6155_v1 = vadd.f32 %v2809_v15, %v6031_v36 }
0x1c43   :  { %v2814_v54 = vmul.f32 %v6155_v1, %v6155_v1 }
0x1c44   :  { %v2677_v56 = vpop.f32.mrf.mxu2 }
0x1c45   :  { %v2681_v57 = vadd.f32 %v2677_v56, %v2551_v55  ;;  %v2816_v59 = vsel %vm114_vm0, %v2814_v54, 0.0 }
0x1c46   :  { %2817 = vadd.xlane.f32.xlu0 %v2816_v59 }
0x1c47   :  { %v2810_v48 = vadd.f32 %v2806_v61, %v2681_v57 }
0x1c49   :  { %v6162_v33 = vadd.f32 %v2810_v48, %v6041_v41 }
0x1c4b   :  { %v2815_v62 = vmul.f32 %v6162_v33, %v6162_v33 }
0x1c4d   :  { %v2819_v36 = vsel %vm114_vm0, %v2815_v62, 0.0 }
0x1c4e   :  { %2820 = vadd.xlane.f32.xlu2 %v2819_v36 }
0x1cb9   :  { %v2818_v4 = vpop.xlane.xlu0 %2817 }
0x1cba   :  { %v2822_v5 = vmul.f32 %v2818_v4, %v5506_v13 }
0x1cbc   :  { %v2824_v41 = vadd.f32 1e-06, %v2822_v5 }
0x1cbe   :  { %5169 = vrsqrt.f32 %v2824_v41  ;;  %vm2832_vm15 = vweird.f32 %v2824_v41 }
0x1cc1   :  { %v2821_v25 = vpop.xlane.xlu2 %2820 }
0x1cc2   :  { %v2823_v9 = vmul.f32 %v2821_v25, %v5506_v13 }
0x1cc4   :  { %v5170_v17 = vpop.eup %5169  ;;  %v2825_v19 = vadd.f32 1e-06, %v2823_v9 }
0x1cc5   :  { %v2827_v21 = vmul.f32 %v5170_v17, %v2824_v41  ;;  %vm2833_vm14 = vweird.f32 %v5170_v17  ;;  %v5007_v41 = vld [vmem:[%s6554_s13 + $0x1] ss:$0 sm:$0xff] }
0x1cc6   :  { %5171 = vrsqrt.f32 %v2825_v19  ;;  %vm2834_vm1 = vmor %vm2832_vm15, %vm2833_vm14  ;;  %vm2842_vm4 = vweird.f32 %v2825_v19 }
0x1cc7   :  { %v2828_v3 = vmul.f32 %v5170_v17, %v2827_v21 }
0x1cc9   :  { %v2829_v16 = vmul.f32 0.5, %v2828_v3 }
0x1ccb   :  { %v2830_v22 = vsub.f32 1.5, %v2829_v16 }
0x1ccc   :  { %v5172_v7 = vpop.eup %5171 }
0x1ccd   :  { %v2837_v23 = vmul.f32 %v5172_v7, %v2825_v19  ;;  %v2831_v24 = vmul.f32 %v5170_v17, %v2830_v22  ;;  %vm2843_vm3 = vweird.f32 %v5172_v7 }
0x1cce   :  { %vm2844_vm5 = vmor %vm2842_vm4, %vm2843_vm3 }
0x1ccf   :  { %v2838_v18 = vmul.f32 %v5172_v7, %v2837_v23  ;;  %v2835_v53 = vsel %vm2834_vm1, %v5170_v17, %v2831_v24 }
0x1cd0   :  { %v2846_v32 = vmul.f32 %v2835_v53, %v6155_v1 }
0x1cd1   :  { %v2839_v26 = vmul.f32 0.5, %v2838_v18 }
0x1cd2   :  { %v2851_v12 = vmul.f32 %v5006_v30, %v2846_v32 }
0x1cd3   :  { %v2840_v28 = vsub.f32 1.5, %v2839_v26 }
0x1cd5   :  { %v2841_v29 = vmul.f32 %v5172_v7, %v2840_v28  ;;  %v5265_v28 = vld [vmem:[%s6630_s7] sm:$0xff] }
0x1cd7   :  { %v2845_v42 = vsel %vm2844_vm5, %v5172_v7, %v2841_v29 }
0x1cd8   :  { %v2847_v34 = vmul.f32 %v2845_v42, %v6162_v33  ;;  %v5266_v42 = vld [vmem:[%s6630_s7 + $0x8] sm:$0xff] }
0x1cda   :  { %v2852_v37 = vmul.f32 %v5006_v30, %v2847_v34 }
0x1cdc   :  { %v2853_v20 = vpack.c.bf16 %v2852_v37, %v2851_v12 }
0x1cde   :  { %4681 = vmatmul.msk.bf16.vlgmr.msra.gmra.mxu2 %vm114_vm0, %v2853_v20 }
0x1d61   :  { %v2882_v40 = vpop.f32.mrf.mxu2 }
0x1d62   :  { %v2887_v45 = vmax.f32 %v2882_v40, 0.0 }
0x1d69   :  { %v2884_v14 = vpop.f32.mrf.mxu2 }
0x1d6a   :  { %v2888_v31 = vmax.f32 %v2884_v14, 0.0 }
0x1d6c   :  { %v2889_v58 = vpack.c.bf16 %v2888_v31, %v2887_v45 }
0x1d6e   :  { %4698 = vmatmul.msk.bf16.vlgmr.msra.gmra.mxu3 %vm820_vm2, %v2889_v58 }
0x1df1   :  { %v2934_v44 = vpop.f32.mrf.mxu3 }
0x1df2   :  { %v6195_v43 = vadd.f32 %v2934_v44, %v6155_v1 }
0x1df4   :  { %v2943_v27 = vmul.f32 %v6195_v43, %v6195_v43 }
0x1df6   :  { %v2945_v35 = vsel %vm114_vm0, %v2943_v27, 0.0 }
0x1df7   :  { %2946 = vadd.xlane.f32.xlu0 %v2945_v35 }
0x1df9   :  { %v2936_v46 = vpop.f32.mrf.mxu3 }
0x1dfa   :  { %v6201_v49 = vadd.f32 %v2936_v46, %v6162_v33 }
0x1dfc   :  { %v2944_v11 = vmul.f32 %v6201_v49, %v6201_v49 }
0x1dfe   :  { %v2948_v0 = vsel %vm114_vm0, %v2944_v11, 0.0 }
0x1dff   :  { %2949 = vadd.xlane.f32.xlu0 %v2948_v0 }
0x1e6a   :  { %v2947_v63 = vpop.xlane.xlu0 %2946 }
0x1e6b   :  { %v2951_v47 = vmul.f32 %v2947_v63, %v5506_v13 }
0x1e6d   :  { %v2953_v52 = vadd.f32 1e-06, %v2951_v47 }
0x1e6f   :  { %5173 = vrsqrt.f32 %v2953_v52  ;;  %vm2961_vm7 = vweird.f32 %v2953_v52 }
0x1e72   :  { %v2950_v15 = vpop.xlane.xlu0 %2949 }
0x1e73   :  { %v2952_v1 = vmul.f32 %v2950_v15, %v5506_v13 }
0x1e75   :  { %v5174_v55 = vpop.eup %5173  ;;  %v2954_v54 = vadd.f32 1e-06, %v2952_v1 }
0x1e76   :  { %v2956_v56 = vmul.f32 %v5174_v55, %v2953_v52  ;;  %vm2962_vm6 = vweird.f32 %v5174_v55 }
0x1e77   :  { %5175 = vrsqrt.f32 %v2954_v54  ;;  %vm2963_vm11 = vmor %vm2961_vm7, %vm2962_vm6  ;;  %vm2971_vm13 = vweird.f32 %v2954_v54 }
0x1e78   :  { %v2957_v57 = vmul.f32 %v5174_v55, %v2956_v56 }
0x1e7a   :  { %v2958_v59 = vmul.f32 0.5, %v2957_v57 }
0x1e7c   :  { %v2959_v61 = vsub.f32 1.5, %v2958_v59 }
0x1e7d   :  { %v5176_v48 = vpop.eup %5175 }
0x1e7e   :  { %v2966_v33 = vmul.f32 %v5176_v48, %v2954_v54  ;;  %v2960_v62 = vmul.f32 %v5174_v55, %v2959_v61  ;;  %vm2972_vm12 = vweird.f32 %v5176_v48 }
0x1e7f   :  { %vm2973_vm14 = vmor %vm2971_vm13, %vm2972_vm12 }
0x1e80   :  { %v2967_v36 = vmul.f32 %v5176_v48, %v2966_v33  ;;  %v2964_v4 = vsel %vm2963_vm11, %v5174_v55, %v2960_v62  ;;  %v4715_v33 = vld [vmem:[%s6556_s15 + $0x10] sm:$0xf] }
0x1e81   :  { %v2975_v6 = vmul.f32 %v2964_v4, %v6195_v43  ;;  %v3257_v62 = vsel %vm239_vm8, %v4715_v33, 0 }
0x1e82   :  { %v2968_v38 = vmul.f32 0.5, %v2967_v36 }
0x1e83   :  { %v2980_v17 = vmul.f32 %v5007_v41, %v2975_v6 }
0x1e84   :  { %v2969_v5 = vsub.f32 1.5, %v2968_v38 }
0x1e86   :  { %v2970_v8 = vmul.f32 %v5176_v48, %v2969_v5 }
0x1e88   :  { %v2974_v25 = vsel %vm2973_vm14, %v5176_v48, %v2970_v8 }
0x1e89   :  { %v2976_v9 = vmul.f32 %v2974_v25, %v6201_v49 }
0x1e8b   :  { %v2981_v19 = vmul.f32 %v5007_v41, %v2976_v9 }
0x1e8d   :  { %v2982_v21 = vpack.c.bf16 %v2981_v19, %v2980_v17 }
0x1e8f   :  { %4712 = vmatmul.msk.bf16.vlgmr.msra.gmra.mxu0 %vm114_vm0, %v2982_v21 }
0x1f0c   :  { %v3012_v3 = vpop.f32.mrf.mxu0 }
0x1f0d   :  { %3020 = vrot.lane.b32.xlu1 %v3012_v3, %s6635_s1 }
0x1f14   :  { %v3014_v16 = vpop.f32.mrf.mxu0 }
0x1f15   :  { %3022 = vrot.lane.b32.xlu0 %v3014_v16, %s6635_s1  ;;  %v6224_v26 = vpack.c.bf16 %v3014_v16, %v3012_v3  ;;  %v4963_v44 = vpack.i.bf16 %v3014_v16, %v3012_v3 }
0x1f7f   :  { %v3021_v22 = vpop.permute.xlu1 %3020 }
0x1f80   :  { %3026 = vxpose.xlu1.b32.start [1/2] (short) (narrow) %v3021_v22, 8 }
0x1f87   :  { %v3023_v7 = vpop.permute.xlu0 %3022 }
0x1f88   :  { %3027 = vxpose.xlu1.b32.end [2/2] (short) (narrow) %v3023_v7, 8 }
0x1fe2   :  { %3128 = vrot.lane.b32.xlu1 %v3014_v16, %s6632_s9  ;;  %v4857_v16 = vld [vmem:[%s6559_s18 + $0x18] sm:$0xff] }
0x2024   :  { %v3042_v23 = vpop.trf.xlu1 }
0x2025   :  { %v3058_v24 = vpack.c.bf16 %v3042_v23, %v3042_v23  ;;  %v4856_v23 = vld [vmem:[%s6559_s18 + $0x10] sm:$0xff] }
0x2027   :  { %v3063_v18 = vsel %vm239_vm8, %v3058_v24, 0 }
0x2028   :  { %3072 = vmatpush.bf16.msrb.mxu1 %v3063_v18  ;;  %v5267_v18 = vld [vmem:[%s6630_s7 + $0x10] sm:$0xff] }
0x202b   :  { %4713 = vmatmul.msk.bf16.vlgmr.msrb.gmra.mxu1 %vm235_vm9, %v6224_v26 }
0x2054   :  { %v3129_v35 = vpop.permute.xlu1 %3128 }
0x20a8   :  { %v3074_v53 = vpop.f32.mrf.mxu1 }
0x20a9   :  { %v3075_v29 = vadd.f32 %v5265_v28, %v3074_v53 }
0x20ab   :  { %v3079_v30 = vsel %vm257_vm10, %v3075_v29, -inf }
0x20ac   :  { %3080 = vmax.xlane.f32.xlu0 %v3079_v30  ;;  %v5268_v30 = vld [vmem:[%s6630_s7 + $0x18] sm:$0xff] }
0x20b0   :  { %v3076_v32 = vpop.f32.mrf.mxu1 }
0x20b1   :  { %v3077_v34 = vadd.f32 %v5266_v42, %v3076_v32 }
0x20b3   :  { %v3082_v12 = vsel %vm257_vm10, %v3077_v34, -inf }
0x20b4   :  { %3083 = vmax.xlane.f32.xlu2 %v3082_v12 }
0x20c0   :  { %3126 = vrot.lane.b32.xlu0 %v3012_v3, %s6632_s9 }
0x20c8   :  { %3165 = vrot.lane.b32.xlu0 %v6224_v26, %s6625_s27 }
0x20d0   :  { %3312 = vrot.lane.b32.xlu0 %v6224_v26, %s6623_s29 }
0x211f   :  { %v3081_v37 = vpop.xlane.xlu0 %3080 }
0x2120   :  { %v3085_v20 = vsub.f32 %v3075_v29, %v3081_v37 }
0x2122   :  { %v3087_v60 = vmul.f32 1.442695, %v3085_v20 }
0x2124   :  { %5177 = vpow2.f32 %v3087_v60  ;;  %v5270_v60 = vld [vmem:[%s6630_s7 + $0x28] sm:$0xff] }
0x2127   :  { %v3084_v39 = vpop.xlane.xlu2 %3083 }
0x2128   :  { %v3086_v10 = vsub.f32 %v3077_v34, %v3084_v39 }
0x212a   :  { %v5178_v40 = vpop.eup %5177  ;;  %v3089_v14 = vmul.f32 1.442695, %v3086_v10 }
0x212b   :  { %v3091_v45 = vsel %vm257_vm10, %v5178_v40, 0.0 }
0x212c   :  { %5179 = vpow2.f32 %v3089_v14  ;;  %3092 = vadd.xlane.f32.xlu2 %v3091_v45 }
0x2132   :  { %v5180_v31 = vpop.eup %5179  ;;  %v3127_v27 = vpop.permute.xlu0 %3126 }
0x2133   :  { %v3094_v58 = vsel %vm257_vm10, %v5180_v31, 0.0 }
0x2134   :  { %3095 = vadd.xlane.f32.xlu2 %v3094_v58 }
0x213a   :  { %v3166_v5 = vpop.permute.xlu0 %3165 }
0x2142   :  { %v3313_v25 = vpop.permute.xlu0 %3312 }
0x214c   :  { %3103 = vrot.lane.b32.xlu2 %v6224_v26, %s6631_s6  ;;  %s6638_s6 = sld [smem:[#allocation21_spill]] }
0x2154   :  { %4964 = vrot.lane.b32.xlu2 %v4963_v44, %s6633_s0 }
0x215c   :  { %4969 = vrot.lane.b32.xlu2 %v4963_v44, %s6622_s10 }
0x2164   :  { %3441 = vrot.lane.b32.xlu2 %v6224_v26, %s6624_s2 }
0x218a   :  { %3132 = vxpose.xlu2.b32.start [1/2] (short) (narrow) %v3127_v27, 8 }
0x2192   :  { %3133 = vxpose.xlu2.b32.end [2/2] (short) (narrow) %v3129_v35, 8 }
0x219f   :  { %v3093_v46 = vpop.xlane.xlu2 %3092 }
0x21a0   :  { %5181 = vrcp.f32 %v3093_v46  ;;  %v5271_v46 = vld [vmem:[%s6630_s7 + $0x30] sm:$0xff] }
0x21a6   :  { %v5182_v0 = vpop.eup %5181 }
0x21a7   :  { %v3096_v11 = vpop.xlane.xlu2 %3095  ;;  %v3099_v63 = vmul.f32 %v5182_v0, %v5178_v40 }
0x21a8   :  { %5183 = vrcp.f32 %v3096_v11 }
0x21ae   :  { %v5184_v50 = vpop.eup %5183 }
0x21af   :  { %v3100_v47 = vmul.f32 %v5184_v50, %v5180_v31  ;;  %v3104_v51 = vpop.permute.xlu2 %3103 }
0x21b0   :  { %3116 = vmatpush.bf16.msrb.mxu2 %v3104_v51 }
0x21b1   :  { %v3101_v52 = vpack.c.bf16 %v3100_v47, %v3099_v63 }
0x21b3   :  { %4714 = vmatmul.msk.bf16.vlgmr.msrb.gmra.mxu2 %vm257_vm10, %v3101_v52  ;;  %v5272_v52 = vld [vmem:[%s6630_s7 + $0x38] sm:$0xff] }
0x21b4   :  { %3266 = vmatpush.bf16.msra.mxu2 %v3257_v62 }
0x21b7   :  { %v4965_v15 = vpop.permute.xlu2 %4964 }
0x21b8   :  { %v4966_v55 = vunpack.i.l.bf16 %v4965_v15  ;;  %v4967_v59 = vunpack.i.h.bf16 %v4965_v15 }
0x21bf   :  { %v4970_v1 = vpop.permute.xlu2 %4969 }
0x21c0   :  { %v4971_v54 = vunpack.i.l.bf16 %v4970_v1  ;;  %v4972_v57 = vunpack.i.h.bf16 %v4970_v1 }
0x21c2   :  { %v4973_v56 = vpack.i.bf16 %v4971_v54, %v4966_v55  ;;  %v4975_v61 = vpack.i.bf16 %v4972_v57, %v4967_v59 }
0x21c4   :  { %4974 = vxpose.xlu0.b32.start [1/2] (short) (narrow) %v4973_v56, 8 }
0x21c7   :  { %v3442_v48 = vpop.permute.xlu2 %3441 }
0x21cc   :  { %4976 = vxpose.xlu0.b32.end [2/2] (short) (narrow) %v4975_v61, 8 }
0x2223   :  { %v3148_v36 = vpop.trf.xlu2 }
0x2224   :  { %v3164_v38 = vpack.c.bf16 %v3148_v36, %v3148_v36 }
0x2226   :  { %v3171_v4 = vsel %vm239_vm8, %v3164_v38, 0 }
0x2227   :  { %3180 = vmatpush.bf16.msrb.mxu3 %v3171_v4 }
0x222a   :  { %4716 = vmatmul.msk.bf16.vlgmr.msrb.gmra.mxu3 %vm235_vm9, %v3166_v5 }
0x2236   :  { %v3118_v8 = vpop.f32.mrf.mxu2 }
0x223e   :  { %v3120_v41 = vpop.f32.mrf.mxu2 }
0x223f   :  { %v3123_v6 = vpack.c.bf16 %v3120_v41, %v3118_v8 }
0x2241   :  { %4720 = vmatmul.msk.bf16.vlgmr.msra.gmra.mxu2 %vm235_vm9, %v3123_v6 }
0x2268   :  { %v4977_v9 = vpop.trf.xlu0 }
0x2269   :  { %v4981_v17 = vunpack.i.h.bf16 %v4977_v9  ;;  %v4978_v19 = vunpack.i.l.bf16 %v4977_v9 }
0x226b   :  { %v3311_v21 = vpack.c.bf16 %v4981_v17, %v4981_v17  ;;  %v3440_v3 = vpack.c.bf16 %v4978_v19, %v4978_v19 }
0x226d   :  { %v3318_v22 = vsel %vm239_vm8, %v3311_v21, 0  ;;  %v3447_v7 = vsel %vm239_vm8, %v3440_v3, 0 }
0x226e   :  { %3327 = vmatpush.bf16.msra.mxu3 %v3318_v22  ;;  %3456 = vmatpush.bf16.msrb.mxu2 %v3447_v7 }
0x2271   :  { %4721 = vmatmul.msk.bf16.vlgmr.msra.gmra.mxu3 %vm235_vm9, %v3313_v25  ;;  %4725 = vmatmul.msk.bf16.vlgmr.msrb.gmra.mxu2 %vm235_vm9, %v3442_v48 }
0x2272   :  { %3632 = vmatpush.bf16.msra.mxu2 %v4857_v16 }
0x2276   :  { %3633 = vmatpush.bf16.msra.mxu2 %v4856_v23 }
0x2281   :  { %4755 = vmatmul.msk.bf16.vlgmr.msra.gmra.mxu2 %vm114_vm0, %v6000_v2  ;;  %v5269_v2 = vld [vmem:[%s6630_s7 + $0x20] sm:$0xff] }
0x22ad   :  { %v3182_v24 = vpop.f32.mrf.mxu3 }
0x22ae   :  { %v3183_v53 = vadd.f32 %v5267_v18, %v3182_v24 }
0x22b0   :  { %v3187_v28 = vsel %vm257_vm10, %v3183_v53, -inf }
0x22b1   :  { %3188 = vmax.xlane.f32.xlu0 %v3187_v28 }
0x22b5   :  { %v3184_v29 = vpop.f32.mrf.mxu3 }
0x22b6   :  { %v3185_v32 = vadd.f32 %v5268_v30, %v3184_v29 }
0x22b8   :  { %v3190_v42 = vsel %vm257_vm10, %v3185_v32, -inf }
0x22b9   :  { %3191 = vmax.xlane.f32.xlu2 %v3190_v42 }
0x22c4   :  { %v6285_v40 = vpop.f32.mrf.mxu2 }
0x22cc   :  { %v6287_v31 = vpop.f32.mrf.mxu2 }
0x22f4   :  { %v3329_v34 = vpop.f32.mrf.mxu3  ;;  %v3458_v27 = vpop.f32.mrf.mxu2 }
0x22f5   :  { %v3330_v12 = vadd.f32 %v5269_v2, %v3329_v34  ;;  %v3459_v11 = vadd.f32 %v5271_v46, %v3458_v27 }
0x22f7   :  { %v3334_v37 = vsel %vm257_vm10, %v3330_v12, -inf  ;;  %v3463_v63 = vsel %vm257_vm10, %v3459_v11, -inf }
0x22f8   :  { %3335 = vmax.xlane.f32.xlu1 %v3334_v37 }
0x22fc   :  { %v3331_v20 = vpop.f32.mrf.mxu3  ;;  %v3460_v47 = vpop.f32.mrf.mxu2 }
0x22fd   :  { %v3332_v39 = vadd.f32 %v5270_v60, %v3331_v20  ;;  %v3461_v15 = vadd.f32 %v5272_v52, %v3460_v47  ;;  %v4718_v20 = vld [vmem:[%s6556_s15 + $0x14] sm:$0xf] }
0x22fe   :  { %v3237_v60 = vsel %vm239_vm8, %v4718_v20, 0  ;;  %v5008_v20 = vld [vmem:[%s6557_s16 + $0x1] ss:$0 sm:$0xff] }
0x22ff   :  { %v3337_v10 = vsel %vm257_vm10, %v3332_v39, -inf  ;;  %v3466_v1 = vsel %vm257_vm10, %v3461_v15, -inf  ;;  %3246 = vmatpush.bf16.msra.mxu1 %v3237_v60 }
0x2300   :  { %3338 = vmax.xlane.f32.xlu1 %v3337_v10 }
0x2324   :  { %v3189_v14 = vpop.xlane.xlu0 %3188 }
0x2325   :  { %v3193_v45 = vsub.f32 %v3183_v53, %v3189_v14 }
0x2327   :  { %v3195_v58 = vmul.f32 1.442695, %v3193_v45 }
0x2329   :  { %5185 = vpow2.f32 %v3195_v58 }
0x232c   :  { %v3192_v0 = vpop.xlane.xlu2 %3191 }
0x232d   :  { %v3194_v50 = vsub.f32 %v3185_v32, %v3192_v0  ;;  %v4727_v0 = vld [vmem:[%s6556_s15 + $0x1c] sm:$0xf] }
0x232f   :  { %v5186_v44 = vpop.eup %5185  ;;  %v3197_v51 = vmul.f32 1.442695, %v3194_v50  ;;  %v3513_v50 = vsel %vm239_vm8, %v4727_v0, 0 }
0x2330   :  { %v3199_v35 = vsel %vm257_vm10, %v5186_v44, 0.0 }
0x2331   :  { %3200 = vadd.xlane.f32.xlu1 %v3199_v35  ;;  %5187 = vpow2.f32 %v3197_v51 }
0x2337   :  { %v5188_v55 = vpop.eup %5187 }
0x2338   :  { %v3202_v54 = vsel %vm257_vm10, %v5188_v55, 0.0 }
0x2339   :  { %3464 = vmax.xlane.f32.xlu1 %v3463_v63  ;;  %v4723_v63 = vld [vmem:[%s6556_s15 + $0x18] sm:$0xf]  ;;  %s6637_s15 = sld [smem:[#allocation19_spill]] }
0x233a   :  { %v3384_v47 = vsel %vm239_vm8, %v4723_v63, 0  ;;  %v5273_v63 = vld [vmem:[%s6634_s11] sm:$0xff] }
0x233b   :  { %3393 = vmatpush.bf16.msrb.mxu1 %v3384_v47 }
0x2341   :  { %3467 = vmax.xlane.f32.xlu1 %v3466_v1 }
0x2349   :  { %3203 = vadd.xlane.f32.xlu1 %v3202_v54 }
0x2362   :  { %3210 = vrot.lane.b32.xlu1 %v6224_v26, %s6628_s30 }
0x236a   :  { %3486 = vrot.lane.b32.xlu1 %v6224_v26, %s6627_s5 }
0x236b   :  { %v3336_v56 = vpop.xlane.xlu1 %3335 }
0x236c   :  { %v3340_v57 = vsub.f32 %v3330_v12, %v3336_v56 }
0x236e   :  { %v3342_v59 = vmul.f32 1.442695, %v3340_v57 }
0x2370   :  { %5189 = vpow2.f32 %v3342_v59 }
0x2373   :  { %v3339_v33 = vpop.xlane.xlu1 %3338 }
0x2374   :  { %v3341_v6 = vsub.f32 %v3332_v39, %v3339_v33 }
0x2376   :  { %v5190_v61 = vpop.eup %5189  ;;  %v3344_v17 = vmul.f32 1.442695, %v3341_v6 }
0x2377   :  { %v3346_v48 = vsel %vm257_vm10, %v5190_v61, 0.0 }
0x2378   :  { %3347 = vadd.xlane.f32.xlu0 %v3346_v48 }
0x23a4   :  { %v3201_v62 = vpop.xlane.xlu1 %3200 }
0x23ac   :  { %v3465_v36 = vpop.xlane.xlu1 %3464 }
0x23ad   :  { %v3469_v38 = vsub.f32 %v3459_v11, %v3465_v36 }
0x23af   :  { %v3471_v4 = vmul.f32 1.442695, %v3469_v38 }
0x23b1   :  { %5191 = vpow2.f32 %v3471_v4 }
0x23b4   :  { %v3468_v5 = vpop.xlane.xlu1 %3467 }
0x23b5   :  { %v3470_v8 = vsub.f32 %v3461_v15, %v3468_v5 }
0x23b7   :  { %v5192_v41 = vpop.eup %5191  ;;  %v3473_v25 = vmul.f32 1.442695, %v3470_v8 }
0x23b8   :  { %v3475_v9 = vsel %vm257_vm10, %v5192_v41, 0.0 }
0x23b9   :  { %5193 = vpow2.f32 %v3473_v25  ;;  %3476 = vadd.xlane.f32.xlu0 %v3475_v9 }
0x23ba   :  { %5195 = vpow2.f32 %v3344_v17 }
0x23bc   :  { %v3204_v16 = vpop.xlane.xlu1 %3203 }
0x23bd   :  { %5197 = vrcp.f32 %v3204_v16 }
0x23be   :  { %5199 = vrcp.f32 %v3201_v62 }
0x23bf   :  { %v5194_v19 = vpop.eup %5193 }
0x23c0   :  { %v3478_v21 = vsel %vm257_vm10, %v5194_v19, 0.0  ;;  %v5196_v3 = vpop.eup %5195 }
0x23c1   :  { %3479 = vadd.xlane.f32.xlu2 %v3478_v21  ;;  %v3349_v22 = vsel %vm257_vm10, %v5196_v3, 0.0 }
0x23c3   :  { %v5198_v7 = vpop.eup %5197 }
0x23c4   :  { %v5200_v23 = vpop.eup %5199  ;;  %v3208_v24 = vmul.f32 %v5198_v7, %v5188_v55 }
0x23c5   :  { %v3207_v18 = vmul.f32 %v5200_v23, %v5186_v44 }
0x23c7   :  { %v3209_v28 = vpack.c.bf16 %v3208_v24, %v3207_v18 }
0x23c9   :  { %3350 = vadd.xlane.f32.xlu2 %v3349_v22 }
0x23cd   :  { %3357 = vrot.lane.b32.xlu0 %v6224_v26, %s6629_s8 }
0x23d4   :  { %v3211_v53 = vpop.permute.xlu1 %3210 }
0x23d5   :  { %3223 = vmatpush.bf16.msrb.mxu0 %v3211_v53 }
0x23d8   :  { %4717 = vmatmul.msk.bf16.vlgmr.msrb.gmra.mxu0 %vm257_vm10, %v3209_v28 }
0x23dc   :  { %v3487_v29 = vpop.permute.xlu1 %3486 }
0x23dd   :  { %3499 = vmatpush.bf16.msrb.mxu3 %v3487_v29 }
0x23eb   :  { %v3348_v30 = vpop.xlane.xlu0 %3347 }
0x242c   :  { %v3477_v32 = vpop.xlane.xlu0 %3476 }
0x242d   :  { %5201 = vrcp.f32 %v3477_v32 }
0x2433   :  { %v5202_v34 = vpop.eup %5201 }
0x2434   :  { %v3480_v42 = vpop.xlane.xlu2 %3479  ;;  %v3483_v26 = vmul.f32 %v5202_v34, %v5192_v41 }
0x2435   :  { %5203 = vrcp.f32 %v3480_v42 }
0x2436   :  { %5205 = vrcp.f32 %v3348_v30 }
0x243b   :  { %v5204_v2 = vpop.eup %5203 }
0x243c   :  { %v3484_v12 = vmul.f32 %v5204_v2, %v5194_v19  ;;  %v3351_v37 = vpop.xlane.xlu2 %3350  ;;  %v5206_v14 = vpop.eup %5205  ;;  %v4855_v19 = vld [vmem:[%s6558_s17 + $0x18] sm:$0xff] }
0x243d   :  { %5207 = vrcp.f32 %v3351_v37  ;;  %v3354_v58 = vmul.f32 %v5206_v14, %v5190_v61 }
0x243e   :  { %v3485_v39 = vpack.c.bf16 %v3484_v12, %v3483_v26 }
0x243f   :  { %v3358_v10 = vpop.permute.xlu0 %3357 }
0x2440   :  { %3370 = vmatpush.bf16.msra.mxu0 %v3358_v10  ;;  %4726 = vmatmul.msk.bf16.vlgmr.msrb.gmra.mxu3 %vm257_vm10, %v3485_v39 }
0x2443   :  { %v5208_v45 = vpop.eup %5207 }
0x2444   :  { %v3355_v44 = vmul.f32 %v5208_v45, %v5196_v3  ;;  %3522 = vmatpush.bf16.msrb.mxu0 %v3513_v50  ;;  %v4854_v3 = vld [vmem:[%s6558_s17 + $0x10] sm:$0xff]  ;;  %s5348_s17 = smov 128  }
0x2446   :  { %v3356_v27 = vpack.c.bf16 %v3355_v44, %v3354_v58 }
0x2448   :  { %4722 = vmatmul.msk.bf16.vlgmr.msra.gmra.mxu0 %vm257_vm10, %v3356_v27 }
0x2455   :  { %v3225_v35 = vpop.f32.mrf.mxu0 }
0x245d   :  { %v3227_v46 = vpop.f32.mrf.mxu0 }
0x245e   :  { %v3230_v11 = vpack.c.bf16 %v3227_v46, %v3225_v35 }
0x2460   :  { %4719 = vmatmul.msk.bf16.vlgmr.msra.gmra.mxu1 %vm235_vm9, %v3230_v11 }
0x2461   :  { %3601 = vmatpush.bf16.msra.mxu1 %v4855_v19 }
0x2465   :  { %3602 = vmatpush.bf16.msra.mxu1 %v4854_v3 }
0x24c3   :  { %v3501_v51 = vpop.f32.mrf.mxu3 }
0x24c5   :  { %v3372_v52 = vpop.f32.mrf.mxu0 }
0x24cb   :  { %v3503_v15 = vpop.f32.mrf.mxu3 }
0x24cc   :  { %v3506_v1 = vpack.c.bf16 %v3503_v15, %v3501_v51  ;;  %v5274_v15 = vld [vmem:[%s6634_s11 + $0x8] sm:$0xff] }
0x24cd   :  { %v3374_v55 = vpop.f32.mrf.mxu0 }
0x24ce   :  { %v3377_v54 = vpack.c.bf16 %v3374_v55, %v3372_v52  ;;  %4728 = vmatmul.msk.bf16.vlgmr.msrb.gmra.mxu0 %vm235_vm9, %v3506_v1 }
0x24d0   :  { %4724 = vmatmul.msk.bf16.vlgmr.msrb.gmra.mxu1 %vm235_vm9, %v3377_v54 }
0x24dd   :  { %v3248_v56 = vpop.f32.mrf.mxu1 }
0x24de   :  { %v3269_v59 = vadd.f32 %v6285_v40, %v3248_v56 }
0x24e5   :  { %v3250_v57 = vpop.f32.mrf.mxu1 }
0x24e6   :  { %v3271_v38 = vadd.f32 %v6287_v31, %v3250_v57  ;;  %v6341_v31 = vpop.f32.mrf.mxu2 }
0x24ee   :  { %v6344_v17 = vpop.f32.mrf.mxu2 }
0x24ef   :  { %v4982_v54 = vpack.i.bf16 %v6344_v17, %v6341_v31 }
0x254b   :  { %v3524_v61 = vpop.f32.mrf.mxu0 }
0x254d   :  { %v3395_v48 = vpop.f32.mrf.mxu1 }
0x254e   :  { %v3400_v33 = vadd.f32 %v3395_v48, %v3269_v59 }
0x2550   :  { %v3529_v62 = vadd.f32 %v3524_v61, %v3400_v33 }
0x2552   :  { %v6329_v36 = vadd.f32 %v3529_v62, %v6195_v43 }
0x2553   :  { %v3526_v6 = vpop.f32.mrf.mxu0 }
0x2554   :  { %v3535_v4 = vmul.f32 %v6329_v36, %v6329_v36 }
0x2555   :  { %v3397_v5 = vpop.f32.mrf.mxu1 }
0x2556   :  { %v3401_v8 = vadd.f32 %v3397_v5, %v3271_v38  ;;  %v3537_v41 = vsel %vm114_vm0, %v3535_v4, 0.0 }
0x2557   :  { %3538 = vadd.xlane.f32.xlu2 %v3537_v41 }
0x2558   :  { %v3530_v25 = vadd.f32 %v3526_v6, %v3401_v8 }
0x255a   :  { %v6336_v40 = vadd.f32 %v3530_v25, %v6201_v49  ;;  %v6380_v25 = vpack.c.bf16 %v6344_v17, %v6341_v31 }
0x255c   :  { %v3536_v9 = vmul.f32 %v6336_v40, %v6336_v40 }
0x255e   :  { %v3540_v43 = vsel %vm114_vm0, %v3536_v9, 0.0 }
0x255f   :  { %3541 = vadd.xlane.f32.xlu1 %v3540_v43 }
0x2580   :  { %3641 = vxpose.xlu2.b32.start [1/2] (short) (narrow) %v6341_v31, 8 }
0x2588   :  { %3642 = vxpose.xlu2.b32.end [2/2] (short) (narrow) %v6344_v17, 8 }
0x25ca   :  { %v3539_v49 = vpop.xlane.xlu2 %3538 }
0x25cb   :  { %v3543_v21 = vmul.f32 %v3539_v49, %v5506_v13 }
0x25cd   :  { %v3545_v16 = vadd.f32 1e-06, %v3543_v21 }
0x25cf   :  { %5209 = vrsqrt.f32 %v3545_v16  ;;  %vm3553_vm1 = vweird.f32 %v3545_v16 }
0x25d2   :  { %v3542_v22 = vpop.xlane.xlu1 %3541 }
0x25d3   :  { %v3544_v7 = vmul.f32 %v3542_v22, %v5506_v13 }
0x25d5   :  { %v5210_v23 = vpop.eup %5209  ;;  %v3546_v24 = vadd.f32 1e-06, %v3544_v7 }
0x25d6   :  { %v3548_v18 = vmul.f32 %v5210_v23, %v3545_v16  ;;  %vm3554_vm15 = vweird.f32 %v5210_v23 }
0x25d7   :  { %5211 = vrsqrt.f32 %v3546_v24  ;;  %vm3555_vm3 = vmor %vm3553_vm1, %vm3554_vm15  ;;  %vm3563_vm5 = vweird.f32 %v3546_v24 }
0x25d8   :  { %v3549_v53 = vmul.f32 %v5210_v23, %v3548_v18 }
0x25da   :  { %v3550_v28 = vmul.f32 0.5, %v3549_v53 }
0x25dc   :  { %v3551_v29 = vsub.f32 1.5, %v3550_v28 }
0x25dd   :  { %v5212_v30 = vpop.eup %5211 }
0x25de   :  { %v3558_v32 = vmul.f32 %v5212_v30, %v3546_v24  ;;  %v3552_v42 = vmul.f32 %v5210_v23, %v3551_v29  ;;  %vm3564_vm4 = vweird.f32 %v5212_v30 }
0x25df   :  { %vm3565_vm6 = vmor %vm3563_vm5, %vm3564_vm4 }
0x25e0   :  { %v3559_v34 = vmul.f32 %v5212_v30, %v3558_v32  ;;  %v3556_v26 = vsel %vm3555_vm3, %v5210_v23, %v3552_v42  ;;  %v4758_v32 = vld [vmem:[%s6560_s19 + $0x10] sm:$0xf] }
0x25e1   :  { %v3567_v60 = vmul.f32 %v3556_v26, %v6329_v36  ;;  %v3876_v42 = vsel %vm239_vm8, %v4758_v32, 0 }
0x25e2   :  { %v3560_v2 = vmul.f32 0.5, %v3559_v34 }
0x25e3   :  { %v3572_v14 = vmul.f32 %v5008_v20, %v3567_v60 }
0x25e4   :  { %v3561_v12 = vsub.f32 1.5, %v3560_v2 }
0x25e6   :  { %v3562_v37 = vmul.f32 %v5212_v30, %v3561_v12 }
0x25e8   :  { %v3566_v39 = vsel %vm3565_vm6, %v5212_v30, %v3562_v37 }
0x25e9   :  { %v3568_v10 = vmul.f32 %v3566_v39, %v6336_v40 }
0x25eb   :  { %v3573_v45 = vmul.f32 %v5008_v20, %v3568_v10 }
0x25ed   :  { %v3574_v58 = vpack.c.bf16 %v3573_v45, %v3572_v14  ;;  %v5275_v14 = vld [vmem:[%s6634_s11 + $0x10] sm:$0xff] }
0x25ef   :  { %4742 = vmatmul.msk.bf16.vlgmr.msra.gmra.mxu1 %vm114_vm0, %v3574_v58 }
0x2619   :  { %v3657_v44 = vpop.trf.xlu2 }
0x261a   :  { %v3673_v27 = vpack.c.bf16 %v3657_v44, %v3657_v44 }
0x261c   :  { %v3678_v35 = vsel %vm239_vm8, %v3673_v27, 0  ;;  %v5276_v27 = vld [vmem:[%s6634_s11 + $0x18] sm:$0xff] }
0x261d   :  { %3687 = vmatpush.bf16.msra.mxu3 %v3678_v35 }
0x266c   :  { %v3604_v46 = vpop.f32.mrf.mxu1 }
0x2674   :  { %v3606_v11 = vpop.f32.mrf.mxu1 }
0x2675   :  { %v3640_v0 = vpack.c.bf16 %v3606_v11, %v3604_v46 }
0x2677   :  { %4756 = vmatmul.msk.bf16.vlgmr.msra.gmra.mxu3 %vm235_vm9, %v3640_v0 }
0x26fa   :  { %v3689_v50 = vpop.f32.mrf.mxu3 }
0x26fb   :  { %v3690_v47 = vadd.f32 %v5273_v63, %v3689_v50 }
0x26fd   :  { %v3694_v51 = vsel %vm257_vm10, %v3690_v47, -inf }
0x26fe   :  { %3695 = vmax.xlane.f32.xlu0 %v3694_v51 }
0x2702   :  { %v3691_v52 = vpop.f32.mrf.mxu3 }
0x2703   :  { %v3692_v1 = vadd.f32 %v5274_v15, %v3691_v52 }
0x2705   :  { %v3697_v55 = vsel %vm257_vm10, %v3692_v1, -inf }
0x2706   :  { %3698 = vmax.xlane.f32.xlu1 %v3697_v55 }
0x2712   :  { %4983 = vrot.lane.b32.xlu0 %v4982_v54, %s6625_s27 }
0x271a   :  { %4988 = vrot.lane.b32.xlu0 %v4982_v54, %s6623_s29 }
0x2722   :  { %3784 = vrot.lane.b32.xlu0 %v3640_v0, %s6625_s27 }
0x2771   :  { %v3696_v56 = vpop.xlane.xlu0 %3695 }
0x2772   :  { %v3700_v57 = vsub.f32 %v3690_v47, %v3696_v56  ;;  %v5277_v47 = vld [vmem:[%s6634_s11 + $0x20] sm:$0xff] }
0x2774   :  { %v3702_v59 = vmul.f32 1.442695, %v3700_v57 }
0x2776   :  { %5213 = vpow2.f32 %v3702_v59 }
0x2779   :  { %v3699_v61 = vpop.xlane.xlu1 %3698 }
0x277a   :  { %v3701_v48 = vsub.f32 %v3692_v1, %v3699_v61  ;;  %v5278_v1 = vld [vmem:[%s6634_s11 + $0x28] sm:$0xff] }
0x277c   :  { %v5214_v33 = vpop.eup %5213  ;;  %v3704_v62 = vmul.f32 1.442695, %v3701_v48 }
0x277d   :  { %v3706_v38 = vsel %vm257_vm10, %v5214_v33, 0.0 }
0x277e   :  { %5215 = vpow2.f32 %v3704_v62  ;;  %3707 = vadd.xlane.f32.xlu1 %v3706_v38 }
0x2784   :  { %v5216_v4 = vpop.eup %5215  ;;  %v4984_v5 = vpop.permute.xlu0 %4983 }
0x2785   :  { %v4985_v8 = vunpack.i.l.bf16 %v4984_v5  ;;  %v3709_v41 = vsel %vm257_vm10, %v5216_v4, 0.0  ;;  %v4986_v6 = vunpack.i.h.bf16 %v4984_v5 }
0x2786   :  { %3710 = vadd.xlane.f32.xlu2 %v3709_v41 }
0x2787   :  { %3750 = vxpose.xlu0.b32.start [1/2] (short) (narrow) %v4985_v8, 8 }
0x278c   :  { %v4989_v9 = vpop.permute.xlu0 %4988 }
0x278d   :  { %v4990_v43 = vunpack.i.l.bf16 %v4989_v9  ;;  %v4991_v19 = vunpack.i.h.bf16 %v4989_v9  ;;  %v5279_v9 = vld [vmem:[%s6634_s11 + $0x30] sm:$0xff] }
0x278f   :  { %3751 = vxpose.xlu0.b32.end [2/2] (short) (narrow) %v4986_v6, 8 }
0x2794   :  { %v3785_v53 = vpop.permute.xlu0 %3784 }
0x2797   :  { %3719 = vrot.lane.b32.xlu1 %v6380_v25, %s6635_s1  ;;  %s6639_s1 = sld [smem:[#allocation20_spill]] }
0x279f   :  { %4993 = vrot.lane.b32.xlu1 %v4982_v54, %s6624_s2 }
0x27a7   :  { %3931 = vrot.lane.b32.xlu1 %v3640_v0, %s6623_s29  ;;  %s4468_s29 = sshll.u32 %s5351_s14, 4  ;;  %s4469_s29 = int_to_ptr.vmem [resolvable:$true] %s4468_s29 }
0x27af   :  { %4060 = vrot.lane.b32.xlu1 %v3640_v0, %s6624_s2 }
0x27e4   :  { %3898 = vxpose.xlu1.b32.start [1/2] (short) (narrow) %v4990_v43, 8 }
0x27ec   :  { %3899 = vxpose.xlu1.b32.end [2/2] (short) (narrow) %v4991_v19, 8 }
0x27f1   :  { %v3708_v21 = vpop.xlane.xlu1 %3707 }
0x27f9   :  { %v3711_v49 = vpop.xlane.xlu2 %3710 }
0x27fa   :  { %5217 = vrcp.f32 %v3711_v49 }
0x27fb   :  { %5219 = vrcp.f32 %v3708_v21  ;;  %v5280_v21 = vld [vmem:[%s6634_s11 + $0x38] sm:$0xff]  ;;  %s5347_s11 = smov [#allocation4]  }
0x2800   :  { %v5218_v31 = vpop.eup %5217 }
0x2801   :  { %v5220_v17 = vpop.eup %5219  ;;  %v3715_v3 = vmul.f32 %v5218_v31, %v5216_v4 }
0x2802   :  { %v3714_v16 = vmul.f32 %v5220_v17, %v5214_v33 }
0x2804   :  { %v3716_v7 = vpack.c.bf16 %v3715_v3, %v3714_v16 }
0x2809   :  { %v3720_v22 = vpop.permute.xlu1 %3719 }
0x280a   :  { %3732 = vmatpush.bf16.msra.mxu0 %v3720_v22 }
0x280d   :  { %4757 = vmatmul.msk.bf16.vlgmr.msra.gmra.mxu0 %vm257_vm10, %v3716_v7 }
0x280e   :  { %3885 = vmatpush.bf16.msrb.mxu0 %v3876_v42 }
0x2811   :  { %v4994_v23 = vpop.permute.xlu1 %4993 }
0x2812   :  { %v4995_v24 = vunpack.i.l.bf16 %v4994_v23  ;;  %v4996_v18 = vunpack.i.h.bf16 %v4994_v23 }
0x2814   :  { %4027 = vxpose.xlu0.b32.start [1/2] (short) (narrow) %v4995_v24, 8 }
0x2819   :  { %v3932_v34 = vpop.permute.xlu1 %3931 }
0x281c   :  { %4028 = vxpose.xlu0.b32.end [2/2] (short) (narrow) %v4996_v18, 8 }
0x2821   :  { %v4061_v2 = vpop.permute.xlu1 %4060 }
0x282b   :  { %v3766_v28 = vpop.trf.xlu0 }
0x282c   :  { %v3782_v29 = vpack.c.bf16 %v3766_v28, %v3766_v28 }
0x282e   :  { %v3790_v30 = vsel %vm239_vm8, %v3782_v29, 0 }
0x282f   :  { %3799 = vmatpush.bf16.msrb.mxu1 %v3790_v30 }
0x2832   :  { %4759 = vmatmul.msk.bf16.vlgmr.msrb.gmra.mxu1 %vm235_vm9, %v3785_v53 }
0x2888   :  { %v3914_v26 = vpop.trf.xlu1 }
0x2889   :  { %v3930_v12 = vpack.c.bf16 %v3914_v26, %v3914_v26 }
0x288a   :  { %v3734_v37 = vpop.f32.mrf.mxu0 }
0x288b   :  { %v3937_v20 = vsel %vm239_vm8, %v3930_v12, 0 }
0x288c   :  { %3946 = vmatpush.bf16.msra.mxu1 %v3937_v20 }
0x288f   :  { %4764 = vmatmul.msk.bf16.vlgmr.msra.gmra.mxu1 %vm235_vm9, %v3932_v34 }
0x2892   :  { %v3736_v60 = vpop.f32.mrf.mxu0 }
0x2893   :  { %v3739_v39 = vpack.c.bf16 %v3736_v60, %v3734_v37 }
0x2895   :  { %4763 = vmatmul.msk.bf16.vlgmr.msrb.gmra.mxu0 %vm235_vm9, %v3739_v39 }
0x28af   :  { %v3801_v10 = vpop.f32.mrf.mxu1 }
0x28b0   :  { %v3802_v45 = vadd.f32 %v5275_v14, %v3801_v10 }
0x28b2   :  { %v3806_v58 = vsel %vm257_vm10, %v3802_v45, -inf }
0x28b3   :  { %3807 = vmax.xlane.f32.xlu0 %v3806_v58 }
0x28b7   :  { %v3803_v44 = vpop.f32.mrf.mxu1 }
0x28b8   :  { %v3804_v35 = vadd.f32 %v5276_v27, %v3803_v44  ;;  %v4043_v46 = vpop.trf.xlu0 }
0x28b9   :  { %v4059_v11 = vpack.c.bf16 %v4043_v46, %v4043_v46  ;;  %v4761_v46 = vld [vmem:[%s6560_s19 + $0x14] sm:$0xf] }
0x28ba   :  { %v3809_v0 = vsel %vm257_vm10, %v3804_v35, -inf }
0x28bb   :  { %v4066_v50 = vsel %vm239_vm8, %v4059_v11, 0  ;;  %3810 = vmax.xlane.f32.xlu2 %v3809_v0  ;;  %v3856_v11 = vsel %vm239_vm8, %v4761_v46, 0 }
0x28bc   :  { %4075 = vmatpush.bf16.msra.mxu0 %v4066_v50  ;;  %3865 = vmatpush.bf16.msrb.mxu3 %v3856_v11 }
0x28bf   :  { %4768 = vmatmul.msk.bf16.vlgmr.msra.gmra.mxu0 %vm235_vm9, %v4061_v2 }
0x290c   :  { %v3948_v63 = vpop.f32.mrf.mxu1 }
0x290d   :  { %v3949_v51 = vadd.f32 %v5277_v47, %v3948_v63 }
0x290f   :  { %v3953_v52 = vsel %vm257_vm10, %v3949_v51, -inf }
0x2910   :  { %3954 = vmax.xlane.f32.xlu1 %v3953_v52 }
0x2912   :  { %v6415_v61 = vpop.f32.mrf.mxu0 }
0x2914   :  { %v3950_v15 = vpop.f32.mrf.mxu1 }
0x2915   :  { %v3951_v55 = vadd.f32 %v5278_v1, %v3950_v15 }
0x2917   :  { %v3956_v54 = vsel %vm257_vm10, %v3951_v55, -inf }
0x2918   :  { %3957 = vmax.xlane.f32.xlu2 %v3956_v54 }
0x291a   :  { %v6418_v5 = vpop.f32.mrf.mxu0 }
0x2926   :  { %v3808_v56 = vpop.xlane.xlu0 %3807 }
0x2927   :  { %v3812_v57 = vsub.f32 %v3802_v45, %v3808_v56 }
0x2929   :  { %v3814_v59 = vmul.f32 1.442695, %v3812_v57 }
0x292b   :  { %5221 = vpow2.f32 %v3814_v59 }
0x292e   :  { %v3811_v48 = vpop.xlane.xlu2 %3810 }
0x292f   :  { %v3813_v33 = vsub.f32 %v3804_v35, %v3811_v48 }
0x2931   :  { %v5222_v62 = vpop.eup %5221  ;;  %v3816_v38 = vmul.f32 1.442695, %v3813_v33 }
0x2932   :  { %v3818_v4 = vsel %vm257_vm10, %v5222_v62, 0.0 }
0x2933   :  { %5223 = vpow2.f32 %v3816_v38  ;;  %3819 = vadd.xlane.f32.xlu2 %v3818_v4 }
0x2939   :  { %v5224_v8 = vpop.eup %5223 }
0x293a   :  { %v3821_v41 = vsel %vm257_vm10, %v5224_v8, 0.0 }
0x293b   :  { %3822 = vadd.xlane.f32.xlu2 %v3821_v41 }
0x293c   :  { %v4077_v6 = vpop.f32.mrf.mxu0 }
0x293d   :  { %v4078_v43 = vadd.f32 %v5279_v9, %v4077_v6  ;;  %v4770_v6 = vld [vmem:[%s6560_s19 + $0x1c] sm:$0xf] }
0x293e   :  { %v4132_v9 = vsel %vm239_vm8, %v4770_v6, 0 }
0x293f   :  { %v4082_v19 = vsel %vm257_vm10, %v4078_v43, -inf }
0x2943   :  { %4083 = vmax.xlane.f32.xlu2 %v4082_v19 }
0x2944   :  { %v4079_v49 = vpop.f32.mrf.mxu0 }
0x2945   :  { %v4080_v31 = vadd.f32 %v5280_v21, %v4079_v49 }
0x2947   :  { %v4085_v17 = vsel %vm257_vm10, %v4080_v31, -inf }
0x294b   :  { %4086 = vmax.xlane.f32.xlu2 %v4085_v17 }
0x2963   :  { %3829 = vrot.lane.b32.xlu2 %v6380_v25, %s6632_s9 }
0x2983   :  { %v3955_v3 = vpop.xlane.xlu1 %3954 }
0x2984   :  { %v3959_v16 = vsub.f32 %v3949_v51, %v3955_v3 }
0x2986   :  { %v3961_v22 = vmul.f32 1.442695, %v3959_v16 }
0x2988   :  { %5225 = vpow2.f32 %v3961_v22 }
0x298b   :  { %v3958_v7 = vpop.xlane.xlu2 %3957 }
0x298c   :  { %v3960_v23 = vsub.f32 %v3951_v55, %v3958_v7 }
0x298e   :  { %v5226_v24 = vpop.eup %5225  ;;  %v3963_v18 = vmul.f32 1.442695, %v3960_v23 }
0x298f   :  { %v3965_v53 = vsel %vm257_vm10, %v5226_v24, 0.0 }
0x2990   :  { %5227 = vpow2.f32 %v3963_v18  ;;  %3966 = vadd.xlane.f32.xlu2 %v3965_v53 }
0x2996   :  { %v5228_v28 = vpop.eup %5227 }
0x2997   :  { %v3968_v29 = vsel %vm257_vm10, %v5228_v28, 0.0 }
0x2998   :  { %3969 = vadd.xlane.f32.xlu1 %v3968_v29 }
0x29a6   :  { %v3820_v30 = vpop.xlane.xlu2 %3819 }
0x29ae   :  { %v3823_v32 = vpop.xlane.xlu2 %3822 }
0x29af   :  { %5229 = vrcp.f32 %v3823_v32 }
0x29b5   :  { %v5230_v37 = vpop.eup %5229 }
0x29b6   :  { %v4084_v42 = vpop.xlane.xlu2 %4083  ;;  %v3827_v14 = vmul.f32 %v5230_v37, %v5224_v8  ;;  %v4766_v8 = vld [vmem:[%s6560_s19 + $0x18] sm:$0xf]  ;;  %s4480_s19 = sshll.u32 %s6638_s6, 4  ;;  %s4481_s19 = int_to_ptr.hbm [resolvable:$true] %s4480_s19 }
0x29b7   :  { %v4088_v34 = vsub.f32 %v4078_v43, %v4084_v42  ;;  %v4003_v41 = vsel %vm239_vm8, %v4766_v8, 0 }
0x29b8   :  { %4012 = vmatpush.bf16.msra.mxu3 %v4003_v41 }
0x29b9   :  { %v4090_v2 = vmul.f32 1.442695, %v4088_v34 }
0x29bb   :  { %5231 = vpow2.f32 %v4090_v2 }
0x29bc   :  { %5233 = vrcp.f32 %v3820_v30 }
0x29be   :  { %v4087_v26 = vpop.xlane.xlu2 %4086 }
0x29bf   :  { %v4089_v12 = vsub.f32 %v4080_v31, %v4087_v26 }
0x29c1   :  { %v5232_v20 = vpop.eup %5231  ;;  %v4092_v60 = vmul.f32 1.442695, %v4089_v12 }
0x29c2   :  { %v4094_v39 = vsel %vm257_vm10, %v5232_v20, 0.0  ;;  %v5234_v10 = vpop.eup %5233 }
0x29c3   :  { %5235 = vpow2.f32 %v4092_v60  ;;  %4095 = vadd.xlane.f32.xlu0 %v4094_v39  ;;  %v3826_v45 = vmul.f32 %v5234_v10, %v5222_v62  ;;  %v4863_v60 = vld [vmem:[%s6563_s22 + $0x38] sm:$0xff] }
0x29c4   :  { %4271 = vmatpush.bf16.msrb.mxu0 %v4863_v60 }
0x29c5   :  { %v3828_v44 = vpack.c.bf16 %v3827_v14, %v3826_v45 }
0x29c6   :  { %v3830_v58 = vpop.permute.xlu2 %3829 }
0x29c7   :  { %3842 = vmatpush.bf16.msrb.mxu2 %v3830_v58 }
0x29c9   :  { %v5236_v27 = vpop.eup %5235 }
0x29ca   :  { %4760 = vmatmul.msk.bf16.vlgmr.msrb.gmra.mxu2 %vm257_vm10, %v3828_v44  ;;  %v4097_v35 = vsel %vm257_vm10, %v5236_v27, 0.0 }
0x29cb   :  { %4098 = vadd.xlane.f32.xlu1 %v4097_v35 }
0x29d7   :  { %3976 = vrot.lane.b32.xlu0 %v6380_v25, %s6622_s10  ;;  %s4478_s10 = sshll.u32 %s5347_s11, 4  ;;  %s4479_s10 = int_to_ptr.vmem [resolvable:$true] %s4478_s10 }
0x29e4   :  { %4105 = vrot.lane.b32.xlu1 %v6380_v25, %s6633_s0 }
0x2a03   :  { %v3967_v50 = vpop.xlane.xlu2 %3966 }
0x2a0b   :  { %v3970_v0 = vpop.xlane.xlu1 %3969 }
0x2a0c   :  { %5237 = vrcp.f32 %v3970_v0 }
0x2a0d   :  { %5239 = vrcp.f32 %v3967_v50 }
0x2a12   :  { %v5238_v47 = vpop.eup %5237 }
0x2a13   :  { %v5240_v51 = vpop.eup %5239  ;;  %v3974_v52 = vmul.f32 %v5238_v47, %v5228_v28 }
0x2a14   :  { %v3973_v1 = vmul.f32 %v5240_v51, %v5226_v24 }
0x2a16   :  { %v3975_v25 = vpack.c.bf16 %v3974_v52, %v3973_v1 }
0x2a36   :  { %v4096_v63 = vpop.xlane.xlu0 %4095 }
0x2a3e   :  { %v4099_v15 = vpop.xlane.xlu1 %4098 }
0x2a3f   :  { %5241 = vrcp.f32 %v4099_v15  ;;  %v5009_v15 = vld [vmem:[%s6561_s20 + $0x1] ss:$0 sm:$0xff]  ;;  %s4470_s20 = sshll.u32 %s6639_s1, 4  ;;  %s4471_s20 = int_to_ptr.hbm [resolvable:$true] %s4470_s20 }
0x2a40   :  { %5243 = vrcp.f32 %v4096_v63 }
0x2a45   :  { %v5242_v56 = vpop.eup %5241 }
0x2a46   :  { %v5244_v57 = vpop.eup %5243  ;;  %v4103_v59 = vmul.f32 %v5242_v56, %v5236_v27 }
0x2a47   :  { %v4102_v33 = vmul.f32 %v5244_v57, %v5232_v20  ;;  %v4858_v20 = vld [vmem:[%s6562_s21 + $0x10] sm:$0xff] }
0x2a49   :  { %v3977_v55 = vpop.permute.xlu0 %3976  ;;  %v4104_v4 = vpack.c.bf16 %v4103_v59, %v4102_v33  ;;  %v4862_v59 = vld [vmem:[%s6563_s22 + $0x30] sm:$0xff]  ;;  %v4860_v33 = vld [vmem:[%s6563_s22 + $0x20] sm:$0xff] }
0x2a4a   :  { %3989 = vmatpush.bf16.msra.mxu2 %v3977_v55  ;;  %4272 = vmatpush.bf16.msrb.mxu0 %v4862_v59  ;;  %v5346_v59 = vmov 0.0  }
0x2a4d   :  { %v3844_v54 = vpop.f32.mrf.mxu2  ;;  %4765 = vmatmul.msk.bf16.vlgmr.msra.gmra.mxu2 %vm257_vm10, %v3975_v25 }
0x2a4e   :  { %4141 = vmatpush.bf16.msrb.mxu2 %v4132_v9 }
0x2a55   :  { %v3846_v48 = vpop.f32.mrf.mxu2 }
0x2a56   :  { %v3849_v62 = vpack.c.bf16 %v3846_v48, %v3844_v54  ;;  %v4106_v38 = vpop.permute.xlu1 %4105  ;;  %v4861_v48 = vld [vmem:[%s6563_s22 + $0x28] sm:$0xff] }
0x2a57   :  { %4118 = vmatpush.bf16.msrb.mxu1 %v4106_v38  ;;  %4273 = vmatpush.bf16.msrb.mxu0 %v4861_v48 }
0x2a58   :  { %4762 = vmatmul.msk.bf16.vlgmr.msrb.gmra.mxu3 %vm235_vm9, %v3849_v62 }
0x2a5a   :  { %4769 = vmatmul.msk.bf16.vlgmr.msrb.gmra.mxu1 %vm257_vm10, %v4104_v4 }
0x2a5b   :  { %4274 = vmatpush.bf16.msrb.mxu0 %v4860_v33 }
0x2ad0   :  { %v3991_v43 = vpop.f32.mrf.mxu2 }
0x2ad7   :  { %v4120_v19 = vpop.f32.mrf.mxu1 }
0x2ad8   :  { %v3993_v49 = vpop.f32.mrf.mxu2 }
0x2ad9   :  { %v3996_v21 = vpack.c.bf16 %v3993_v49, %v3991_v43 }
0x2adb   :  { %4767 = vmatmul.msk.bf16.vlgmr.msra.gmra.mxu3 %vm235_vm9, %v3996_v21  ;;  %v3867_v3 = vpop.f32.mrf.mxu3 }
0x2adc   :  { %v3888_v7 = vadd.f32 %v6415_v61, %v3867_v3  ;;  %v4865_v3 = vld [vmem:[%s6565_s24 + $0x8] sm:$0xff] }
0x2add   :  { %4349 = vmatpush.bf16.msra.mxu1 %v4865_v3 }
0x2adf   :  { %v4122_v31 = vpop.f32.mrf.mxu1 }
0x2ae0   :  { %v4125_v17 = vpack.c.bf16 %v4122_v31, %v4120_v19 }
0x2ae2   :  { %4771 = vmatmul.msk.bf16.vlgmr.msrb.gmra.mxu2 %vm235_vm9, %v4125_v17 }
0x2ae3   :  { %v3869_v16 = vpop.f32.mrf.mxu3 }
0x2ae4   :  { %v3890_v29 = vadd.f32 %v6418_v5, %v3869_v16  ;;  %v4859_v5 = vld [vmem:[%s6562_s21 + $0x18] sm:$0xff] }
0x2ae5   :  { %4220 = vmatpush.bf16.msrb.mxu3 %v4859_v5 }
0x2ae9   :  { %4221 = vmatpush.bf16.msrb.mxu3 %v4858_v20 }
0x2b5e   :  { %v4014_v22 = vpop.f32.mrf.mxu3 }
0x2b5f   :  { %v4019_v23 = vadd.f32 %v4014_v22, %v3888_v7  ;;  %v4864_v7 = vld [vmem:[%s6565_s24] sm:$0xff] }
0x2b60   :  { %4350 = vmatpush.bf16.msra.mxu1 %v4864_v7 }
0x2b65   :  { %v4143_v24 = vpop.f32.mrf.mxu2 }
0x2b66   :  { %v4148_v18 = vadd.f32 %v4143_v24, %v4019_v23  ;;  %v4016_v28 = vpop.f32.mrf.mxu3  ;;  %v6512_v24 = vld [vmem:[%s6636_s4 + $0x8] sm:$0xff] }
0x2b67   :  { %v4020_v32 = vadd.f32 %v4016_v28, %v3890_v29  ;;  %vm4408_vm6 = vcmp.ne.s32.totalorder %v6512_v24, 4294967196 }
0x2b68   :  { %v6459_v53 = vadd.f32 %v4148_v18, %v6329_v36  ;;  %v5345_v18 = vmov 0  }
0x2b69   :  { %4998 = vset.pattern.permute.xlu0 %v5345_v18  ;;  %4997 = vset.pattern.permute.xlu2 %v5345_v18 }
0x2b6a   :  { %v4154_v30 = vmul.f32 %v6459_v53, %v6459_v53 }
0x2b6c   :  { %v4156_v42 = vsel %vm114_vm0, %v4154_v30, 0.0 }
0x2b6d   :  { %v4145_v34 = vpop.f32.mrf.mxu2  ;;  %4157 = vadd.xlane.f32.xlu2 %v4156_v42 }
0x2b6e   :  { %v4149_v2 = vadd.f32 %v4145_v34, %v4020_v32 }
0x2b70   :  { %v6466_v61 = vadd.f32 %v4149_v2, %v6336_v40 }
0x2b72   :  { %v4155_v26 = vmul.f32 %v6466_v61, %v6466_v61 }
0x2b74   :  { %v4159_v36 = vsel %vm114_vm0, %v4155_v26, 0.0 }
0x2b75   :  { %4160 = vadd.xlane.f32.xlu2 %v4159_v36 }
0x2be0   :  { %v4158_v12 = vpop.xlane.xlu2 %4157 }
0x2be1   :  { %v4162_v37 = vmul.f32 %v4158_v12, %v5506_v13 }
0x2be3   :  { %v4164_v40 = vadd.f32 1e-06, %v4162_v37 }
0x2be5   :  { %5245 = vrsqrt.f32 %v4164_v40  ;;  %vm4172_vm9 = vweird.f32 %v4164_v40 }
0x2be8   :  { %v4161_v39 = vpop.xlane.xlu2 %4160 }
0x2be9   :  { %v4163_v10 = vmul.f32 %v4161_v39, %v5506_v13 }
0x2beb   :  { %v5246_v14 = vpop.eup %5245  ;;  %v4165_v45 = vadd.f32 1e-06, %v4163_v10 }
0x2bec   :  { %v4167_v58 = vmul.f32 %v5246_v14, %v4164_v40  ;;  %vm4173_vm8 = vweird.f32 %v5246_v14 }
0x2bed   :  { %5247 = vrsqrt.f32 %v4165_v45  ;;  %vm4174_vm10 = vmor %vm4172_vm9, %vm4173_vm8  ;;  %vm4182_vm11 = vweird.f32 %v4165_v45 }
0x2bee   :  { %v4168_v44 = vmul.f32 %v5246_v14, %v4167_v58 }
0x2bf0   :  { %v4169_v27 = vmul.f32 0.5, %v4168_v44 }
0x2bf2   :  { %v4170_v35 = vsub.f32 1.5, %v4169_v27 }
0x2bf3   :  { %v5248_v46 = vpop.eup %5247 }
0x2bf4   :  { %v4177_v11 = vmul.f32 %v5248_v46, %v4165_v45  ;;  %v4171_v0 = vmul.f32 %v5246_v14, %v4170_v35  ;;  %vm4183_vm7 = vweird.f32 %v5248_v46 }
0x2bf5   :  { %vm4184_vm12 = vmor %vm4182_vm11, %vm4183_vm7 }
0x2bf6   :  { %v4178_v50 = vmul.f32 %v5248_v46, %v4177_v11  ;;  %v4175_v47 = vsel %vm4174_vm10, %v5246_v14, %v4171_v0 }
0x2bf7   :  { %v4186_v1 = vmul.f32 %v4175_v47, %v6459_v53 }
0x2bf8   :  { %v4179_v63 = vmul.f32 0.5, %v4178_v50 }
0x2bf9   :  { %v4191_v54 = vmul.f32 %v5009_v15, %v4186_v1 }
0x2bfa   :  { %v4180_v51 = vsub.f32 1.5, %v4179_v63 }
0x2bfc   :  { %v4181_v52 = vmul.f32 %v5248_v46, %v4180_v51 }
0x2bfe   :  { %v4185_v55 = vsel %vm4184_vm12, %v5248_v46, %v4181_v52  ;;  %vm4461_vm12 = vcmask 0  }
0x2bff   :  { %v4187_v25 = vmul.f32 %v4185_v55, %v6466_v61 }
0x2c01   :  { %v4192_v56 = vmul.f32 %v5009_v15, %v4187_v25  ;;  %v4359_v25 = vld [vmem:[%s6636_s4] sm:$0xff] }
0x2c02   :  { %vm4407_vm8 = vcmp.ne.s32.totalorder %v4359_v25, 4294967196 }
0x2c03   :  { %v4193_v57 = vpack.c.bf16 %v4192_v56, %v4191_v54  ;;  %v4385_v54 = vlaneseq  ;;  %v4822_v7 = vsel %vm4407_vm8, 1.0, %v5346_v59 }
0x2c05   :  { %4785 = vmatmul.msk.bf16.vlgmr.msrb.gmra.mxu3 %vm114_vm0, %v4193_v57  ;;  %v4386_v56 = vand.u32 127, %v4385_v54 }
0x2c88   :  { %v4223_v62 = vpop.f32.mrf.mxu3 }
0x2c89   :  { %v4228_v4 = vmax.f32 %v4223_v62, 0.0 }
0x2c90   :  { %v4225_v38 = vpop.f32.mrf.mxu3 }
0x2c91   :  { %v4229_v8 = vmax.f32 %v4225_v38, 0.0 }
0x2c93   :  { %v4230_v41 = vpack.c.bf16 %v4229_v8, %v4228_v4 }
0x2c95   :  { %4810 = vmatmul.msk.bf16.vlgmr.msrb.gmra.mxu0 %vm820_vm2, %v4230_v41 }
0x2d12   :  { %v4276_v6 = vpop.f32.mrf.mxu0 }
0x2d13   :  { %v4281_v9 = vadd.f32 %v4276_v6, %v6459_v53 }
0x2d15   :  { %v4284_v43 = vmul.f32 %v4281_v9, %v4281_v9 }
0x2d17   :  { %v4286_v19 = vsel %vm114_vm0, %v4284_v43, 0.0 }
0x2d18   :  { %4287 = vadd.xlane.f32.xlu0 %v4286_v19 }
0x2d1a   :  { %v4278_v49 = vpop.f32.mrf.mxu0 }
0x2d1b   :  { %v4282_v21 = vadd.f32 %v4278_v49, %v6466_v61 }
0x2d1d   :  { %v4285_v31 = vmul.f32 %v4282_v21, %v4282_v21 }
0x2d1f   :  { %v4289_v17 = vsel %vm114_vm0, %v4285_v31, 0.0 }
0x2d20   :  { %4290 = vadd.xlane.f32.xlu2 %v4289_v17 }
0x2d2c   :  { %4391 = vperm.xlu0 %4998, %v6512_v24  }
0x2d8b   :  { %v4288_v16 = vpop.xlane.xlu0 %4287 }
0x2d8c   :  { %v4292_v22 = vmul.f32 %v4288_v16, %v5506_v13  ;;  %v4823_v16 = vsel %vm4408_vm6, 1.0, %v5346_v59 }
0x2d8e   :  { %v4294_v23 = vadd.f32 1e-06, %v4292_v22 }
0x2d90   :  { %5249 = vrsqrt.f32 %v4294_v23  ;;  %vm4302_vm14 = vweird.f32 %v4294_v23 }
0x2d93   :  { %v4291_v53 = vpop.xlane.xlu2 %4290 }
0x2d94   :  { %v4293_v28 = vmul.f32 %v4291_v53, %v5506_v13  ;;  %v5010_v13 = vld [vmem:[%s6637_s15] ss:$0 sm:$0xff] }
0x2d96   :  { %v5250_v29 = vpop.eup %5249  ;;  %v4295_v30 = vadd.f32 1e-06, %v4293_v28 }
0x2d97   :  { %v4297_v32 = vmul.f32 %v5250_v29, %v4294_v23  ;;  %vm4303_vm13 = vweird.f32 %v5250_v29 }
0x2d98   :  { %5251 = vrsqrt.f32 %v4295_v30  ;;  %vm4304_vm15 = vmor %vm4302_vm14, %vm4303_vm13  ;;  %vm4312_vm3 = vweird.f32 %v4295_v30 }
0x2d99   :  { %v4298_v42 = vmul.f32 %v5250_v29, %v4297_v32 }
0x2d9b   :  { %v4299_v34 = vmul.f32 0.5, %v4298_v42 }
0x2d9d   :  { %v4300_v2 = vsub.f32 1.5, %v4299_v34 }
0x2d9e   :  { %v5252_v61 = vpop.eup %5251  ;;  %v4392_v57 = vpop.permute.xlu0 %4391 }
0x2d9f   :  { %v4307_v26 = vmul.f32 %v5252_v61, %v4295_v30  ;;  %v4301_v36 = vmul.f32 %v5250_v29, %v4300_v2  ;;  %vm4313_vm1 = vweird.f32 %v5252_v61 }
0x2da0   :  { %vm4314_vm4 = vmor %vm4312_vm3, %vm4313_vm1 }
0x2da1   :  { %v4308_v5 = vmul.f32 %v5252_v61, %v4307_v26  ;;  %v4305_v37 = vsel %vm4304_vm15, %v5250_v29, %v4301_v36 }
0x2da2   :  { %v4316_v60 = vmul.f32 %v4305_v37, %v4281_v9 }
0x2da3   :  { %v4309_v12 = vmul.f32 0.5, %v4308_v5 }
0x2da4   :  { %v4321_v14 = vmul.f32 %v5010_v13, %v4316_v60 }
0x2da5   :  { %v4310_v20 = vsub.f32 1.5, %v4309_v12 }
0x2da7   :  { %v4311_v40 = vmul.f32 %v5252_v61, %v4310_v20 }
0x2da9   :  { %v4315_v39 = vsel %vm4314_vm4, %v5252_v61, %v4311_v40 }
0x2daa   :  { %v4317_v10 = vmul.f32 %v4315_v39, %v4282_v21 }
0x2dac   :  { %v4322_v45 = vmul.f32 %v5010_v13, %v4317_v10 }
0x2dae   :  { %v4323_v58 = vpack.c.bf16 %v4322_v45, %v4321_v14 }
0x2db0   :  { %4819 = vmatmul.msk.bf16.vlgmr.msra.gmra.mxu1 %vm114_vm0, %v4323_v58  ;;  %vm4394_vm0 = vcmp.eq.s32.totalorder %v4386_v56, %v4392_v57 }
0x2db1   :  { %v4821_v48 = vsel %vm4394_vm0, 1.0, %v5346_v59 }
0x2e2d   :  { %v4352_v44 = vpop.f32.mrf.mxu1 }
0x2e2e   :  { %4357 = vst.msk [vmem:[#allocation4] sm:$0xff] %vm820_vm2, %v4352_v44  ;;  %v4361_v27 = vsel %vm820_vm2, %v4352_v44, -inf }
0x2e2f   :  { %4362 = vmax.xlane.f32.xlu2 %v4361_v27 }
0x2e35   :  { %v4354_v35 = vpop.f32.mrf.mxu1 }
0x2e36   :  { %4358 = vst.msk [vmem:[#allocation4 + $0x8] sm:$0xff] %vm820_vm2, %v4354_v35  ;;  %v4364_v46 = vsel %vm820_vm2, %v4354_v35, -inf  ;;  %v4400_v33 = vmul.f32 %v4821_v48, %v4354_v35 }
0x2e37   :  { %4365 = vmax.xlane.f32.xlu1 %v4364_v46  ;;  %4486 = dma.vmem_to_hbm [thread:$0]  %s4479_s10, 256, %s4481_s19, [#allocation5], %s5348_s17, %s5348_s17, %s5349_s26  }
0x2e38   :  { %v4404_v62 = vsel %vm820_vm2, %v4400_v33, 0.0 }
0x2ea2   :  { %v4363_v11 = vpop.xlane.xlu2 %4362 }
0x2ea3   :  { %v4367_v0 = vsub.f32 %v4352_v44, %v4363_v11 }
0x2ea5   :  { %v4369_v50 = vmul.f32 1.442695, %v4367_v0 }
0x2ea7   :  { %5253 = vpow2.f32 %v4369_v50 }
0x2eaa   :  { %v4366_v63 = vpop.xlane.xlu1 %4365 }
0x2eab   :  { %v4368_v47 = vsub.f32 %v4354_v35, %v4366_v63 }
0x2ead   :  { %v5254_v51 = vpop.eup %5253  ;;  %v4371_v52 = vmul.f32 1.442695, %v4368_v47 }
0x2eae   :  { %v4373_v15 = vsel %vm820_vm2, %v5254_v51, 0.0 }
0x2eaf   :  { %5255 = vpow2.f32 %v4371_v52  ;;  %4374 = vadd.xlane.f32.xlu2 %v4373_v15 }
0x2eb5   :  { %v5256_v1 = vpop.eup %5255 }
0x2eb6   :  { %v4376_v55 = vsel %vm820_vm2, %v5256_v1, 0.0 }
0x2eb7   :  { %4377 = vadd.xlane.f32.xlu2 %v4376_v55 }
0x2ecf   :  { %4388 = vperm.xlu2 %4997, %v4359_v25  }
0x2ef8   :  { %4405 = vadd.xlane.f32.xlu2 %v4404_v62 }
0x2f22   :  { %v4375_v38 = vpop.xlane.xlu2 %4374 }
0x2f2a   :  { %v4378_v4 = vpop.xlane.xlu2 %4377 }
0x2f2b   :  { %5257 = vlog2.f32 %v4378_v4 }
0x2f2c   :  { %5259 = vlog2.f32 %v4375_v38 }
0x2f31   :  { %v5258_v43 = vpop.eup %5257 }
0x2f32   :  { %v4389_v8 = vpop.permute.xlu2 %4388  ;;  %v4382_v19 = vmul.f32 0.6931472, %v5258_v43  ;;  %v5260_v49 = vpop.eup %5259 }
0x2f33   :  { %vm4393_vm5 = vcmp.eq.s32.totalorder %v4386_v56, %v4389_v8  ;;  %v4380_v31 = vmul.f32 0.6931472, %v5260_v49 }
0x2f34   :  { %v4820_v41 = vsel %vm4393_vm5, 1.0, %v5346_v59  ;;  %v4384_v17 = vadd.f32 %v4382_v19, %v4366_v63 }
0x2f35   :  { %v4399_v6 = vmul.f32 %v4820_v41, %v4352_v44  ;;  %v4383_v22 = vadd.f32 %v4380_v31, %v4363_v11 }
0x2f37   :  { %v4401_v9 = vsel %vm820_vm2, %v4399_v6, 0.0  ;;  %vm4417_vm2 = vcmask 7168  }
0x2f38   :  { %4402 = vadd.xlane.f32.xlu1 %v4401_v9  ;;  %v4431_v42 = vsel %vm4417_vm2, %v4823_v16, 0.0  ;;  %v4430_v34 = vsel %vm4417_vm2, %v4822_v7, 0.0 }
0x2f39   :  { %v4432_v2 = vadd.f32 %v4431_v42, %v4430_v34 }
0x2f6b   :  { %v4406_v21 = vpop.xlane.xlu2 %4405 }
0x2f6c   :  { %v4414_v3 = vsub.f32 %v4384_v17, %v4406_v21 }
0x2f6e   :  { %v4416_v18 = vmul.f32 %v4823_v16, %v4414_v3 }
0x2f70   :  { %v4419_v29 = vsel %vm4417_vm2, %v4416_v18, 0.0 }
0x2fab   :  { %v4403_v23 = vpop.xlane.xlu1 %4402 }
0x2fac   :  { %v4413_v53 = vsub.f32 %v4383_v22, %v4403_v23 }
0x2fae   :  { %v4415_v28 = vmul.f32 %v4822_v7, %v4413_v53 }
0x2fb0   :  { %v4418_v30 = vsel %vm4417_vm2, %v4415_v28, 0.0 }
0x2fb1   :  { %v4420_v32 = vadd.f32 %v4419_v29, %v4418_v30 }
0x2fb3   :  { %4421 = vadd.xlane.f32.xlu1 %v4420_v32 }
0x2fbb   :  { %4433 = vadd.xlane.f32.xlu1 %v4432_v2 }
0x3026   :  { %v4422_v61 = vpop.xlane.xlu1 %4421 }
0x3027   :  { %v4423_v24 = vrot.slane %v4422_v61, 4 }
0x3029   :  { %v4424_v26 = vadd.f32 %v4423_v24, %v4422_v61 }
0x302b   :  { %v4425_v36 = vrot.slane %v4424_v26, 2 }
0x302d   :  { %v4426_v5 = vadd.f32 %v4425_v36, %v4424_v26 }
0x302e   :  { %v4434_v12 = vpop.xlane.xlu1 %4433 }
0x302f   :  { %v4435_v37 = vrot.slane %v4434_v12, 4  ;;  %v4427_v20 = vrot.slane %v4426_v5, 1 }
0x3031   :  { %v4436_v40 = vadd.f32 %v4435_v37, %v4434_v12  ;;  %v4428_v13 = vadd.f32 %v4427_v20, %v4426_v5 }
0x3033   :  { %v4437_v60 = vrot.slane %v4436_v40, 2  ;;  %4866 = vpush %v4428_v13 }
0x3035   :  { %v4438_v39 = vadd.f32 %v4437_v60, %v4436_v40 }
0x3037   :  { %v4439_v10 = vrot.slane %v4438_v39, 1 }
0x3039   :  { %v4440_v14 = vadd.f32 %v4439_v10, %v4438_v39 }
0x303b   :  { %4868 = vpush %v4440_v14 }
0x3064   :  { %s6535_s16 = spop %4866 }
0x306c   :  { %s4869_s25 = spop %4868 }
0x306d   :  { %s4442_s21 = smax.f32 %s5350_s28, %s4869_s25 }
0x306e   :  { %v4443_v45 = vstv %s4442_s21 }
0x306f   :  { %5261 = vrcp.f32 %v4443_v45  ;;  %v4455_v35 = vand.u32 2147483648, %v4443_v45  ;;  %v4453_v11 = vand.u32 2147483647, %v4443_v45  ;;  %vm4449_vm10 = vweird.f32 %v4443_v45 }
0x3071   :  { %v4456_v50 = vor.u32 1.1754944e-38, %v4455_v35  ;;  %vm4454_vm11 = vcmp.eq.f32.partialorder %v4453_v11, 8.507059e+37 }
0x3075   :  { %v5262_v58 = vpop.eup %5261 }
0x3076   :  { %v4445_v44 = vmul.f32 %v5262_v58, %v4443_v45  ;;  %vm4450_vm9 = vweird.f32 %v5262_v58 }
0x3077   :  { %vm4451_vm7 = vmor %vm4449_vm10, %vm4450_vm9 }
0x3078   :  { %v4446_v27 = vsub.f32 1.0, %v4445_v44 }
0x307a   :  { %v4447_v46 = vmul.f32 %v5262_v58, %v4446_v27 }
0x307c   :  { %v4448_v0 = vadd.f32 %v5262_v58, %v4447_v46 }
0x307e   :  { %v4452_v63 = vsel %vm4451_vm7, %v5262_v58, %v4448_v0 }
0x307f   :  { %v4457_v47 = vsel %vm4454_vm11, %v4456_v50, %v4452_v63 }
0x3080   :  { %4870 = vpush %v4457_v47 }
0x30b1   :  { %s4871_s3 = spop %4870 }
0x30b2   :  { %s4459_s22 = smul.f32 %s4871_s3, %s6535_s16 }
0x30b4   :  { %v4460_v51 = vstv %s4459_s22 }
0x30b5   :  { %4462 = vst.msk [vmem:[#allocation2] sm:$0x1] %vm4461_vm12, %v4460_v51 }
0x30b6   :  { %4473 = dma.vmem_to_hbm [thread:$0]  %s4469_s29, 16, %s4471_s20, [#allocation3]  }
0x30b7   :  { %5329 = dma.done.wait [#allocation3], 16  }
0x30b8   :  { %5330 = vsyncadd [#allocation3], 4294967280 }
0x30b9   :  { %5331 = dma.done.wait [#allocation5], 256  }
0x30ba   :  { %5332 = vsyncadd [#allocation5], 4294967040 }
0x30bb   :  { %4495 = vsyncpa [#allocation3], 1 }
0x30bc   :  { %4496 = vsyncpa [#allocation5], 1 }

</bundles_post_ra>
